<compile_context>
chip_gen: v7x
topology: tpu7x:2x2x1
jax: 0.10.0
libtpu: 0.0.40
codegen_flags: <defaults>
</compile_context>

<pallas_src>
import math

import jax
import jax.numpy as jnp
import numpy as np
from jax.experimental import pallas as pl
from jax.experimental.pallas import tpu as pltpu

# ----------------------------- model hyper-parameters -----------------------------
HISTORY_LEN = 20
CH          = 3                      # input_dim // history_len
INPUT_DIM   = CH * HISTORY_LEN       # 60
HIDDEN_DIMS = (64, 32)
LATENT_DIM  = 16
OUTPUT_DIMS = 45
FEET_DIM    = 6

BATCH   = 512                        # many independent samples per call (fills MXU M)
BLOCK_B = 256                        # per-grid-step batch block (one full MXU tile)
NBLK    = BATCH // BLOCK_B           # grid=(2,) -> both TCs on v7x

# CNN1dEstimator (assumed architecture, matching its constructor signature):
#   Conv1d(CH, 32, k=6, s=2) -> ReLU -> Conv1d(32, 16, k=4, s=2) -> ReLU
#   -> Flatten -> Linear(16*L2, hidden_dims[-1]) -> ReLU
# TODO(synk): CNN1dEstimator is not defined in the provided source; the above is a
# reasonable 1-D CNN estimator consistent with (activation, C, history_len, out_dim).
K1, S1, C1OUT = 6, 2, 32
K2, S2, C2OUT = 4, 2, 16
L1 = (HISTORY_LEN - K1) // S1 + 1    # 8
L2 = (L1 - K2) // S2 + 1             # 3
K1PAD    = 32                        # CH*K1 = 18 padded to a 16-multiple of rows/cols
ENC_FLAT = C2OUT * L2                # 48
HID  = HIDDEN_DIMS[-1]               # 32 (encoder output / heads input)
H1   = HIDDEN_DIMS[1]                # 32 (decoder layer-1 width)
H0   = HIDDEN_DIMS[0]                # 64 (decoder layer-2 width)
HEAD = 2 * LATENT_DIM                # 32 (mu | logvar)
OUT3     = OUTPUT_DIMS + FEET_DIM    # 51 (recon | contact logits)
OUT3_PAD = 64                        # dec3 output padded to clean lane boundary
HEAD_OFF = 64                        # lane offset of mu|logvar in the output slab
PACKED_OUT = 128                     # lane-dense output slab width

# --------- static row offsets inside the packed bf16 weight blob (16-aligned) ------
OFF_W1   = 0      # (32, 32)   conv1, rows c*K1+k (rows 18:32 zero pad)
OFF_W2   = 32     # (128, 16)  conv2, tap k at rows 32 + k*32
OFF_WENC = 160    # (48, 32)   enc fc, timestep t at rows 160 + t*16
OFF_WD1  = 208    # (16, 64)   fused decoders, layer 1
OFF_WD2  = 224    # (64, 128)  fused decoders, layer 2 (block diagonal)
OFF_WD3  = 288    # (128, 64)  fused decoders, layer 3 (block diagonal)
WBLOB_ROWS = 416
# f32 blob: rows 0..6 biases, rows 8..39 heads weight (kept in f32 for exp precision)
NBIAS      = 8
OFF_WHD    = NBIAS
BBLOB_ROWS = NBIAS + HID             # 40


# ----------------------------------- kernel ---------------------------------------
def vae_kernel(xcol_ref, eps_ref, wblob_ref, bblob_ref, out_ref):
    f32, bf16 = jnp.float32, jnp.bfloat16
    B = BLOCK_B

    def mm(a, w):
        # bf16 operands -> native single-pass MXU, f32 accumulation
        return jnp.dot(a.astype(bf16), w, preferred_element_type=f32)

    def bias(row, n):
        # one (1, n) f32 row; broadcasts over the batch sublanes in the add below
        return bblob_ref[row:row + 1, 0:n]

    # static, 16-row-aligned views of the packed bf16 weight blob
    w1  = wblob_ref[OFF_W1:OFF_W1 + K1PAD,        0:C1OUT]     # (32, 32)
    wd1 = wblob_ref[OFF_WD1:OFF_WD1 + LATENT_DIM, 0:2 * H1]    # (16, 64)
    wd2 = wblob_ref[OFF_WD2:OFF_WD2 + 2 * H1,     0:2 * H0]    # (64, 128)
    wd3 = wblob_ref[OFF_WD3:OFF_WD3 + 2 * H0,     0:OUT3_PAD]  # (128, 64)
    whd = bblob_ref[OFF_WHD:OFF_WHD + HID,        0:HEAD]      # (32, 32) f32

    b1, b2, benc = bias(0, C1OUT), bias(1, C2OUT), bias(2, HID)
    bhd, bd1     = bias(3, HEAD),  bias(4, 2 * H1)
    bd2, bd3     = bias(5, 2 * H0), bias(6, OUT3_PAD)

    # ---- conv1: one (B, 32) @ (32, 32) matmul per output timestep (no im2col cat) ----
    h1 = []
    for t in range(L1):
        xt = xcol_ref[t * B:(t + 1) * B, :]                    # (B, 32), cols 18:32 zero
        h1.append(jnp.maximum(mm(xt, w1) + b1, 0.0))           # (B, 32)

    # ---- conv2 (accumulated over taps) + encoder fc (accumulated over timesteps) ----
    # All partial products are (B, n) matmuls: no in-kernel lane/sublane concatenation.
    h_acc = None
    for t in range(L2):
        acc = None
        for k in range(K2):
            w2k = wblob_ref[OFF_W2 + k * C1OUT:OFF_W2 + (k + 1) * C1OUT, 0:C2OUT]
            p = mm(h1[t * S2 + k], w2k)                        # (B, 16)
            acc = p if acc is None else acc + p
        h2t = jnp.maximum(acc + b2, 0.0)                       # (B, 16)
        wenct = wblob_ref[OFF_WENC + t * C2OUT:OFF_WENC + (t + 1) * C2OUT, 0:HID]
        p = mm(h2t, wenct)                                     # (B, 32)
        h_acc = p if h_acc is None else h_acc + p
    h = jnp.maximum(h_acc + benc, 0.0)                         # (B, 32)

    # ---- mu | logvar heads, kept fully in f32 (exp(0.5*logvar) amplifies rounding) ----
    heads = jnp.dot(h, whd, preferred_element_type=f32) + bhd  # (B, 32) = mu | logvar
    mu = heads[:, 0:LATENT_DIM]
    logvar = heads[:, LATENT_DIM:HEAD]

    # ---- reparameterize (eps sampled outside, passed in for determinism) ----
    z = mu + eps_ref[...] * jnp.exp(0.5 * logvar)              # (B, 16) f32

    # ---- both decoders fused (layer 1 shared input, layers 2/3 block diagonal) ----
    d1 = jnp.maximum(mm(z, wd1) + bd1, 0.0)                    # (B, 64)
    d2 = jnp.maximum(mm(d1, wd2) + bd2, 0.0)                   # (B, 128)
    raw = mm(d2, wd3) + bd3                                    # (B, 64): recon 0:45 | logits 45:51

    # ---- direct sub-slice stores into the lane-dense 128-wide output block ----
    col = jax.lax.broadcasted_iota(jnp.int32, (B, OUT3_PAD), 1)
    out_ref[:, 0:OUT3_PAD] = jnp.where(col < OUTPUT_DIMS, raw, jax.nn.sigmoid(raw))
    out_ref[:, HEAD_OFF:HEAD_OFF + HEAD] = heads               # lanes 96:128 never written


# --------------------------------- parameters --------------------------------------
def init_params(key):
    """Deterministic torch-layout parameters (Linear: (out, in); Conv1d: (out, in, k))."""
    def linear(k, fan_in, fan_out):
        kw, kb = jax.random.split(k)
        bound = 1.0 / math.sqrt(fan_in)
        w = jax.random.uniform(kw, (fan_out, fan_in), jnp.float32, -bound, bound)
        b = jax.random.uniform(kb, (fan_out,), jnp.float32, -bound, bound)
        return w, b

    keys = jax.random.split(key, 11)
    p = {}

    kw, kb = jax.random.split(keys[0])
    bound = 1.0 / math.sqrt(CH * K1)
    p['conv1_w'] = jax.random.uniform(kw, (C1OUT, CH, K1), jnp.float32, -bound, bound)
    p['conv1_b'] = jax.random.uniform(kb, (C1OUT,), jnp.float32, -bound, bound)

    kw, kb = jax.random.split(keys[1])
    bound = 1.0 / math.sqrt(C1OUT * K2)
    p['conv2_w'] = jax.random.uniform(kw, (C2OUT, C1OUT, K2), jnp.float32, -bound, bound)
    p['conv2_b'] = jax.random.uniform(kb, (C2OUT,), jnp.float32, -bound, bound)

    p['enc_fc_w'], p['enc_fc_b'] = linear(keys[2], ENC_FLAT, HID)
    p['mu_w'],  p['mu_b']  = linear(keys[3], HID, LATENT_DIM)
    p['lv_w'],  p['lv_b']  = linear(keys[4], HID, LATENT_DIM)

    # decoder (reversed(hidden_dims) = (32, 64)):
    p['dec1_w'], p['dec1_b'] = linear(keys[5], LATENT_DIM, H1)
    p['dec2_w'], p['dec2_b'] = linear(keys[6], H1, H0)
    p['dec3_w'], p['dec3_b'] = linear(keys[7], H0, OUTPUT_DIMS)
    # FC (feet contact) decoder:
    p['fcd1_w'], p['fcd1_b'] = linear(keys[8],  LATENT_DIM, H1)
    p['fcd2_w'], p['fcd2_b'] = linear(keys[9],  H1, H0)
    p['fcd3_w'], p['fcd3_b'] = linear(keys[10], H0, FEET_DIM)
    return p


def pack_for_kernel(p):
    """Pack all weights into one bf16 blob (16-row-aligned slices) + one f32 blob."""
    wblob = np.zeros((WBLOB_ROWS, 128), np.float32)

    def put(off, w):
        w = np.asarray(w, np.float32)
        wblob[off:off + w.shape[0], :w.shape[1]] = w

    # conv1: rows c*K1+k (matches xcol column order); rows 18:32 stay zero
    put(OFF_W1, np.asarray(p['conv1_w']).reshape(C1OUT, CH * K1).T)
    # conv2: one (C1OUT, C2OUT) slab per tap k, rows = input channel
    for k in range(K2):
        put(OFF_W2 + k * C1OUT, np.asarray(p['conv2_w'])[:, :, k].T)
    # encoder fc: one (C2OUT, HID) slab per conv2 timestep t (torch flatten index c*L2+t)
    for t in range(L2):
        put(OFF_WENC + t * C2OUT, np.asarray(p['enc_fc_w'])[:, t::L2].T)
    # fused decoders, layer 1 (shared input z)
    put(OFF_WD1, np.concatenate([np.asarray(p['dec1_w']).T, np.asarray(p['fcd1_w']).T], axis=1))
    # fused decoders, layer 2 (block-diagonal)
    wd2 = np.zeros((2 * H1, 2 * H0), np.float32)
    wd2[:H1, :H0] = np.asarray(p['dec2_w']).T
    wd2[H1:, H0:] = np.asarray(p['fcd2_w']).T
    put(OFF_WD2, wd2)
    # fused decoders, layer 3 (block-diagonal, N padded 51 -> 64)
    wd3 = np.zeros((2 * H0, OUT3_PAD), np.float32)
    wd3[:H0, :OUTPUT_DIMS] = np.asarray(p['dec3_w']).T
    wd3[H0:, OUTPUT_DIMS:OUT3] = np.asarray(p['fcd3_w']).T
    put(OFF_WD3, wd3)

    bblob = np.zeros((BBLOB_ROWS, 128), np.float32)

    def putb(row, b):
        b = np.asarray(b, np.float32).reshape(-1)
        bblob[row, :b.shape[0]] = b

    putb(0, p['conv1_b'])
    putb(1, p['conv2_b'])
    putb(2, p['enc_fc_b'])
    putb(3, np.concatenate([np.asarray(p['mu_b']), np.asarray(p['lv_b'])]))
    putb(4, np.concatenate([np.asarray(p['dec1_b']), np.asarray(p['fcd1_b'])]))
    putb(5, np.concatenate([np.asarray(p['dec2_b']), np.asarray(p['fcd2_b'])]))
    putb(6, np.concatenate([np.asarray(p['dec3_b']), np.asarray(p['fcd3_b'])]))
    # heads (mu | logvar) weight kept in f32 for the exp(0.5*logvar) path
    bblob[OFF_WHD:OFF_WHD + HID, :HEAD] = np.concatenate(
        [np.asarray(p['mu_w']).T, np.asarray(p['lv_w']).T], axis=1)

    return jnp.asarray(wblob, jnp.bfloat16), jnp.asarray(bblob, jnp.float32)


# ---------------------------------- wrapper ----------------------------------------
def _im2col(x):
    # x: (BATCH, INPUT_DIM) -> (NBLK*L1*BLOCK_B, 32); row index blk*(L1*B) + t*B + b,
    # column index c*K1 + k (columns 18:32 zero-padded for 16-aligned bf16 rows of w1).
    x4 = x.reshape(NBLK, BLOCK_B, CH, HISTORY_LEN)
    cols = [x4[:, :, :, t * S1:t * S1 + K1].reshape(NBLK, 1, BLOCK_B, CH * K1)
            for t in range(L1)]
    xc = jnp.concatenate(cols, axis=1)
    xc = jnp.pad(xc, ((0, 0), (0, 0), (0, 0), (0, K1PAD - CH * K1)))
    return xc.reshape(NBLK * L1 * BLOCK_B, K1PAD).astype(jnp.bfloat16)


_COST = pl.CostEstimate(
    flops=2 * BATCH * (L1 * K1PAD * C1OUT + L2 * K2 * C1OUT * C2OUT + L2 * C2OUT * HID
                       + HID * HEAD + LATENT_DIM * 2 * H1 + 2 * H1 * 2 * H0
                       + 2 * H0 * OUT3_PAD),
    transcendentals=BATCH * (LATENT_DIM + OUT3_PAD),
    bytes_accessed=4 * (BATCH * LATENT_DIM + BATCH * PACKED_OUT + BBLOB_ROWS * 128)
                   + 2 * (NBLK * L1 * BLOCK_B * K1PAD + WBLOB_ROWS * 128),
)


@jax.jit
def vae_forward(x, eps, wblob, bblob):
    xcol = _im2col(x)
    out = pl.pallas_call(
        vae_kernel,
        out_shape=jax.ShapeDtypeStruct((BATCH, PACKED_OUT), jnp.float32),
        grid=(NBLK,),
        in_specs=[
            pl.BlockSpec((L1 * BLOCK_B, K1PAD), lambda i: (i, 0)),
            pl.BlockSpec((BLOCK_B, LATENT_DIM), lambda i: (i, 0)),
            pl.BlockSpec((WBLOB_ROWS, 128), lambda i: (0, 0)),
            pl.BlockSpec((BBLOB_ROWS, 128), lambda i: (0, 0)),
        ],
        out_specs=pl.BlockSpec((BLOCK_B, PACKED_OUT), lambda i: (i, 0)),
        compiler_params=pltpu.CompilerParams(dimension_semantics=("parallel",)),
        cost_estimate=_COST,
    )(xcol, eps, wblob, bblob)
    recon   = out[:, :OUTPUT_DIMS]
    contact = out[:, OUTPUT_DIMS:OUT3]
    mu      = out[:, HEAD_OFF:HEAD_OFF + LATENT_DIM]
    logvar  = out[:, HEAD_OFF + LATENT_DIM:HEAD_OFF + HEAD]
    return recon, contact, mu, logvar


# ---------------------------- pure-JAX reference ------------------------------------
def vae_reference(x, eps, p):
    n = x.shape[0]
    x3 = x.reshape(n, CH, HISTORY_LEN)
    h1 = jax.lax.conv_general_dilated(x3, p['conv1_w'], (S1,), 'VALID',
                                      dimension_numbers=('NCH', 'OIH', 'NCH'))
    h1 = jax.nn.relu(h1 + p['conv1_b'][None, :, None])
    h2 = jax.lax.conv_general_dilated(h1, p['conv2_w'], (S2,), 'VALID',
                                      dimension_numbers=('NCH', 'OIH', 'NCH'))
    h2 = jax.nn.relu(h2 + p['conv2_b'][None, :, None])
    flat = h2.reshape(n, -1)                          # torch flatten order: c*L2 + t
    h = jax.nn.relu(flat @ p['enc_fc_w'].T + p['enc_fc_b'])
    mu = h @ p['mu_w'].T + p['mu_b']
    logvar = h @ p['lv_w'].T + p['lv_b']
    z = mu + eps * jnp.exp(0.5 * logvar)
    d = jax.nn.relu(z @ p['dec1_w'].T + p['dec1_b'])
    d = jax.nn.relu(d @ p['dec2_w'].T + p['dec2_b'])
    recon = d @ p['dec3_w'].T + p['dec3_b']
    c = jax.nn.relu(z @ p['fcd1_w'].T + p['fcd1_b'])
    c = jax.nn.relu(c @ p['fcd2_w'].T + p['fcd2_b'])
    contact = jax.nn.sigmoid(c @ p['fcd3_w'].T + p['fcd3_b'])
    return recon, contact, mu, logvar


# ------------------------------------ main ------------------------------------------
if __name__ == "__main__":
    root = jax.random.PRNGKey(0)
    k_params, k_x, k_eps = jax.random.split(root, 3)

    params = init_params(k_params)
    wblob, bblob = pack_for_kernel(params)

    x = jax.random.normal(k_x, (BATCH, INPUT_DIM), jnp.float32)
    # torch.randn_like(std) sampled outside the kernel and fed in for determinism
    eps = jax.random.normal(k_eps, (BATCH, LATENT_DIM), jnp.float32)

    outs = vae_forward(x, eps, wblob, bblob)
    outs = jax.block_until_ready(outs)

    refs = vae_reference(x, eps, params)
    for o, r in zip(outs, refs):
        np.testing.assert_allclose(np.asarray(o), np.asarray(r), rtol=2e-2, atol=2e-2)

    print("KERNEL_OK")
</pallas_src>

<mosaic_0001>
module attributes {stable_mosaic.version = 11 : i64} {
  func.func @vae_kernel(%arg0: i32, %arg1: memref<2048x32xbf16, #tpu.memory_space<vmem>>, %arg2: memref<256x16xf32, #tpu.memory_space<vmem>>, %arg3: memref<416x128xbf16, #tpu.memory_space<vmem>>, %arg4: memref<40x128xf32, #tpu.memory_space<vmem>>, %arg5: memref<256x128xf32, #tpu.memory_space<vmem>>) attributes {dimension_semantics = [#tpu.dimension_semantics<parallel>], iteration_bounds = array<i64: 2>, scalar_prefetch = 0 : i64, scratch_operands = 0 : i64, tpu.core_type = #tpu.core_type<tc>, window_params = [{transform_indices = @transform_0, window_bounds = array<i64: 2048, 32>}, {transform_indices = @transform_1, window_bounds = array<i64: 256, 16>}, {pipeline_mode = #tpu.pipeline_mode<synchronous>, transform_indices = @transform_2, window_bounds = array<i64: 416, 128>}, {pipeline_mode = #tpu.pipeline_mode<synchronous>, transform_indices = @transform_3, window_bounds = array<i64: 40, 128>}, {transform_indices = @transform_4, window_bounds = array<i64: 256, 128>}]} {
    %c0 = arith.constant 0 : index
    %c0_0 = arith.constant 0 : index
    %0 = vector.load %arg3[%c0, %c0_0] : memref<416x128xbf16, #tpu.memory_space<vmem>>, vector<32x32xbf16>
    %c208 = arith.constant 208 : index
    %c0_1 = arith.constant 0 : index
    %1 = vector.load %arg3[%c208, %c0_1] : memref<416x128xbf16, #tpu.memory_space<vmem>>, vector<16x64xbf16>
    %c224 = arith.constant 224 : index
    %c0_2 = arith.constant 0 : index
    %2 = vector.load %arg3[%c224, %c0_2] : memref<416x128xbf16, #tpu.memory_space<vmem>>, vector<64x128xbf16>
    %c288 = arith.constant 288 : index
    %c0_3 = arith.constant 0 : index
    %3 = vector.load %arg3[%c288, %c0_3] : memref<416x128xbf16, #tpu.memory_space<vmem>>, vector<128x64xbf16>
    %c8 = arith.constant 8 : index
    %c0_4 = arith.constant 0 : index
    %4 = vector.load %arg4[%c8, %c0_4] : memref<40x128xf32, #tpu.memory_space<vmem>>, vector<32x32xf32>
    %c0_5 = arith.constant 0 : index
    %c0_6 = arith.constant 0 : index
    %5 = vector.load %arg4[%c0_5, %c0_6] : memref<40x128xf32, #tpu.memory_space<vmem>>, vector<1x32xf32>
    %c1 = arith.constant 1 : index
    %c0_7 = arith.constant 0 : index
    %6 = vector.load %arg4[%c1, %c0_7] : memref<40x128xf32, #tpu.memory_space<vmem>>, vector<1x16xf32>
    %c2 = arith.constant 2 : index
    %c0_8 = arith.constant 0 : index
    %7 = vector.load %arg4[%c2, %c0_8] : memref<40x128xf32, #tpu.memory_space<vmem>>, vector<1x32xf32>
    %c3 = arith.constant 3 : index
    %c0_9 = arith.constant 0 : index
    %8 = vector.load %arg4[%c3, %c0_9] : memref<40x128xf32, #tpu.memory_space<vmem>>, vector<1x32xf32>
    %c4 = arith.constant 4 : index
    %c0_10 = arith.constant 0 : index
    %9 = vector.load %arg4[%c4, %c0_10] : memref<40x128xf32, #tpu.memory_space<vmem>>, vector<1x64xf32>
    %c5 = arith.constant 5 : index
    %c0_11 = arith.constant 0 : index
    %10 = vector.load %arg4[%c5, %c0_11] : memref<40x128xf32, #tpu.memory_space<vmem>>, vector<1x128xf32>
    %c6 = arith.constant 6 : index
    %c0_12 = arith.constant 0 : index
    %11 = vector.load %arg4[%c6, %c0_12] : memref<40x128xf32, #tpu.memory_space<vmem>>, vector<1x64xf32>
    %c0_13 = arith.constant 0 : index
    %c0_14 = arith.constant 0 : index
    %12 = vector.load %arg1[%c0_13, %c0_14] : memref<2048x32xbf16, #tpu.memory_space<vmem>>, vector<256x32xbf16>
    %cst = arith.constant dense<0.000000e+00> : vector<256x32xf32>
    %13 = tpu.matmul %12, %0, %cst {dimension_numbers = #tpu.dot_dimension_numbers<[1], [0], [0], [1], [0, 0, 1, 1], [], []>} : vector<256x32xbf16>, vector<32x32xbf16>, vector<256x32xf32> -> vector<256x32xf32>
    %14 = vector.broadcast %5 : vector<1x32xf32> to vector<256x32xf32>
    %15 = arith.addf %13, %14 : vector<256x32xf32>
    %cst_15 = arith.constant 0.000000e+00 : f32
    %16 = vector.broadcast %cst_15 : f32 to vector<256x32xf32>
    %17 = arith.maximumf %15, %16 : vector<256x32xf32>
    %c256 = arith.constant 256 : index
    %c0_16 = arith.constant 0 : index
    %18 = vector.load %arg1[%c256, %c0_16] : memref<2048x32xbf16, #tpu.memory_space<vmem>>, vector<256x32xbf16>
    %cst_17 = arith.constant dense<0.000000e+00> : vector<256x32xf32>
    %19 = tpu.matmul %18, %0, %cst_17 {dimension_numbers = #tpu.dot_dimension_numbers<[1], [0], [0], [1], [0, 0, 1, 1], [], []>} : vector<256x32xbf16>, vector<32x32xbf16>, vector<256x32xf32> -> vector<256x32xf32>
    %20 = vector.broadcast %5 : vector<1x32xf32> to vector<256x32xf32>
    %21 = arith.addf %19, %20 : vector<256x32xf32>
    %cst_18 = arith.constant 0.000000e+00 : f32
    %22 = vector.broadcast %cst_18 : f32 to vector<256x32xf32>
    %23 = arith.maximumf %21, %22 : vector<256x32xf32>
    %c512 = arith.constant 512 : index
    %c0_19 = arith.constant 0 : index
    %24 = vector.load %arg1[%c512, %c0_19] : memref<2048x32xbf16, #tpu.memory_space<vmem>>, vector<256x32xbf16>
    %cst_20 = arith.constant dense<0.000000e+00> : vector<256x32xf32>
    %25 = tpu.matmul %24, %0, %cst_20 {dimension_numbers = #tpu.dot_dimension_numbers<[1], [0], [0], [1], [0, 0, 1, 1], [], []>} : vector<256x32xbf16>, vector<32x32xbf16>, vector<256x32xf32> -> vector<256x32xf32>
    %26 = vector.broadcast %5 : vector<1x32xf32> to vector<256x32xf32>
    %27 = arith.addf %25, %26 : vector<256x32xf32>
    %cst_21 = arith.constant 0.000000e+00 : f32
    %28 = vector.broadcast %cst_21 : f32 to vector<256x32xf32>
    %29 = arith.maximumf %27, %28 : vector<256x32xf32>
    %c768 = arith.constant 768 : index
    %c0_22 = arith.constant 0 : index
    %30 = vector.load %arg1[%c768, %c0_22] : memref<2048x32xbf16, #tpu.memory_space<vmem>>, vector<256x32xbf16>
    %cst_23 = arith.constant dense<0.000000e+00> : vector<256x32xf32>
    %31 = tpu.matmul %30, %0, %cst_23 {dimension_numbers = #tpu.dot_dimension_numbers<[1], [0], [0], [1], [0, 0, 1, 1], [], []>} : vector<256x32xbf16>, vector<32x32xbf16>, vector<256x32xf32> -> vector<256x32xf32>
    %32 = vector.broadcast %5 : vector<1x32xf32> to vector<256x32xf32>
    %33 = arith.addf %31, %32 : vector<256x32xf32>
    %cst_24 = arith.constant 0.000000e+00 : f32
    %34 = vector.broadcast %cst_24 : f32 to vector<256x32xf32>
    %35 = arith.maximumf %33, %34 : vector<256x32xf32>
    %c1024 = arith.constant 1024 : index
    %c0_25 = arith.constant 0 : index
    %36 = vector.load %arg1[%c1024, %c0_25] : memref<2048x32xbf16, #tpu.memory_space<vmem>>, vector<256x32xbf16>
    %cst_26 = arith.constant dense<0.000000e+00> : vector<256x32xf32>
    %37 = tpu.matmul %36, %0, %cst_26 {dimension_numbers = #tpu.dot_dimension_numbers<[1], [0], [0], [1], [0, 0, 1, 1], [], []>} : vector<256x32xbf16>, vector<32x32xbf16>, vector<256x32xf32> -> vector<256x32xf32>
    %38 = vector.broadcast %5 : vector<1x32xf32> to vector<256x32xf32>
    %39 = arith.addf %37, %38 : vector<256x32xf32>
    %cst_27 = arith.constant 0.000000e+00 : f32
    %40 = vector.broadcast %cst_27 : f32 to vector<256x32xf32>
    %41 = arith.maximumf %39, %40 : vector<256x32xf32>
    %c1280 = arith.constant 1280 : index
    %c0_28 = arith.constant 0 : index
    %42 = vector.load %arg1[%c1280, %c0_28] : memref<2048x32xbf16, #tpu.memory_space<vmem>>, vector<256x32xbf16>
    %cst_29 = arith.constant dense<0.000000e+00> : vector<256x32xf32>
    %43 = tpu.matmul %42, %0, %cst_29 {dimension_numbers = #tpu.dot_dimension_numbers<[1], [0], [0], [1], [0, 0, 1, 1], [], []>} : vector<256x32xbf16>, vector<32x32xbf16>, vector<256x32xf32> -> vector<256x32xf32>
    %44 = vector.broadcast %5 : vector<1x32xf32> to vector<256x32xf32>
    %45 = arith.addf %43, %44 : vector<256x32xf32>
    %cst_30 = arith.constant 0.000000e+00 : f32
    %46 = vector.broadcast %cst_30 : f32 to vector<256x32xf32>
    %47 = arith.maximumf %45, %46 : vector<256x32xf32>
    %c1536 = arith.constant 1536 : index
    %c0_31 = arith.constant 0 : index
    %48 = vector.load %arg1[%c1536, %c0_31] : memref<2048x32xbf16, #tpu.memory_space<vmem>>, vector<256x32xbf16>
    %cst_32 = arith.constant dense<0.000000e+00> : vector<256x32xf32>
    %49 = tpu.matmul %48, %0, %cst_32 {dimension_numbers = #tpu.dot_dimension_numbers<[1], [0], [0], [1], [0, 0, 1, 1], [], []>} : vector<256x32xbf16>, vector<32x32xbf16>, vector<256x32xf32> -> vector<256x32xf32>
    %50 = vector.broadcast %5 : vector<1x32xf32> to vector<256x32xf32>
    %51 = arith.addf %49, %50 : vector<256x32xf32>
    %cst_33 = arith.constant 0.000000e+00 : f32
    %52 = vector.broadcast %cst_33 : f32 to vector<256x32xf32>
    %53 = arith.maximumf %51, %52 : vector<256x32xf32>
    %c1792 = arith.constant 1792 : index
    %c0_34 = arith.constant 0 : index
    %54 = vector.load %arg1[%c1792, %c0_34] : memref<2048x32xbf16, #tpu.memory_space<vmem>>, vector<256x32xbf16>
    %cst_35 = arith.constant dense<0.000000e+00> : vector<256x32xf32>
    %55 = tpu.matmul %54, %0, %cst_35 {dimension_numbers = #tpu.dot_dimension_numbers<[1], [0], [0], [1], [0, 0, 1, 1], [], []>} : vector<256x32xbf16>, vector<32x32xbf16>, vector<256x32xf32> -> vector<256x32xf32>
    %56 = vector.broadcast %5 : vector<1x32xf32> to vector<256x32xf32>
    %57 = arith.addf %55, %56 : vector<256x32xf32>
    %cst_36 = arith.constant 0.000000e+00 : f32
    %58 = vector.broadcast %cst_36 : f32 to vector<256x32xf32>
    %59 = arith.maximumf %57, %58 : vector<256x32xf32>
    %c32 = arith.constant 32 : index
    %c0_37 = arith.constant 0 : index
    %60 = vector.load %arg3[%c32, %c0_37] : memref<416x128xbf16, #tpu.memory_space<vmem>>, vector<32x16xbf16>
    %61 = arith.truncf %17 : vector<256x32xf32> to vector<256x32xbf16>
    %cst_38 = arith.constant dense<0.000000e+00> : vector<256x16xf32>
    %62 = tpu.matmul %61, %60, %cst_38 {dimension_numbers = #tpu.dot_dimension_numbers<[1], [0], [0], [1], [0, 0, 1, 1], [], []>} : vector<256x32xbf16>, vector<32x16xbf16>, vector<256x16xf32> -> vector<256x16xf32>
    %c64 = arith.constant 64 : index
    %c0_39 = arith.constant 0 : index
    %63 = vector.load %arg3[%c64, %c0_39] : memref<416x128xbf16, #tpu.memory_space<vmem>>, vector<32x16xbf16>
    %64 = arith.truncf %23 : vector<256x32xf32> to vector<256x32xbf16>
    %cst_40 = arith.constant dense<0.000000e+00> : vector<256x16xf32>
    %65 = tpu.matmul %64, %63, %cst_40 {dimension_numbers = #tpu.dot_dimension_numbers<[1], [0], [0], [1], [0, 0, 1, 1], [], []>} : vector<256x32xbf16>, vector<32x16xbf16>, vector<256x16xf32> -> vector<256x16xf32>
    %66 = arith.addf %62, %65 : vector<256x16xf32>
    %c96 = arith.constant 96 : index
    %c0_41 = arith.constant 0 : index
    %67 = vector.load %arg3[%c96, %c0_41] : memref<416x128xbf16, #tpu.memory_space<vmem>>, vector<32x16xbf16>
    %68 = arith.truncf %29 : vector<256x32xf32> to vector<256x32xbf16>
    %cst_42 = arith.constant dense<0.000000e+00> : vector<256x16xf32>
    %69 = tpu.matmul %68, %67, %cst_42 {dimension_numbers = #tpu.dot_dimension_numbers<[1], [0], [0], [1], [0, 0, 1, 1], [], []>} : vector<256x32xbf16>, vector<32x16xbf16>, vector<256x16xf32> -> vector<256x16xf32>
    %70 = arith.addf %66, %69 : vector<256x16xf32>
    %c128 = arith.constant 128 : index
    %c0_43 = arith.constant 0 : index
    %71 = vector.load %arg3[%c128, %c0_43] : memref<416x128xbf16, #tpu.memory_space<vmem>>, vector<32x16xbf16>
    %72 = arith.truncf %35 : vector<256x32xf32> to vector<256x32xbf16>
    %cst_44 = arith.constant dense<0.000000e+00> : vector<256x16xf32>
    %73 = tpu.matmul %72, %71, %cst_44 {dimension_numbers = #tpu.dot_dimension_numbers<[1], [0], [0], [1], [0, 0, 1, 1], [], []>} : vector<256x32xbf16>, vector<32x16xbf16>, vector<256x16xf32> -> vector<256x16xf32>
    %74 = arith.addf %70, %73 : vector<256x16xf32>
    %75 = vector.broadcast %6 : vector<1x16xf32> to vector<256x16xf32>
    %76 = arith.addf %74, %75 : vector<256x16xf32>
    %cst_45 = arith.constant 0.000000e+00 : f32
    %77 = vector.broadcast %cst_45 : f32 to vector<256x16xf32>
    %78 = arith.maximumf %76, %77 : vector<256x16xf32>
    %c160 = arith.constant 160 : index
    %c0_46 = arith.constant 0 : index
    %79 = vector.load %arg3[%c160, %c0_46] : memref<416x128xbf16, #tpu.memory_space<vmem>>, vector<16x32xbf16>
    %80 = arith.truncf %78 : vector<256x16xf32> to vector<256x16xbf16>
    %cst_47 = arith.constant dense<0.000000e+00> : vector<256x32xf32>
    %81 = tpu.matmul %80, %79, %cst_47 {dimension_numbers = #tpu.dot_dimension_numbers<[1], [0], [0], [1], [0, 0, 1, 1], [], []>} : vector<256x16xbf16>, vector<16x32xbf16>, vector<256x32xf32> -> vector<256x32xf32>
    %c32_48 = arith.constant 32 : index
    %c0_49 = arith.constant 0 : index
    %82 = vector.load %arg3[%c32_48, %c0_49] : memref<416x128xbf16, #tpu.memory_space<vmem>>, vector<32x16xbf16>
    %83 = arith.truncf %29 : vector<256x32xf32> to vector<256x32xbf16>
    %cst_50 = arith.constant dense<0.000000e+00> : vector<256x16xf32>
    %84 = tpu.matmul %83, %82, %cst_50 {dimension_numbers = #tpu.dot_dimension_numbers<[1], [0], [0], [1], [0, 0, 1, 1], [], []>} : vector<256x32xbf16>, vector<32x16xbf16>, vector<256x16xf32> -> vector<256x16xf32>
    %c64_51 = arith.constant 64 : index
    %c0_52 = arith.constant 0 : index
    %85 = vector.load %arg3[%c64_51, %c0_52] : memref<416x128xbf16, #tpu.memory_space<vmem>>, vector<32x16xbf16>
    %86 = arith.truncf %35 : vector<256x32xf32> to vector<256x32xbf16>
    %cst_53 = arith.constant dense<0.000000e+00> : vector<256x16xf32>
    %87 = tpu.matmul %86, %85, %cst_53 {dimension_numbers = #tpu.dot_dimension_numbers<[1], [0], [0], [1], [0, 0, 1, 1], [], []>} : vector<256x32xbf16>, vector<32x16xbf16>, vector<256x16xf32> -> vector<256x16xf32>
    %88 = arith.addf %84, %87 : vector<256x16xf32>
    %c96_54 = arith.constant 96 : index
    %c0_55 = arith.constant 0 : index
    %89 = vector.load %arg3[%c96_54, %c0_55] : memref<416x128xbf16, #tpu.memory_space<vmem>>, vector<32x16xbf16>
    %90 = arith.truncf %41 : vector<256x32xf32> to vector<256x32xbf16>
    %cst_56 = arith.constant dense<0.000000e+00> : vector<256x16xf32>
    %91 = tpu.matmul %90, %89, %cst_56 {dimension_numbers = #tpu.dot_dimension_numbers<[1], [0], [0], [1], [0, 0, 1, 1], [], []>} : vector<256x32xbf16>, vector<32x16xbf16>, vector<256x16xf32> -> vector<256x16xf32>
    %92 = arith.addf %88, %91 : vector<256x16xf32>
    %c128_57 = arith.constant 128 : index
    %c0_58 = arith.constant 0 : index
    %93 = vector.load %arg3[%c128_57, %c0_58] : memref<416x128xbf16, #tpu.memory_space<vmem>>, vector<32x16xbf16>
    %94 = arith.truncf %47 : vector<256x32xf32> to vector<256x32xbf16>
    %cst_59 = arith.constant dense<0.000000e+00> : vector<256x16xf32>
    %95 = tpu.matmul %94, %93, %cst_59 {dimension_numbers = #tpu.dot_dimension_numbers<[1], [0], [0], [1], [0, 0, 1, 1], [], []>} : vector<256x32xbf16>, vector<32x16xbf16>, vector<256x16xf32> -> vector<256x16xf32>
    %96 = arith.addf %92, %95 : vector<256x16xf32>
    %97 = vector.broadcast %6 : vector<1x16xf32> to vector<256x16xf32>
    %98 = arith.addf %96, %97 : vector<256x16xf32>
    %cst_60 = arith.constant 0.000000e+00 : f32
    %99 = vector.broadcast %cst_60 : f32 to vector<256x16xf32>
    %100 = arith.maximumf %98, %99 : vector<256x16xf32>
    %c176 = arith.constant 176 : index
    %c0_61 = arith.constant 0 : index
    %101 = vector.load %arg3[%c176, %c0_61] : memref<416x128xbf16, #tpu.memory_space<vmem>>, vector<16x32xbf16>
    %102 = arith.truncf %100 : vector<256x16xf32> to vector<256x16xbf16>
    %cst_62 = arith.constant dense<0.000000e+00> : vector<256x32xf32>
    %103 = tpu.matmul %102, %101, %cst_62 {dimension_numbers = #tpu.dot_dimension_numbers<[1], [0], [0], [1], [0, 0, 1, 1], [], []>} : vector<256x16xbf16>, vector<16x32xbf16>, vector<256x32xf32> -> vector<256x32xf32>
    %104 = arith.addf %81, %103 : vector<256x32xf32>
    %c32_63 = arith.constant 32 : index
    %c0_64 = arith.constant 0 : index
    %105 = vector.load %arg3[%c32_63, %c0_64] : memref<416x128xbf16, #tpu.memory_space<vmem>>, vector<32x16xbf16>
    %106 = arith.truncf %41 : vector<256x32xf32> to vector<256x32xbf16>
    %cst_65 = arith.constant dense<0.000000e+00> : vector<256x16xf32>
    %107 = tpu.matmul %106, %105, %cst_65 {dimension_numbers = #tpu.dot_dimension_numbers<[1], [0], [0], [1], [0, 0, 1, 1], [], []>} : vector<256x32xbf16>, vector<32x16xbf16>, vector<256x16xf32> -> vector<256x16xf32>
    %c64_66 = arith.constant 64 : index
    %c0_67 = arith.constant 0 : index
    %108 = vector.load %arg3[%c64_66, %c0_67] : memref<416x128xbf16, #tpu.memory_space<vmem>>, vector<32x16xbf16>
    %109 = arith.truncf %47 : vector<256x32xf32> to vector<256x32xbf16>
    %cst_68 = arith.constant dense<0.000000e+00> : vector<256x16xf32>
    %110 = tpu.matmul %109, %108, %cst_68 {dimension_numbers = #tpu.dot_dimension_numbers<[1], [0], [0], [1], [0, 0, 1, 1], [], []>} : vector<256x32xbf16>, vector<32x16xbf16>, vector<256x16xf32> -> vector<256x16xf32>
    %111 = arith.addf %107, %110 : vector<256x16xf32>
    %c96_69 = arith.constant 96 : index
    %c0_70 = arith.constant 0 : index
    %112 = vector.load %arg3[%c96_69, %c0_70] : memref<416x128xbf16, #tpu.memory_space<vmem>>, vector<32x16xbf16>
    %113 = arith.truncf %53 : vector<256x32xf32> to vector<256x32xbf16>
    %cst_71 = arith.constant dense<0.000000e+00> : vector<256x16xf32>
    %114 = tpu.matmul %113, %112, %cst_71 {dimension_numbers = #tpu.dot_dimension_numbers<[1], [0], [0], [1], [0, 0, 1, 1], [], []>} : vector<256x32xbf16>, vector<32x16xbf16>, vector<256x16xf32> -> vector<256x16xf32>
    %115 = arith.addf %111, %114 : vector<256x16xf32>
    %c128_72 = arith.constant 128 : index
    %c0_73 = arith.constant 0 : index
    %116 = vector.load %arg3[%c128_72, %c0_73] : memref<416x128xbf16, #tpu.memory_space<vmem>>, vector<32x16xbf16>
    %117 = arith.truncf %59 : vector<256x32xf32> to vector<256x32xbf16>
    %cst_74 = arith.constant dense<0.000000e+00> : vector<256x16xf32>
    %118 = tpu.matmul %117, %116, %cst_74 {dimension_numbers = #tpu.dot_dimension_numbers<[1], [0], [0], [1], [0, 0, 1, 1], [], []>} : vector<256x32xbf16>, vector<32x16xbf16>, vector<256x16xf32> -> vector<256x16xf32>
    %119 = arith.addf %115, %118 : vector<256x16xf32>
    %120 = vector.broadcast %6 : vector<1x16xf32> to vector<256x16xf32>
    %121 = arith.addf %119, %120 : vector<256x16xf32>
    %cst_75 = arith.constant 0.000000e+00 : f32
    %122 = vector.broadcast %cst_75 : f32 to vector<256x16xf32>
    %123 = arith.maximumf %121, %122 : vector<256x16xf32>
    %c192 = arith.constant 192 : index
    %c0_76 = arith.constant 0 : index
    %124 = vector.load %arg3[%c192, %c0_76] : memref<416x128xbf16, #tpu.memory_space<vmem>>, vector<16x32xbf16>
    %125 = arith.truncf %123 : vector<256x16xf32> to vector<256x16xbf16>
    %cst_77 = arith.constant dense<0.000000e+00> : vector<256x32xf32>
    %126 = tpu.matmul %125, %124, %cst_77 {dimension_numbers = #tpu.dot_dimension_numbers<[1], [0], [0], [1], [0, 0, 1, 1], [], []>} : vector<256x16xbf16>, vector<16x32xbf16>, vector<256x32xf32> -> vector<256x32xf32>
    %127 = arith.addf %104, %126 : vector<256x32xf32>
    %128 = vector.broadcast %7 : vector<1x32xf32> to vector<256x32xf32>
    %129 = arith.addf %127, %128 : vector<256x32xf32>
    %cst_78 = arith.constant 0.000000e+00 : f32
    %130 = vector.broadcast %cst_78 : f32 to vector<256x32xf32>
    %131 = arith.maximumf %129, %130 : vector<256x32xf32>
    %cst_79 = arith.constant dense<0.000000e+00> : vector<256x32xf32>
    %132 = tpu.matmul %131, %4, %cst_79 {dimension_numbers = #tpu.dot_dimension_numbers<[1], [0], [0], [1], [0, 0, 1, 1], [], []>} : vector<256x32xf32>, vector<32x32xf32>, vector<256x32xf32> -> vector<256x32xf32>
    %133 = vector.broadcast %8 : vector<1x32xf32> to vector<256x32xf32>
    %134 = arith.addf %132, %133 : vector<256x32xf32>
    %135 = vector.extract_strided_slice %134 {offsets = [0, 0], sizes = [256, 16], strides = [1, 1]} : vector<256x32xf32> to vector<256x16xf32>
    %136 = vector.extract_strided_slice %134 {offsets = [0, 16], sizes = [256, 16], strides = [1, 1]} : vector<256x32xf32> to vector<256x16xf32>
    %c0_80 = arith.constant 0 : index
    %c0_81 = arith.constant 0 : index
    %137 = vector.load %arg2[%c0_80, %c0_81] : memref<256x16xf32, #tpu.memory_space<vmem>>, vector<256x16xf32>
    %cst_82 = arith.constant 5.000000e-01 : f32
    %138 = vector.broadcast %cst_82 : f32 to vector<256x16xf32>
    %139 = arith.mulf %138, %136 : vector<256x16xf32>
    %140 = math.exp %139 : vector<256x16xf32>
    %141 = arith.mulf %137, %140 : vector<256x16xf32>
    %142 = arith.addf %135, %141 : vector<256x16xf32>
    %143 = arith.truncf %142 : vector<256x16xf32> to vector<256x16xbf16>
    %cst_83 = arith.constant dense<0.000000e+00> : vector<256x64xf32>
    %144 = tpu.matmul %143, %1, %cst_83 {dimension_numbers = #tpu.dot_dimension_numbers<[1], [0], [0], [1], [0, 0, 1, 1], [], []>} : vector<256x16xbf16>, vector<16x64xbf16>, vector<256x64xf32> -> vector<256x64xf32>
    %145 = vector.broadcast %9 : vector<1x64xf32> to vector<256x64xf32>
    %146 = arith.addf %144, %145 : vector<256x64xf32>
    %cst_84 = arith.constant 0.000000e+00 : f32
    %147 = vector.broadcast %cst_84 : f32 to vector<256x64xf32>
    %148 = arith.maximumf %146, %147 : vector<256x64xf32>
    %149 = arith.truncf %148 : vector<256x64xf32> to vector<256x64xbf16>
    %cst_85 = arith.constant dense<0.000000e+00> : vector<256x128xf32>
    %150 = tpu.matmul %149, %2, %cst_85 {dimension_numbers = #tpu.dot_dimension_numbers<[1], [0], [0], [1], [0, 0, 1, 1], [], []>} : vector<256x64xbf16>, vector<64x128xbf16>, vector<256x128xf32> -> vector<256x128xf32>
    %151 = vector.broadcast %10 : vector<1x128xf32> to vector<256x128xf32>
    %152 = arith.addf %150, %151 : vector<256x128xf32>
    %cst_86 = arith.constant 0.000000e+00 : f32
    %153 = vector.broadcast %cst_86 : f32 to vector<256x128xf32>
    %154 = arith.maximumf %152, %153 : vector<256x128xf32>
    %155 = arith.truncf %154 : vector<256x128xf32> to vector<256x128xbf16>
    %cst_87 = arith.constant dense<0.000000e+00> : vector<256x64xf32>
    %156 = tpu.matmul %155, %3, %cst_87 {dimension_numbers = #tpu.dot_dimension_numbers<[1], [0], [0], [1], [0, 0, 1, 1], [], []>} : vector<256x128xbf16>, vector<128x64xbf16>, vector<256x64xf32> -> vector<256x64xf32>
    %157 = vector.broadcast %11 : vector<1x64xf32> to vector<256x64xf32>
    %158 = arith.addf %156, %157 : vector<256x64xf32>
    %159 = tpu.iota {dimensions = array<i32: 1>} : vector<256x64xi32>
    %c45_i32 = arith.constant 45 : i32
    %160 = vector.broadcast %c45_i32 : i32 to vector<256x64xi32>
    %161 = arith.cmpi slt, %159, %160 : vector<256x64xi32>
    %162 = arith.negf %158 : vector<256x64xf32>
    %163 = math.exp %162 : vector<256x64xf32>
    %cst_88 = arith.constant 1.000000e+00 : f32
    %164 = vector.broadcast %cst_88 : f32 to vector<256x64xf32>
    %165 = arith.addf %164, %163 : vector<256x64xf32>
    %166 = arith.divf %164, %165 : vector<256x64xf32>
    %167 = arith.select %161, %158, %166 : vector<256x64xi1>, vector<256x64xf32>
    %c0_89 = arith.constant 0 : index
    %c0_90 = arith.constant 0 : index
    %168 = vector.load %arg5[%c0_89, %c0_90] : memref<256x128xf32, #tpu.memory_space<vmem>>, vector<256x64xf32>
    tpu.vector_store %arg5[%c0_89, %c0_90], %167 {strides = array<i32>} : memref<256x128xf32, #tpu.memory_space<vmem>>, vector<256x64xf32>,
    %c0_91 = arith.constant 0 : index
    %c64_92 = arith.constant 64 : index
    %169 = vector.load %arg5[%c0_91, %c64_92] : memref<256x128xf32, #tpu.memory_space<vmem>>, vector<256x32xf32>
    tpu.vector_store %arg5[%c0_91, %c64_92], %134 {strides = array<i32>} : memref<256x128xf32, #tpu.memory_space<vmem>>, vector<256x32xf32>,
    return
  }
  func.func @transform_0(%arg0: i32) -> (i32, i32) {
    %c0_i32 = arith.constant 0 : i32
    %c0_i32_0 = arith.constant 0 : i32
    return %arg0, %c0_i32 : i32, i32
  }
  func.func @transform_1(%arg0: i32) -> (i32, i32) {
    %c0_i32 = arith.constant 0 : i32
    %c0_i32_0 = arith.constant 0 : i32
    return %arg0, %c0_i32 : i32, i32
  }
  func.func @transform_2(%arg0: i32) -> (i32, i32) {
    %c0_i32 = arith.constant 0 : i32
    %c0_i32_0 = arith.constant 0 : i32
    %c0_i32_1 = arith.constant 0 : i32
    return %c0_i32, %c0_i32_0 : i32, i32
  }
  func.func @transform_3(%arg0: i32) -> (i32, i32) {
    %c0_i32 = arith.constant 0 : i32
    %c0_i32_0 = arith.constant 0 : i32
    %c0_i32_1 = arith.constant 0 : i32
    return %c0_i32, %c0_i32_0 : i32, i32
  }
  func.func @transform_4(%arg0: i32) -> (i32, i32) {
    %c0_i32 = arith.constant 0 : i32
    %c0_i32_0 = arith.constant 0 : i32
    return %arg0, %c0_i32 : i32, i32
  }
}

</mosaic_0001>

<bundles_post_ra>
// kernel: vae_forward.1
= control target key start
LH: loop header
LB: loop body
LE: loop exit
PB: predicated region body
PF: predicated region fallthrough
CT: control target
= control target key end

     0   :  { %s11630_s15 = smov 0   ;;  %s14102_s0 = inlined_call_operand.vmem [shape: bf16[4096,32], index: 0, kind: input, shape index: {}]   ;;  %s14103_s1 = inlined_call_operand.vmem [shape: f32[512,16], index: 1, kind: input, shape index: {}]   ;;  %s14104_s2 = inlined_call_operand.vmem [shape: bf16[416,128], index: 2, kind: input, shape index: {}]   ;;  %s14105_s3 = inlined_call_operand.vmem [shape: f32[40,128], index: 3, kind: input, shape index: {}]   ;;  %s14106_s4 = inlined_call_operand.vmem [shape: f32[512,128], index: 4, kind: output, shape index: {}]  }
   0x1 LB: > { %s8717_s16 = sadd.s32 4294967295, %s11601_s15   ;;  %p8721_p0 = scmp.ge.s32.totalorder %s11601_s15, 1  ;;  %s11601_s15 = sphi %s11630_s15, %s14_s15  }
   0x2   : > { %p174_p1 = scmp.lt.s32.totalorder %s11601_s15, 3 }
   0x4   : > { %p175_p2 = pnand %p8721_p0, %p174_p1 }
   0x6   : > { %178 = sbr.rel (%p175_p2) target bundleno = 2337 (0x921), region = 36 }
   0xd   : > { %v11641_v0 = vld [vmem:[%s14104_s2] sm:$0xff]   ;;  %s8722_s19 = sshll.u32 %s8717_s16, 8  ;;  %v11648_v1 = vld [vmem:[%s14104_s2 + $0x8] sm:$0xff]   ;;  %vm393_vm0 = vcmask 261120   ;;  %vm5144_vm1 = vcmask 130048   ;;  %s11603_s18 = smov 112  }
   0xe   : > { %p206_p3 = scmp.lt.s32.totalorder %s8722_s19, 511  ;;  %10871 = vmatprep.subr.bf16.mxu1 %v11641_v0  ;;  %9863 = vmatprep.subr.bf16.mxu0 %v11641_v0  ;;  %s8724_s20 = sshll.u32 %s8717_s16, 5  ;;  %vm7758_vm2 = vcmask 523264   ;;  %vm8616_vm4 = vcmask 785920  }
   0xf   : > { %10873 = vmatpush3.bf16.msra.mxu1 %v11641_v0  ;;  %9864 = vmatpush3.bf16.msra.mxu0 %v11641_v0  ;;  %p212_p4 = scmp.lt.s32.totalorder %s8724_s20, 63 }
  0x10   : > { %s14161_s19 = smov (!%p206_p3, %s8722_s19), 511  ;;  %10872 = vmatprep.subr.bf16.mxu1 %v11648_v1  ;;  %9865 = vmatprep.subr.bf16.mxu0 %v11648_v1 }
  0x11   : > { %s8723_s22 = sshll.u32 %s14161_s19, 2  ;;  %s11604_s19 = smov 64  }
  0x12   : > { %s11659_s25 = scalar_lea.vmem %s14102_s0, %s8723_s22  ;;  %s14163_s20 = smov (!%p212_p4, %s8724_s20), 63 }
  0x13   : > { %10874 = vmatpush3.bf16.msra.mxu1 %v11648_v1  ;;  %v11239_v2 = vld [vmem:[%s11659_s25 + $0x40] sm:$0xff]   ;;  %9866 = vmatpush3.bf16.msra.mxu0 %v11648_v1  ;;  %v11240_v3 = vld [vmem:[%s11659_s25 + $0x48] sm:$0xff]   ;;  %v11241_v4 = vld [vmem:[%s11659_s25 + $0x50] sm:$0xff]   ;;  %s8725_s16 = sshll.u32 %s14163_s20, 3 }
  0x14   : > { %9899 = vmatprep.subr.bf16.mxu1 %v11641_v0  ;;  %9935 = vmatprep.subr.bf16.mxu0 %v11641_v0  ;;  %v11242_v5 = vld [vmem:[%s11659_s25 + $0x58] sm:$0xff]   ;;  %v11243_v6 = vld [vmem:[%s11659_s25 + $0x60] sm:$0xff]   ;;  %v11248_v8 = vld [vmem:[%s11659_s25 + $0x8] sm:$0xff]   ;;  %s13442_s23 = scalar_lea.vmem %s14103_s1, %s8725_s16  ;;  %s13753_s7 = scalar_lea.vmem %s14106_s4, %s8725_s16 }
  0x15   : > { %9883 = vmatprep.mubr.msk.bf16.mxu1 %vm393_vm0, %v11239_v2  ;;  %v11247_v7 = vld [vmem:[%s11659_s25] sm:$0xff]   ;;  %v11251_v9 = vld [vmem:[%s11659_s25 + $0x10] sm:$0xff]   ;;  %v11244_v10 = vld [vmem:[%s11659_s25 + $0x68] sm:$0xff]  }
  0x16   : > { %9884 = vmatmul.mubr.msk.bf16.vlgmr.msra.gmra.mrb[0].mxu1 %vm393_vm0, %v11240_v3  ;;  %9867 = vmatprep.mubr.msk.bf16.mxu0 %vm393_vm0, %v11247_v7  ;;  %v11245_v11 = vld [vmem:[%s11659_s25 + $0x70] sm:$0xff]   ;;  %v11252_v12 = vld [vmem:[%s11659_s25 + $0x18] sm:$0xff]   ;;  %v11255_v13 = vld [vmem:[%s11659_s25 + $0x20] sm:$0xff]  }
  0x17   : > { %9900 = vmatpush3.bf16.msra.mxu1 %v11641_v0  ;;  %9887 = vmatprep.mubr.msk.bf16.mxu1 %vm393_vm0, %v11241_v4  ;;  %v11246_v14 = vld [vmem:[%s11659_s25 + $0x78] sm:$0xff]   ;;  %v11249_v15 = vld [vmem:[%s11659_s25 + $0x80] sm:$0xff]   ;;  %v11256_v16 = vld [vmem:[%s11659_s25 + $0x28] sm:$0xff]  }
  0x18   : > { %9901 = vmatprep.subr.bf16.mxu1 %v11648_v1  ;;  %9868 = vmatmul.mubr.msk.bf16.vlgmr.msra.gmra.mrb[0].mxu0 %vm393_vm0, %v11248_v8  ;;  %v11259_v17 = vld [vmem:[%s11659_s25 + $0x30] sm:$0xff]   ;;  %v11250_v18 = vld [vmem:[%s11659_s25 + $0x88] sm:$0xff]   ;;  %v11260_v19 = vld [vmem:[%s11659_s25 + $0x38] sm:$0xff]  }
  0x19   : > { %9936 = vmatpush3.bf16.msra.mxu0 %v11641_v0  ;;  %9871 = vmatprep.mubr.msk.bf16.mxu0 %vm393_vm0, %v11251_v9  ;;  %v11253_v20 = vld [vmem:[%s11659_s25 + $0x90] sm:$0xff]   ;;  %v11263_v21 = vld [vmem:[%s11659_s25 + $0x100] sm:$0xff]   ;;  %v11254_v22 = vld [vmem:[%s11659_s25 + $0x98] sm:$0xff]  }
  0x1a   : > { %9937 = vmatprep.subr.bf16.mxu0 %v11648_v1  ;;  %v11257_v23 = vld [vmem:[%s11659_s25 + $0xa0] sm:$0xff]   ;;  %v11264_v24 = vld [vmem:[%s11659_s25 + $0x108] sm:$0xff]   ;;  %v11267_v25 = vld [vmem:[%s11659_s25 + $0x110] sm:$0xff]  }
  0x1b   : > { %9902 = vmatpush3.bf16.msra.mxu1 %v11648_v1  ;;  %v11258_v26 = vld [vmem:[%s11659_s25 + $0xa8] sm:$0xff]   ;;  %v11261_v27 = vld [vmem:[%s11659_s25 + $0xb0] sm:$0xff]   ;;  %v11268_v28 = vld [vmem:[%s11659_s25 + $0x118] sm:$0xff]  }
  0x1c   : > { %9971 = vmatprep.subr.bf16.mxu1 %v11641_v0  ;;  %v11271_v29 = vld [vmem:[%s11659_s25 + $0x120] sm:$0xff]   ;;  %v11262_v30 = vld [vmem:[%s11659_s25 + $0xb8] sm:$0xff]   ;;  %v11272_v32 = vld [vmem:[%s11659_s25 + $0x128] sm:$0xff]  }
  0x1d   : > { %9938 = vmatpush3.bf16.msra.mxu0 %v11648_v1  ;;  %v11265_v31 = vld [vmem:[%s11659_s25 + $0xc0] sm:$0xff]   ;;  %v11275_v33 = vld [vmem:[%s11659_s25 + $0x130] sm:$0xff]   ;;  %v11266_v34 = vld [vmem:[%s11659_s25 + $0xc8] sm:$0xff]  }
  0x1e   : > { %9888 = vmatmul.mubr.msk.bf16.gmra.mrb[4].mxu1 %vm393_vm0, %v11242_v5  ;;  %10007 = vmatprep.subr.bf16.mxu0 %v11641_v0  ;;  %v11269_v35 = vld [vmem:[%s11659_s25 + $0xd0] sm:$0xff]   ;;  %v11276_v36 = vld [vmem:[%s11659_s25 + $0x138] sm:$0xff]   ;;  %v11279_v37 = vld [vmem:[%s11659_s25 + $0x140] sm:$0xff]  }
  0x1f   : > { %9891 = vmatprep.mubr.msk.bf16.mxu1 %vm393_vm0, %v11243_v6  ;;  %v11270_v38 = vld [vmem:[%s11659_s25 + $0xd8] sm:$0xff]   ;;  %v11273_v39 = vld [vmem:[%s11659_s25 + $0xe0] sm:$0xff]   ;;  %v11280_v40 = vld [vmem:[%s11659_s25 + $0x148] sm:$0xff]  }
  0x20   : > { %9872 = vmatmul.mubr.msk.bf16.gmra.mrb[4].mxu0 %vm393_vm0, %v11252_v12  ;;  %v11283_v41 = vld [vmem:[%s11659_s25 + $0x150] sm:$0xff]   ;;  %v11274_v42 = vld [vmem:[%s11659_s25 + $0xe8] sm:$0xff]   ;;  %v11284_v44 = vld [vmem:[%s11659_s25 + $0x158] sm:$0xff]  }
  0x21   : > { %9875 = vmatprep.mubr.msk.bf16.mxu0 %vm393_vm0, %v11255_v13  ;;  %v11277_v43 = vld [vmem:[%s11659_s25 + $0xf0] sm:$0xff]   ;;  %v11287_v45 = vld [vmem:[%s11659_s25 + $0x160] sm:$0xff]   ;;  %v11278_v46 = vld [vmem:[%s11659_s25 + $0xf8] sm:$0xff]  }
  0x22   : > { %v11281_v47 = vld [vmem:[%s11659_s25 + $0x180] sm:$0xff]   ;;  %v11288_v48 = vld [vmem:[%s11659_s25 + $0x168] sm:$0xff]   ;;  %v11291_v49 = vld [vmem:[%s11659_s25 + $0x170] sm:$0xff]  }
  0x23   : > { %v11282_v50 = vld [vmem:[%s11659_s25 + $0x188] sm:$0xff]   ;;  %v11285_v51 = vld [vmem:[%s11659_s25 + $0x190] sm:$0xff]   ;;  %v11292_v52 = vld [vmem:[%s11659_s25 + $0x178] sm:$0xff]  }
  0x24   : > { %v11295_v53 = vld [vmem:[%s11659_s25 + $0x200] sm:$0xff]   ;;  %v11286_v54 = vld [vmem:[%s11659_s25 + $0x198] sm:$0xff]   ;;  %v11296_v56 = vld [vmem:[%s11659_s25 + $0x208] sm:$0xff]  }
  0x25   : > { %v11289_v55 = vld [vmem:[%s11659_s25 + $0x1a0] sm:$0xff]   ;;  %v11299_v57 = vld [vmem:[%s11659_s25 + $0x210] sm:$0xff]   ;;  %v11290_v58 = vld [vmem:[%s11659_s25 + $0x1a8] sm:$0xff]  }
  0x26   : > { %9892 = vmatmul.mubr.msk.bf16.gmra.mrb[8].mxu1 %vm393_vm0, %v11244_v10  ;;  %v11293_v59 = vld [vmem:[%s11659_s25 + $0x1b0] sm:$0xff]   ;;  %v11300_v60 = vld [vmem:[%s11659_s25 + $0x218] sm:$0xff]   ;;  %v11303_v61 = vld [vmem:[%s11659_s25 + $0x220] sm:$0xff]  }
  0x27   : > { %9895 = vmatprep.mubr.msk.bf16.mxu1 %vm393_vm0, %v11245_v11  ;;  %v11294_v62 = vld [vmem:[%s11659_s25 + $0x1b8] sm:$0xff]   ;;  %v11297_v63 = vld [vmem:[%s11659_s25 + $0x1c0] sm:$0xff]   ;;  %v11307_v2 = vld [vmem:[%s11659_s25 + $0x230] sm:$0xff]  }
  0x28   : > { %9876 = vmatmul.mubr.msk.bf16.gmra.mrb[8].mxu0 %vm393_vm0, %v11256_v16  ;;  %v11298_v3 = vld [vmem:[%s11659_s25 + $0x1c8] sm:$0xff]   ;;  %v11308_v4 = vld [vmem:[%s11659_s25 + $0x238] sm:$0xff]   ;;  %v11301_v5 = vld [vmem:[%s11659_s25 + $0x1d0] sm:$0xff]  }
  0x29   : > { %9879 = vmatprep.mubr.msk.bf16.mxu0 %vm393_vm0, %v11259_v17  ;;  %v11311_v6 = vld [vmem:[%s11659_s25 + $0x240] sm:$0xff]   ;;  %v11302_v7 = vld [vmem:[%s11659_s25 + $0x1d8] sm:$0xff]   ;;  %v11312_v8 = vld [vmem:[%s11659_s25 + $0x248] sm:$0xff]  }
  0x2a   : > { %v11305_v9 = vld [vmem:[%s11659_s25 + $0x1e0] sm:$0xff]   ;;  %v11313_v10 = vld [vmem:[%s11659_s25 + $0x250] sm:$0xff]   ;;  %v11306_v11 = vld [vmem:[%s11659_s25 + $0x1e8] sm:$0xff]  }
  0x2b   : > { %v11314_v12 = vld [vmem:[%s11659_s25 + $0x258] sm:$0xff]   ;;  %v11309_v13 = vld [vmem:[%s11659_s25 + $0x1f0] sm:$0xff]   ;;  %v11316_v16 = vld [vmem:[%s11659_s25 + $0x268] sm:$0xff]  }
  0x2c   : > { %v11317_v17 = vld [vmem:[%s11659_s25 + $0x270] sm:$0xff]  }
  0x2e   : > { %9896 = vmatmul.mubr.msk.bf16.gmra.mrb[12].mxu1 %vm393_vm0, %v11246_v14  ;;  %v11315_v14 = vld [vmem:[%s11659_s25 + $0x260] sm:$0xff]  }
  0x2f   : > { %9903 = vmatprep.mubr.msk.bf16.mxu1 %vm393_vm0, %v11249_v15  ;;  %v11310_v15 = vld [vmem:[%s11659_s25 + $0x1f8] sm:$0xff]  }
  0x30   : > { %9880 = vmatmul.mubr.msk.bf16.gmra.mrb[12].mxu0 %vm393_vm0, %v11260_v19  ;;  %v11318_v19 = vld [vmem:[%s11659_s25 + $0x278] sm:$0xff]  }
  0x31   : > { %9939 = vmatprep.mubr.msk.bf16.mxu0 %vm393_vm0, %v11263_v21  ;;  %v11321_v21 = vld [vmem:[%s11659_s25 + $0x300] sm:$0xff]  }
  0x36   : > { %9904 = vmatmul.mubr.msk.bf16.vlgmr.msra.gmra.mrb[16].mxu1 %vm393_vm0, %v11250_v18  ;;  %v11319_v18 = vld [vmem:[%s11659_s25 + $0x280] sm:$0xff]  }
  0x37   : > { %9972 = vmatpush3.bf16.msra.mxu1 %v11641_v0  ;;  %9907 = vmatprep.mubr.msk.bf16.mxu1 %vm393_vm0, %v11253_v20  ;;  %v11320_v20 = vld [vmem:[%s11659_s25 + $0x288] sm:$0xff]  }
  0x38   : > { %9973 = vmatprep.subr.bf16.mxu1 %v11648_v1  ;;  %9940 = vmatmul.mubr.msk.bf16.vlgmr.msra.gmra.mrb[16].mxu0 %vm393_vm0, %v11264_v24  ;;  %v11584_v24 = vld [vmem:[%s14104_s2 + $0x8] sm:$0xff]  }
  0x39   : > { %9943 = vmatprep.mubr.msk.bf16.mxu0 %vm393_vm0, %v11267_v25  ;;  %10008 = vmatpush3.bf16.msra.mxu0 %v11641_v0  ;;  %v11322_v25 = vld [vmem:[%s11659_s25 + $0x308] sm:$0xff]  }
  0x3a   : > { %10009 = vmatprep.subr.bf16.mxu0 %v11648_v1 }
  0x3b   : > { %9974 = vmatpush3.bf16.msra.mxu1 %v11648_v1 }
  0x3c   : > { %10043 = vmatprep.subr.bf16.mxu1 %v11641_v0 }
  0x3d   : > { %10010 = vmatpush3.bf16.msra.mxu0 %v11648_v1 }
  0x3e   : > { %9908 = vmatmul.mubr.msk.bf16.gmra.mrb[20].mxu1 %vm393_vm0, %v11254_v22  ;;  %10079 = vmatprep.subr.bf16.mxu0 %v11641_v0  ;;  %v11323_v22 = vld [vmem:[%s11659_s25 + $0x290] sm:$0xff]  }
  0x3f   : > { %9911 = vmatprep.mubr.msk.bf16.mxu1 %vm393_vm0, %v11257_v23  ;;  %v11583_v23 = vld [vmem:[%s14104_s2] sm:$0xff]  }
  0x40   : > { %9944 = vmatmul.mubr.msk.bf16.gmra.mrb[20].mxu0 %vm393_vm0, %v11268_v28  ;;  %v11327_v28 = vld [vmem:[%s11659_s25 + $0x2a0] sm:$0xff]  }
  0x41   : > { %9947 = vmatprep.mubr.msk.bf16.mxu0 %vm393_vm0, %v11271_v29  ;;  %v11876_v29 = vld [vmem:[%s14104_s2 + $0x28] sm:$0xff]  }
  0x46   : > { %9912 = vmatmul.mubr.msk.bf16.gmra.mrb[24].mxu1 %vm393_vm0, %v11258_v26  ;;  %v11324_v26 = vld [vmem:[%s11659_s25 + $0x298] sm:$0xff]  }
  0x47   : > { %9915 = vmatprep.mubr.msk.bf16.mxu1 %vm393_vm0, %v11261_v27  ;;  %v11325_v27 = vld [vmem:[%s11659_s25 + $0x310] sm:$0xff]  }
  0x48   : > { %9948 = vmatmul.mubr.msk.bf16.gmra.mrb[24].mxu0 %vm393_vm0, %v11272_v32  ;;  %v11329_v32 = vld [vmem:[%s11659_s25 + $0x320] sm:$0xff]  }
  0x49   : > { %9951 = vmatprep.mubr.msk.bf16.mxu0 %vm393_vm0, %v11275_v33  ;;  %v11331_v33 = vld [vmem:[%s11659_s25 + $0x2b0] sm:$0xff]  }
  0x4e   : > { %9916 = vmatmul.mubr.msk.bf16.gmra.mrb[28].mxu1 %vm393_vm0, %v11262_v30  ;;  %v11326_v30 = vld [vmem:[%s11659_s25 + $0x318] sm:$0xff]  }
  0x4f   : > { %9919 = vmatprep.mubr.msk.bf16.mxu1 %vm393_vm0, %v11265_v31  ;;  %v11328_v31 = vld [vmem:[%s11659_s25 + $0x2a8] sm:$0xff]  }
  0x50   : > { %9952 = vmatmul.mubr.msk.bf16.gmra.mrb[28].mxu0 %vm393_vm0, %v11276_v36  ;;  %v11898_v36 = vld [vmem:[%s14104_s2 + $0x10] sm:$0xff]  }
  0x51   : > { %9955 = vmatprep.mubr.msk.bf16.mxu0 %vm393_vm0, %v11279_v37  ;;  %v11333_v37 = vld [vmem:[%s11659_s25 + $0x330] sm:$0xff]  }
  0x56   : > { %9920 = vmatmul.mubr.msk.bf16.gmra.mrb[32].mxu1 %vm393_vm0, %v11266_v34  ;;  %v11330_v34 = vld [vmem:[%s11659_s25 + $0x328] sm:$0xff]  }
  0x57   : > { %9923 = vmatprep.mubr.msk.bf16.mxu1 %vm393_vm0, %v11269_v35  ;;  %v11332_v35 = vld [vmem:[%s11659_s25 + $0x2b8] sm:$0xff]  }
  0x58   : > { %9956 = vmatmul.mubr.msk.bf16.gmra.mrb[32].mxu0 %vm393_vm0, %v11280_v40  ;;  %v11336_v40 = vld [vmem:[%s11659_s25 + $0x2c8] sm:$0xff]  }
  0x59   : > { %9959 = vmatprep.mubr.msk.bf16.mxu0 %vm393_vm0, %v11283_v41  ;;  %v11337_v41 = vld [vmem:[%s11659_s25 + $0x340] sm:$0xff]  }
  0x5e   : > { %9924 = vmatmul.mubr.msk.bf16.gmra.mrb[36].mxu1 %vm393_vm0, %v11270_v38  ;;  %v11335_v38 = vld [vmem:[%s11659_s25 + $0x2c0] sm:$0xff]  }
  0x5f   : > { %9927 = vmatprep.mubr.msk.bf16.mxu1 %vm393_vm0, %v11273_v39  ;;  %v11334_v39 = vld [vmem:[%s11659_s25 + $0x338] sm:$0xff]  }
  0x60   : > { %9960 = vmatmul.mubr.msk.bf16.gmra.mrb[36].mxu0 %vm393_vm0, %v11284_v44  ;;  %v11340_v44 = vld [vmem:[%s11659_s25 + $0x2d8] sm:$0xff]  }
  0x61   : > { %9963 = vmatprep.mubr.msk.bf16.mxu0 %vm393_vm0, %v11287_v45  ;;  %v11341_v45 = vld [vmem:[%s11659_s25 + $0x350] sm:$0xff]  }
  0x66   : > { %9928 = vmatmul.mubr.msk.bf16.gmra.mrb[40].mxu1 %vm393_vm0, %v11274_v42  ;;  %v11339_v42 = vld [vmem:[%s11659_s25 + $0x2d0] sm:$0xff]  }
  0x67   : > { %9931 = vmatprep.mubr.msk.bf16.mxu1 %vm393_vm0, %v11277_v43  ;;  %v11338_v43 = vld [vmem:[%s11659_s25 + $0x348] sm:$0xff]  }
  0x68   : > { %9964 = vmatmul.mubr.msk.bf16.gmra.mrb[40].mxu0 %vm393_vm0, %v11288_v48  ;;  %v11344_v48 = vld [vmem:[%s11659_s25 + $0x2e8] sm:$0xff]  }
  0x69   : > { %9967 = vmatprep.mubr.msk.bf16.mxu0 %vm393_vm0, %v11291_v49  ;;  %v11345_v49 = vld [vmem:[%s11659_s25 + $0x360] sm:$0xff]  }
  0x6e   : > { %9932 = vmatmul.mubr.msk.bf16.gmra.mrb[44].mxu1 %vm393_vm0, %v11278_v46  ;;  %v11343_v46 = vld [vmem:[%s11659_s25 + $0x2e0] sm:$0xff]  }
  0x6f   : > { %9975 = vmatprep.mubr.msk.bf16.mxu1 %vm393_vm0, %v11281_v47  ;;  %v11342_v47 = vld [vmem:[%s11659_s25 + $0x358] sm:$0xff]  }
  0x70   : > { %9968 = vmatmul.mubr.msk.bf16.gmra.mrb[44].mxu0 %vm393_vm0, %v11292_v52 }
  0x71   : > { %10011 = vmatprep.mubr.msk.bf16.mxu0 %vm393_vm0, %v11295_v53 }
  0x76   : > { %9976 = vmatmul.mubr.msk.bf16.vlgmr.msra.gmra.mrb[48].mxu1 %vm393_vm0, %v11282_v50  ;;  %v11347_v50 = vld [vmem:[%s11659_s25 + $0x2f0] sm:$0xff]  }
  0x77   : > { %9979 = vmatprep.mubr.msk.bf16.mxu1 %vm393_vm0, %v11285_v51  ;;  %10044 = vmatpush3.bf16.msra.mxu1 %v11641_v0  ;;  %v11932_v51 = vld [vmem:[%s14105_s3] ss:$0 sm:$0xff] }
  0x78   : > { %10045 = vmatprep.subr.bf16.mxu1 %v11648_v1  ;;  %10012 = vmatmul.mubr.msk.bf16.vlgmr.msra.gmra.mrb[48].mxu0 %vm393_vm0, %v11296_v56  ;;  %v11348_v56 = vld [vmem:[%s11659_s25 + $0x2f8] sm:$0xff]  }
  0x79   : > { %10015 = vmatprep.mubr.msk.bf16.mxu0 %vm393_vm0, %v11299_v57  ;;  %10080 = vmatpush3.bf16.msra.mxu0 %v11641_v0 }
  0x7a   : > { %10081 = vmatprep.subr.bf16.mxu0 %v11648_v1 }
  0x7b   : > { %10046 = vmatpush3.bf16.msra.mxu1 %v11648_v1 }
  0x7c   : > { %10115 = vmatprep.subr.bf16.mxu1 %v11641_v0  ;;  %v11304_v0 = vld [vmem:[%s11659_s25 + $0x228] sm:$0xff]  }
  0x7d   : > { %10082 = vmatpush3.bf16.msra.mxu0 %v11648_v1  ;;  %v11815_v1 = vld [vmem:[%s14104_s2 + $0x20] sm:$0xff]  }
  0x7e   : > { %9980 = vmatmul.mubr.msk.bf16.gmra.mrb[52].mxu1 %vm393_vm0, %v11286_v54  ;;  %10151 = vmatprep.subr.bf16.mxu0 %v11815_v1 }
  0x7f   : > { %9983 = vmatprep.mubr.msk.bf16.mxu1 %vm393_vm0, %v11289_v55  ;;  %v11346_v55 = vld [vmem:[%s11659_s25 + $0x368] sm:$0xff]  }
  0x80   : > { %10016 = vmatmul.mubr.msk.bf16.gmra.mrb[52].mxu0 %vm393_vm0, %v11300_v60  ;;  %v11353_v60 = vld [vmem:[%s11659_s25 + $0x380] sm:$0xff]  }
  0x81   : > { %10019 = vmatprep.mubr.msk.bf16.mxu0 %vm393_vm0, %v11303_v61 }
  0x86   : > { %9984 = vmatmul.mubr.msk.bf16.gmra.mrb[56].mxu1 %vm393_vm0, %v11290_v58 }
  0x87   : > { %9987 = vmatprep.mubr.msk.bf16.mxu1 %vm393_vm0, %v11293_v59  ;;  %v11349_v59 = vld [vmem:[%s11659_s25 + $0x370] sm:$0xff]  }
  0x88   : > { %10020 = vmatmul.mubr.msk.bf16.gmra.mrb[56].mxu0 %vm393_vm0, %v11304_v0 }
  0x89   : > { %10023 = vmatprep.mubr.msk.bf16.mxu0 %vm393_vm0, %v11307_v2 }
  0x8e   : > { %9988 = vmatmul.mubr.msk.bf16.gmra.mrb[60].mxu1 %vm393_vm0, %v11294_v62 }
  0x8f   : > { %9991 = vmatprep.mubr.msk.bf16.mxu1 %vm393_vm0, %v11297_v63 }
  0x90   : > { %10024 = vmatmul.mubr.msk.bf16.gmra.mrb[60].mxu0 %vm393_vm0, %v11308_v4 }
  0x91   : > { %10027 = vmatprep.mubr.msk.bf16.mxu0 %vm393_vm0, %v11311_v6 }
  0x96   : > { %9992 = vmatmul.mubr.msk.bf16.gmra.mrb[64].mxu1 %vm393_vm0, %v11298_v3 }
  0x97   : > { %9995 = vmatprep.mubr.msk.bf16.mxu1 %vm393_vm0, %v11301_v5 }
  0x98   : > { %10028 = vmatmul.mubr.msk.bf16.gmra.mrb[64].mxu0 %vm393_vm0, %v11312_v8 }
  0x99   : > { %10031 = vmatprep.mubr.msk.bf16.mxu0 %vm393_vm0, %v11313_v10 }
  0x9e   : > { %9996 = vmatmul.mubr.msk.bf16.gmra.mrb[68].mxu1 %vm393_vm0, %v11302_v7 }
  0x9f   : > { %9999 = vmatprep.mubr.msk.bf16.mxu1 %vm393_vm0, %v11305_v9 }
  0xa0   : > { %10032 = vmatmul.mubr.msk.bf16.gmra.mrb[68].mxu0 %vm393_vm0, %v11314_v12  ;;  %v11354_v12 = vld [vmem:[%s11659_s25 + $0x388] sm:$0xff]  }
  0xa1   : > { %10035 = vmatprep.mubr.msk.bf16.mxu0 %vm393_vm0, %v11315_v14 }
  0xa6   : > { %10000 = vmatmul.mubr.msk.bf16.gmra.mrb[72].mxu1 %vm393_vm0, %v11306_v11  ;;  %v11350_v11 = vld [vmem:[%s11659_s25 + $0x378] sm:$0xff]  }
  0xa7   : > { %10003 = vmatprep.mubr.msk.bf16.mxu1 %vm393_vm0, %v11309_v13 }
  0xa8   : > { %10036 = vmatmul.mubr.msk.bf16.gmra.mrb[72].mxu0 %vm393_vm0, %v11316_v16 }
  0xa9   : > { %10039 = vmatprep.mubr.msk.bf16.mxu0 %vm393_vm0, %v11317_v17  ;;  %v11355_v17 = vld [vmem:[%s11659_s25 + $0x390] sm:$0xff]  }
  0xae   : > { %10004 = vmatmul.mubr.msk.bf16.gmra.mrb[76].mxu1 %vm393_vm0, %v11310_v15 }
  0xaf   : > { %10047 = vmatprep.mubr.msk.bf16.mxu1 %vm393_vm0, %v11319_v18 }
  0xb0   : > { %10040 = vmatmul.mubr.msk.bf16.gmra.mrb[76].mxu0 %vm393_vm0, %v11318_v19 }
  0xb1   : > { %10083 = vmatprep.mubr.msk.bf16.mxu0 %vm393_vm0, %v11321_v21 }
  0xb6   : > { %10048 = vmatmul.mubr.msk.bf16.vlgmr.msra.gmra.mrb[80].mxu1 %vm393_vm0, %v11320_v20 }
  0xb7   : > { %10116 = vmatpush3.bf16.msra.mxu1 %v11583_v23  ;;  %10051 = vmatprep.mubr.msk.bf16.mxu1 %vm393_vm0, %v11323_v22 }
  0xb8   : > { %10117 = vmatprep.subr.bf16.mxu1 %v11584_v24  ;;  %10084 = vmatmul.mubr.msk.bf16.vlgmr.msra.gmra.mrb[80].mxu0 %vm393_vm0, %v11322_v25 }
  0xb9   : > { %10087 = vmatprep.mubr.msk.bf16.mxu0 %vm393_vm0, %v11325_v27  ;;  %10152 = vmatpush3.bf16.msra.mxu0 %v11815_v1 }
  0xba   : > { %10153 = vmatprep.subr.bf16.mxu0 %v11876_v29 }
  0xbb   : > { %10118 = vmatpush3.bf16.msra.mxu1 %v11584_v24 }
  0xbc   : > { %10295 = vmatprep.subr.bf16.mxu1 %v11815_v1 }
  0xbd   : > { %10154 = vmatpush3.bf16.msra.mxu0 %v11876_v29 }
  0xbe   : > { %10052 = vmatmul.mubr.msk.bf16.gmra.mrb[84].mxu1 %vm393_vm0, %v11324_v26  ;;  %10187 = vmatprep.subr.bf16.mxu0 %v11898_v36 }
  0xbf   : > { %10055 = vmatprep.mubr.msk.bf16.mxu1 %vm393_vm0, %v11327_v28 }
  0xc0   : > { %10088 = vmatmul.mubr.msk.bf16.gmra.mrb[84].mxu0 %vm393_vm0, %v11326_v30 }
  0xc1   : > { %10091 = vmatprep.mubr.msk.bf16.mxu0 %vm393_vm0, %v11329_v32 }
  0xc6   : > { %10056 = vmatmul.mubr.msk.bf16.gmra.mrb[88].mxu1 %vm393_vm0, %v11328_v31 }
  0xc7   : > { %10059 = vmatprep.mubr.msk.bf16.mxu1 %vm393_vm0, %v11331_v33 }
  0xc8   : > { %10092 = vmatmul.mubr.msk.bf16.gmra.mrb[88].mxu0 %vm393_vm0, %v11330_v34 }
  0xc9   : > { %10095 = vmatprep.mubr.msk.bf16.mxu0 %vm393_vm0, %v11333_v37 }
  0xce   : > { %10060 = vmatmul.mubr.msk.bf16.gmra.mrb[92].mxu1 %vm393_vm0, %v11332_v35 }
  0xcf   : > { %10063 = vmatprep.mubr.msk.bf16.mxu1 %vm393_vm0, %v11335_v38 }
  0xd0   : > { %10096 = vmatmul.mubr.msk.bf16.gmra.mrb[92].mxu0 %vm393_vm0, %v11334_v39 }
  0xd1   : > { %10099 = vmatprep.mubr.msk.bf16.mxu0 %vm393_vm0, %v11337_v41 }
  0xd6   : > { %10064 = vmatmul.mubr.msk.bf16.gmra.mrb[96].mxu1 %vm393_vm0, %v11336_v40 }
  0xd7   : > { %10067 = vmatprep.mubr.msk.bf16.mxu1 %vm393_vm0, %v11339_v42 }
  0xd8   : > { %10100 = vmatmul.mubr.msk.bf16.gmra.mrb[96].mxu0 %vm393_vm0, %v11338_v43 }
  0xd9   : > { %10103 = vmatprep.mubr.msk.bf16.mxu0 %vm393_vm0, %v11341_v45 }
  0xde   : > { %10068 = vmatmul.mubr.msk.bf16.gmra.mrb[100].mxu1 %vm393_vm0, %v11340_v44 }
  0xdf   : > { %10071 = vmatprep.mubr.msk.bf16.mxu1 %vm393_vm0, %v11343_v46 }
  0xe0   : > { %10104 = vmatmul.mubr.msk.bf16.gmra.mrb[100].mxu0 %vm393_vm0, %v11342_v47 }
  0xe1   : > { %10107 = vmatprep.mubr.msk.bf16.mxu0 %vm393_vm0, %v11345_v49 }
  0xe6   : > { %10072 = vmatmul.mubr.msk.bf16.gmra.mrb[104].mxu1 %vm393_vm0, %v11344_v48  ;;  %v11357_v48 = vld [vmem:[%s11659_s25 + $0x3a0] sm:$0xff]  }
  0xe7   : > { %10075 = vmatprep.mubr.msk.bf16.mxu1 %vm393_vm0, %v11347_v50 }
  0xe8   : > { %10108 = vmatmul.mubr.msk.bf16.gmra.mrb[104].mxu0 %vm393_vm0, %v11346_v55 }
  0xe9   : > { %v9885_v52 = vpop.f32.mrb[0].mxu1  ;;  %10111 = vmatprep.mubr.msk.bf16.mxu0 %vm393_vm0, %v11349_v59 }
  0xea   : > { %v549_v53 = vadd.f32 %v9885_v52, %v11932_v51  ;;  %v540_v54 = vpop.f32.mrb[1].mxu1 }
  0xeb   : > { %v541_v57 = vadd.f32 %v11932_v51, %v540_v54  ;;  %v9886_v58 = vpop.f32.mrb[2].mxu1  ;;  %v9869_v8 = vpop.f32.mrb[0].mxu0 }
  0xec   : > { %v552_v61 = vadd.f32 %v9886_v58, %v11932_v51  ;;  %v543_v62 = vpop.f32.mrb[3].mxu1  ;;  %v621_v0 = vmax.f32 %v549_v53, 0.0  ;;  %v485_v13 = vadd.f32 %v9869_v8, %v11932_v51  ;;  %v476_v14 = vpop.f32.mrb[1].mxu0 }
  0xed   : > { %v544_v63 = vadd.f32 %v11932_v51, %v543_v62  ;;  %v619_v3 = vmax.f32 %v541_v57, 0.0  ;;  %v477_v18 = vadd.f32 %v11932_v51, %v476_v14  ;;  %v9870_v19 = vpop.f32.mrb[2].mxu0 }
  0xee   : > { %v622_v2 = vmax.f32 %v552_v61, 0.0  ;;  %10076 = vmatmul.mubr.msk.bf16.gmra.mrb[108].mxu1 %vm393_vm0, %v11348_v56  ;;  %v605_v22 = vmax.f32 %v485_v13, 0.0  ;;  %v488_v23 = vadd.f32 %v9870_v19, %v11932_v51  ;;  %v479_v24 = vpop.f32.mrb[3].mxu0 }
  0xef   : > { %v620_v4 = vmax.f32 %v544_v63, 0.0  ;;  %10119 = vmatprep.mubr.msk.bf16.mxu1 %vm393_vm0, %v11353_v60  ;;  %v603_v26 = vmax.f32 %v477_v18, 0.0  ;;  %v480_v27 = vadd.f32 %v11932_v51, %v479_v24 }
  0xf0   : > { %v11948_v5 = vpack.c.bf16 %v622_v2, %v621_v0  ;;  %10112 = vmatmul.mubr.msk.bf16.gmra.mrb[108].mxu0 %vm393_vm0, %v11350_v11  ;;  %v606_v31 = vmax.f32 %v488_v23, 0.0 }
  0xf1   : > { %v11950_v6 = vpack.c.bf16 %v620_v4, %v619_v3  ;;  %v9889_v7 = vpop.f32.mrb[4].mxu1  ;;  %v604_v34 = vmax.f32 %v480_v27, 0.0 }
  0xf2   : > { %v565_v9 = vadd.f32 %v9889_v7, %v11932_v51  ;;  %v556_v10 = vpop.f32.mrb[5].mxu1  ;;  %v11970_v37 = vpack.c.bf16 %v606_v31, %v605_v22 }
  0xf3   : > { %v557_v15 = vadd.f32 %v11932_v51, %v556_v10  ;;  %v9890_v16 = vpop.f32.mrb[6].mxu1  ;;  %v11974_v40 = vpack.c.bf16 %v604_v34, %v603_v26  ;;  %v9873_v41 = vpop.f32.mrb[4].mxu0 }
  0xf4   : > { %v568_v20 = vadd.f32 %v9890_v16, %v11932_v51  ;;  %v559_v21 = vpop.f32.mrb[7].mxu1  ;;  %v625_v28 = vmax.f32 %v565_v9, 0.0  ;;  %v501_v44 = vadd.f32 %v9873_v41, %v11932_v51  ;;  %v492_v45 = vpop.f32.mrb[5].mxu0 }
  0xf5   : > { %v560_v25 = vadd.f32 %v11932_v51, %v559_v21  ;;  %v623_v32 = vmax.f32 %v557_v15, 0.0  ;;  %v493_v49 = vadd.f32 %v11932_v51, %v492_v45  ;;  %v9874_v50 = vpop.f32.mrb[6].mxu0 }
  0xf6   : > { %v626_v30 = vmax.f32 %v568_v20, 0.0  ;;  %10120 = vmatmul.mubr.msk.bf16.vlgmr.msra.gmra.mrb[112].mxu1 %vm393_vm0, %v11354_v12  ;;  %v609_v54 = vmax.f32 %v501_v44, 0.0  ;;  %v504_v55 = vadd.f32 %v9874_v50, %v11932_v51  ;;  %v495_v56 = vpop.f32.mrb[7].mxu0  ;;  %v11358_v12 = vld [vmem:[%s11659_s25 + $0x3a8] sm:$0xff]  }
  0xf7   : > { %v624_v33 = vmax.f32 %v560_v25, 0.0  ;;  %10296 = vmatpush3.bf16.msra.mxu1 %v11815_v1  ;;  %10123 = vmatprep.mubr.msk.bf16.mxu1 %vm393_vm0, %v11355_v17  ;;  %v11356_v1 = vld [vmem:[%s11659_s25 + $0x398] sm:$0xff]   ;;  %v607_v58 = vmax.f32 %v493_v49, 0.0  ;;  %v496_v59 = vadd.f32 %v11932_v51, %v495_v56  ;;  %v11359_v17 = vld [vmem:[%s11659_s25 + $0x3b0] sm:$0xff]  }
  0xf8   : > { %v11967_v35 = vpack.c.bf16 %v626_v30, %v625_v28  ;;  %10297 = vmatprep.subr.bf16.mxu1 %v11876_v29  ;;  %v610_v61 = vmax.f32 %v504_v55, 0.0 }
  0xf9   : > { %v11972_v38 = vpack.c.bf16 %v624_v33, %v623_v32  ;;  %v9893_v39 = vpop.f32.mrb[8].mxu1  ;;  %v608_v0 = vmax.f32 %v496_v59, 0.0 }
  0xfa   : > { %v581_v42 = vadd.f32 %v9893_v39, %v11932_v51  ;;  %v572_v43 = vpop.f32.mrb[9].mxu1  ;;  %v11992_v3 = vpack.c.bf16 %v610_v61, %v609_v54 }
  0xfb   : > { %v573_v46 = vadd.f32 %v11932_v51, %v572_v43  ;;  %v9894_v47 = vpop.f32.mrb[10].mxu1  ;;  %10298 = vmatpush3.bf16.msra.mxu1 %v11876_v29  ;;  %v11996_v8 = vpack.c.bf16 %v608_v0, %v607_v58  ;;  %v9877_v9 = vpop.f32.mrb[8].mxu0 }
  0xfc   : > { %v584_v52 = vadd.f32 %v9894_v47, %v11932_v51  ;;  %v575_v53 = vpop.f32.mrb[11].mxu1  ;;  %10331 = vmatprep.subr.bf16.mxu1 %v11898_v36  ;;  %v629_v60 = vmax.f32 %v581_v42, 0.0  ;;  %v517_v13 = vadd.f32 %v9877_v9, %v11932_v51  ;;  %v508_v14 = vpop.f32.mrb[9].mxu0  ;;  %v11360_v47 = vld [vmem:[%s11659_s25 + $0x3b8] sm:$0xff]  }
  0xfd   : > { %v576_v57 = vadd.f32 %v11932_v51, %v575_v53  ;;  %v627_v62 = vmax.f32 %v573_v46, 0.0  ;;  %v509_v18 = vadd.f32 %v11932_v51, %v508_v14  ;;  %v9878_v19 = vpop.f32.mrb[10].mxu0  ;;  %v11361_v53 = vld [vmem:[%s11659_s25 + $0x3c0] sm:$0xff]  }
  0xfe   : > { %v630_v29 = vmax.f32 %v584_v52, 0.0  ;;  %10124 = vmatmul.mubr.msk.bf16.gmra.mrb[116].mxu1 %vm393_vm0, %v11356_v1  ;;  %v613_v22 = vmax.f32 %v517_v13, 0.0  ;;  %v520_v23 = vadd.f32 %v9878_v19, %v11932_v51  ;;  %v511_v24 = vpop.f32.mrb[11].mxu0 }
  0xff   : > { %v628_v63 = vmax.f32 %v576_v57, 0.0  ;;  %10127 = vmatprep.mubr.msk.bf16.mxu1 %vm393_vm0, %v11357_v48  ;;  %v611_v26 = vmax.f32 %v509_v18, 0.0  ;;  %v512_v27 = vadd.f32 %v11932_v51, %v511_v24 }
 0x100   : > { %v11990_v2 = vpack.c.bf16 %v630_v29, %v629_v60  ;;  %v614_v31 = vmax.f32 %v520_v23, 0.0 }
 0x101   : > { %v11994_v4 = vpack.c.bf16 %v628_v63, %v627_v62  ;;  %v9897_v7 = vpop.f32.mrb[12].mxu1  ;;  %v612_v34 = vmax.f32 %v512_v27, 0.0 }
 0x102   : > { %v597_v10 = vadd.f32 %v9897_v7, %v11932_v51  ;;  %v588_v11 = vpop.f32.mrb[13].mxu1  ;;  %v12012_v41 = vpack.c.bf16 %v614_v31, %v613_v22 }
 0x103   : > { %v589_v15 = vadd.f32 %v11932_v51, %v588_v11  ;;  %v9898_v16 = vpop.f32.mrb[14].mxu1  ;;  %v12016_v1 = vpack.c.bf16 %v612_v34, %v611_v26  ;;  %v9881_v44 = vpop.f32.mrb[12].mxu0  ;;  %v11363_v26 = vld [vmem:[%s11659_s25 + $0x3d0] sm:$0xff]  }
 0x104   : > { %v600_v20 = vadd.f32 %v9898_v16, %v11932_v51  ;;  %v591_v21 = vpop.f32.mrb[15].mxu1  ;;  %v633_v28 = vmax.f32 %v597_v10, 0.0  ;;  %v533_v48 = vadd.f32 %v9881_v44, %v11932_v51  ;;  %v524_v49 = vpop.f32.mrb[13].mxu0 }
 0x105   : > { %v592_v25 = vadd.f32 %v11932_v51, %v591_v21  ;;  %v631_v32 = vmax.f32 %v589_v15, 0.0  ;;  %v525_v54 = vadd.f32 %v11932_v51, %v524_v49  ;;  %v9882_v55 = vpop.f32.mrb[14].mxu0  ;;  %v12039_v21 = vld [vmem:[%s14104_s2 + $0x18] sm:$0xff]   ;;  %v12057_v49 = vld [vmem:[%s14104_s2 + $0x30] sm:$0xff]  }
 0x106   : > { %v634_v30 = vmax.f32 %v600_v20, 0.0  ;;  %10128 = vmatmul.mubr.msk.bf16.gmra.mrb[120].mxu1 %vm393_vm0, %v11358_v12  ;;  %v617_v58 = vmax.f32 %v533_v48, 0.0  ;;  %v536_v59 = vadd.f32 %v9882_v55, %v11932_v51  ;;  %v527_v60 = vpop.f32.mrb[15].mxu0  ;;  %v11362_v20 = vld [vmem:[%s11659_s25 + $0x3c8] sm:$0xff]  }
 0x107   : > { %v632_v33 = vmax.f32 %v592_v25, 0.0  ;;  %10131 = vmatprep.mubr.msk.bf16.mxu1 %vm393_vm0, %v11359_v17  ;;  %v615_v61 = vmax.f32 %v525_v54, 0.0  ;;  %v528_v62 = vadd.f32 %v11932_v51, %v527_v60 }
 0x108   : > { %v12010_v39 = vpack.c.bf16 %v634_v30, %v633_v28  ;;  %v618_v7 = vmax.f32 %v536_v59, 0.0 }
 0x109   : > { %v12014_v42 = vpack.c.bf16 %v632_v33, %v631_v32  ;;  %v9905_v43 = vpop.f32.mrb[16].mxu1  ;;  %v616_v11 = vmax.f32 %v528_v62, 0.0 }
 0x10a   : > { %v838_v45 = vadd.f32 %v9905_v43, %v11932_v51  ;;  %v829_v46 = vpop.f32.mrb[17].mxu1  ;;  %v12030_v13 = vpack.c.bf16 %v618_v7, %v617_v58 }
 0x10b   : > { %v830_v50 = vadd.f32 %v11932_v51, %v829_v46  ;;  %v9906_v52 = vpop.f32.mrb[18].mxu1  ;;  %v12032_v16 = vpack.c.bf16 %v616_v11, %v615_v61  ;;  %v9941_v17 = vpop.f32.mrb[16].mxu0  ;;  %v11364_v61 = vld [vmem:[%s11659_s25 + $0x3d8] sm:$0xff]  }
 0x10c   : > { %v841_v56 = vadd.f32 %v9906_v52, %v11932_v51  ;;  %v832_v57 = vpop.f32.mrb[19].mxu1  ;;  %v958_v63 = vmax.f32 %v838_v45, 0.0  ;;  %v1191_v22 = vadd.f32 %v9941_v17, %v11932_v51  ;;  %v1182_v23 = vpop.f32.mrb[17].mxu0 }
 0x10d   : > { %v833_v29 = vadd.f32 %v11932_v51, %v832_v57  ;;  %v956_v9 = vmax.f32 %v830_v50, 0.0  ;;  %v1183_v27 = vadd.f32 %v11932_v51, %v1182_v23  ;;  %v9942_v28 = vpop.f32.mrb[18].mxu0 }
 0x10e   : > { %v959_v0 = vmax.f32 %v841_v56, 0.0  ;;  %10132 = vmatmul.mubr.msk.bf16.gmra.mrb[124].mxu1 %vm393_vm0, %v11360_v47  ;;  %v1311_v32 = vmax.f32 %v1191_v22, 0.0  ;;  %v1194_v33 = vadd.f32 %v9942_v28, %v11932_v51  ;;  %v1185_v34 = vpop.f32.mrb[19].mxu0 }
 0x10f   : > { %v957_v10 = vmax.f32 %v833_v29, 0.0  ;;  %10135 = vmatprep.mubr.msk.bf16.mxu1 %vm393_vm0, %v11361_v53  ;;  %v1309_v44 = vmax.f32 %v1183_v27, 0.0  ;;  %v1186_v45 = vadd.f32 %v11932_v51, %v1185_v34 }
 0x110   : > { %v3131_v12 = vpack.c.bf16 %v959_v0, %v958_v63  ;;  %v1312_v48 = vmax.f32 %v1194_v33, 0.0 }
 0x111   : > { %v3130_v14 = vpack.c.bf16 %v957_v10, %v956_v9  ;;  %v9909_v15 = vpop.f32.mrb[20].mxu1  ;;  %v1310_v53 = vmax.f32 %v1186_v45, 0.0  ;;  %v11365_v9 = vld [vmem:[%s11659_s25 + $0x3e0] sm:$0xff]  }
 0x112   : > { %v854_v18 = vadd.f32 %v9909_v15, %v11932_v51  ;;  %v845_v19 = vpop.f32.mrb[21].mxu1  ;;  %v12060_v55 = vpack.c.bf16 %v1312_v48, %v1311_v32 }
 0x113   : > { %v846_v24 = vadd.f32 %v11932_v51, %v845_v19  ;;  %v9910_v25 = vpop.f32.mrb[22].mxu1  ;;  %10155 = vmatprep.mubr.msk.bf16.mxu0 %vm393_vm0, %v3130_v14  ;;  %v12063_v58 = vpack.c.bf16 %v1310_v53, %v1309_v44  ;;  %v9945_v59 = vpop.f32.mrb[20].mxu0  ;;  %v11367_v53 = vld [vmem:[%s11659_s25 + $0x3f0] sm:$0xff]  }
 0x114   : > { %v857_v30 = vadd.f32 %v9910_v25, %v11932_v51  ;;  %v848_v31 = vpop.f32.mrb[23].mxu1  ;;  %10156 = vmatmul.mubr.msk.bf16.vlgmr.msra.gmra.mrb[112].mxu0 %vm393_vm0, %v3131_v12  ;;  %v962_v46 = vmax.f32 %v854_v18, 0.0  ;;  %v1207_v62 = vadd.f32 %v9945_v59, %v11932_v51  ;;  %v1198_v63 = vpop.f32.mrb[21].mxu0 }
 0x115   : > { %v849_v43 = vadd.f32 %v11932_v51, %v848_v31  ;;  %10188 = vmatpush3.bf16.msra.mxu0 %v11898_v36  ;;  %v960_v50 = vmax.f32 %v846_v24, 0.0  ;;  %v1199_v10 = vadd.f32 %v11932_v51, %v1198_v63  ;;  %v9946_v11 = vpop.f32.mrb[22].mxu0 }
 0x116   : > { %v963_v47 = vmax.f32 %v857_v30, 0.0  ;;  %10136 = vmatmul.mubr.msk.bf16.gmra.mrb[128].mxu1 %vm393_vm0, %v11362_v20  ;;  %10189 = vmatprep.subr.bf16.mxu0 %v12039_v21  ;;  %v1315_v15 = vmax.f32 %v1207_v62, 0.0  ;;  %v1210_v17 = vadd.f32 %v9946_v11, %v11932_v51  ;;  %v1201_v18 = vpop.f32.mrb[23].mxu0 }
 0x117   : > { %v961_v52 = vmax.f32 %v849_v43, 0.0  ;;  %10139 = vmatprep.mubr.msk.bf16.mxu1 %vm393_vm0, %v11363_v26  ;;  %v1313_v20 = vmax.f32 %v1199_v10, 0.0  ;;  %v1202_v22 = vadd.f32 %v11932_v51, %v1201_v18 }
 0x118   : > { %v3133_v54 = vpack.c.bf16 %v963_v47, %v962_v46  ;;  %v1316_v25 = vmax.f32 %v1210_v17, 0.0  ;;  %v11366_v46 = vld [vmem:[%s11659_s25 + $0x3e8] sm:$0xff]  }
 0x119   : > { %v3132_v56 = vpack.c.bf16 %v961_v52, %v960_v50  ;;  %v9913_v57 = vpop.f32.mrb[24].mxu1  ;;  %10190 = vmatpush3.bf16.msra.mxu0 %v12039_v21  ;;  %v1314_v28 = vmax.f32 %v1202_v22, 0.0 }
 0x11a   : > { %v870_v60 = vadd.f32 %v9913_v57, %v11932_v51  ;;  %v861_v29 = vpop.f32.mrb[25].mxu1  ;;  %10223 = vmatprep.subr.bf16.mxu0 %v12057_v49  ;;  %v12080_v31 = vpack.c.bf16 %v1316_v25, %v1315_v15  ;;  %v11368_v25 = vld [vmem:[%s11659_s25 + $0x3f8] sm:$0xff]  }
 0x11b   : > { %v862_v0 = vadd.f32 %v11932_v51, %v861_v29  ;;  %v9914_v7 = vpop.f32.mrb[26].mxu1  ;;  %10159 = vmatprep.mubr.msk.bf16.mxu0 %vm393_vm0, %v3132_v56  ;;  %v12082_v34 = vpack.c.bf16 %v1314_v28, %v1313_v20  ;;  %v9949_v43 = vpop.f32.mrb[24].mxu0 }
 0x11c   : > { %v873_v12 = vadd.f32 %v9914_v7, %v11932_v51  ;;  %v864_v14 = vpop.f32.mrb[27].mxu1  ;;  %10160 = vmatmul.mubr.msk.bf16.gmra.mrb[116].mxu0 %vm393_vm0, %v3133_v54  ;;  %v966_v23 = vmax.f32 %v870_v60, 0.0  ;;  %v1223_v47 = vadd.f32 %v9949_v43, %v11932_v51  ;;  %v1214_v48 = vpop.f32.mrb[25].mxu0 }
 0x11d   : > { %v865_v19 = vadd.f32 %v11932_v51, %v864_v14  ;;  %v964_v26 = vmax.f32 %v862_v0, 0.0  ;;  %v1215_v54 = vadd.f32 %v11932_v51, %v1214_v48  ;;  %v9950_v56 = vpop.f32.mrb[26].mxu0 }
 0x11e   : > { %v967_v24 = vmax.f32 %v873_v12, 0.0  ;;  %10140 = vmatmul.mubr.msk.bf16.gmra.mrb[132].mxu1 %vm393_vm0, %v11364_v61  ;;  %v1319_v60 = vmax.f32 %v1223_v47, 0.0  ;;  %v1226_v29 = vadd.f32 %v9950_v56, %v11932_v51  ;;  %v1217_v61 = vpop.f32.mrb[27].mxu0 }
 0x11f   : > { %v965_v27 = vmax.f32 %v865_v19, 0.0  ;;  %10143 = vmatprep.mubr.msk.bf16.mxu1 %vm393_vm0, %v11365_v9  ;;  %v1317_v63 = vmax.f32 %v1215_v54, 0.0  ;;  %v1218_v0 = vadd.f32 %v11932_v51, %v1217_v61 }
 0x120   : > { %v3135_v30 = vpack.c.bf16 %v967_v24, %v966_v23  ;;  %v1320_v10 = vmax.f32 %v1226_v29, 0.0 }
 0x121   : > { %v3134_v32 = vpack.c.bf16 %v965_v27, %v964_v26  ;;  %v9917_v33 = vpop.f32.mrb[28].mxu1  ;;  %v1318_v14 = vmax.f32 %v1218_v0, 0.0 }
 0x122   : > { %v886_v44 = vadd.f32 %v9917_v33, %v11932_v51  ;;  %v877_v45 = vpop.f32.mrb[29].mxu1  ;;  %v12098_v17 = vpack.c.bf16 %v1320_v10, %v1319_v60 }
 0x123   : > { %v878_v50 = vadd.f32 %v11932_v51, %v877_v45  ;;  %v9918_v52 = vpop.f32.mrb[30].mxu1  ;;  %10163 = vmatprep.mubr.msk.bf16.mxu0 %vm393_vm0, %v3134_v32  ;;  %v12100_v20 = vpack.c.bf16 %v1318_v14, %v1317_v63  ;;  %v9953_v22 = vpop.f32.mrb[28].mxu0 }
 0x124   : > { %v889_v57 = vadd.f32 %v9918_v52, %v11932_v51  ;;  %v880_v59 = vpop.f32.mrb[31].mxu1  ;;  %10164 = vmatmul.mubr.msk.bf16.gmra.mrb[120].mxu0 %vm393_vm0, %v3135_v30  ;;  %v970_v7 = vmax.f32 %v886_v44, 0.0  ;;  %v1239_v26 = vadd.f32 %v9953_v22, %v11932_v51  ;;  %v1230_v27 = vpop.f32.mrb[29].mxu0 }
 0x125   : > { %v881_v62 = vadd.f32 %v11932_v51, %v880_v59  ;;  %v968_v11 = vmax.f32 %v878_v50, 0.0  ;;  %v1231_v32 = vadd.f32 %v11932_v51, %v1230_v27  ;;  %v9954_v33 = vpop.f32.mrb[30].mxu0 }
 0x126   : > { %v971_v9 = vmax.f32 %v889_v57, 0.0  ;;  %10144 = vmatmul.mubr.msk.bf16.gmra.mrb[136].mxu1 %vm393_vm0, %v11366_v46  ;;  %v1323_v45 = vmax.f32 %v1239_v26, 0.0  ;;  %v1242_v46 = vadd.f32 %v9954_v33, %v11932_v51  ;;  %v1233_v47 = vpop.f32.mrb[31].mxu0 }
 0x127   : > { %v969_v12 = vmax.f32 %v881_v62, 0.0  ;;  %10147 = vmatprep.mubr.msk.bf16.mxu1 %vm393_vm0, %v11367_v53  ;;  %v1321_v50 = vmax.f32 %v1231_v32, 0.0  ;;  %v1234_v52 = vadd.f32 %v11932_v51, %v1233_v47 }
 0x128   : > { %v3137_v15 = vpack.c.bf16 %v971_v9, %v970_v7  ;;  %v1324_v56 = vmax.f32 %v1242_v46, 0.0 }
 0x129   : > { %v3136_v18 = vpack.c.bf16 %v969_v12, %v968_v11  ;;  %v9921_v19 = vpop.f32.mrb[32].mxu1  ;;  %v1322_v60 = vmax.f32 %v1234_v52, 0.0 }
 0x12a   : > { %v902_v23 = vadd.f32 %v9921_v19, %v11932_v51  ;;  %v893_v24 = vpop.f32.mrb[33].mxu1  ;;  %v12114_v61 = vpack.c.bf16 %v1324_v56, %v1323_v45 }
 0x12b   : > { %v894_v28 = vadd.f32 %v11932_v51, %v893_v24  ;;  %v9922_v30 = vpop.f32.mrb[34].mxu1  ;;  %10167 = vmatprep.mubr.msk.bf16.mxu0 %vm393_vm0, %v3136_v18  ;;  %v12116_v0 = vpack.c.bf16 %v1322_v60, %v1321_v50  ;;  %v9957_v7 = vpop.f32.mrb[32].mxu0 }
 0x12c   : > { %v905_v43 = vadd.f32 %v9922_v30, %v11932_v51  ;;  %v896_v44 = vpop.f32.mrb[35].mxu1  ;;  %10168 = vmatmul.mubr.msk.bf16.gmra.mrb[124].mxu0 %vm393_vm0, %v3137_v15  ;;  %v974_v53 = vmax.f32 %v902_v23, 0.0  ;;  %v1255_v11 = vadd.f32 %v9957_v7, %v11932_v51  ;;  %v1246_v12 = vpop.f32.mrb[33].mxu0 }
 0x12d   : > { %v897_v48 = vadd.f32 %v11932_v51, %v896_v44  ;;  %v972_v57 = vmax.f32 %v894_v28, 0.0  ;;  %v1247_v18 = vadd.f32 %v11932_v51, %v1246_v12  ;;  %v9958_v19 = vpop.f32.mrb[34].mxu0 }
 0x12e   : > { %v975_v54 = vmax.f32 %v905_v43, 0.0  ;;  %10148 = vmatmul.mubr.msk.bf16.gmra.mrb[140].mxu1 %vm393_vm0, %v11368_v25  ;;  %v1327_v24 = vmax.f32 %v1255_v11, 0.0  ;;  %v1258_v25 = vadd.f32 %v9958_v19, %v11932_v51  ;;  %v1249_v26 = vpop.f32.mrb[35].mxu0 }
 0x12f   : > { %v973_v59 = vmax.f32 %v897_v48, 0.0  ;;  %v1325_v28 = vmax.f32 %v1247_v18, 0.0  ;;  %v1250_v30 = vadd.f32 %v11932_v51, %v1249_v26 }
 0x130   : > { %v3139_v29 = vpack.c.bf16 %v975_v54, %v974_v53  ;;  %v1328_v43 = vmax.f32 %v1258_v25, 0.0 }
 0x131   : > { %v3138_v62 = vpack.c.bf16 %v973_v59, %v972_v57  ;;  %v9925_v63 = vpop.f32.mrb[36].mxu1  ;;  %v1326_v46 = vmax.f32 %v1250_v30, 0.0 }
 0x132   : > { %v918_v9 = vadd.f32 %v9925_v63, %v11932_v51  ;;  %v909_v10 = vpop.f32.mrb[37].mxu1  ;;  %v12128_v48 = vpack.c.bf16 %v1328_v43, %v1327_v24 }
 0x133   : > { %v910_v14 = vadd.f32 %v11932_v51, %v909_v10  ;;  %v9926_v15 = vpop.f32.mrb[38].mxu1  ;;  %10171 = vmatprep.mubr.msk.bf16.mxu0 %vm393_vm0, %v3138_v62  ;;  %v12130_v53 = vpack.c.bf16 %v1326_v46, %v1325_v28  ;;  %v9961_v54 = vpop.f32.mrb[36].mxu0 }
 0x134   : > { %v921_v22 = vadd.f32 %v9926_v15, %v11932_v51  ;;  %v912_v23 = vpop.f32.mrb[39].mxu1  ;;  %10172 = vmatmul.mubr.msk.bf16.gmra.mrb[128].mxu0 %vm393_vm0, %v3139_v29  ;;  %v978_v32 = vmax.f32 %v918_v9, 0.0  ;;  %v1271_v59 = vadd.f32 %v9961_v54, %v11932_v51  ;;  %v1262_v60 = vpop.f32.mrb[37].mxu0 }
 0x135   : > { %v913_v27 = vadd.f32 %v11932_v51, %v912_v23  ;;  %v976_v44 = vmax.f32 %v910_v14, 0.0  ;;  %v1263_v63 = vadd.f32 %v11932_v51, %v1262_v60  ;;  %v9962_v7 = vpop.f32.mrb[38].mxu0 }
 0x136   : > { %v979_v33 = vmax.f32 %v921_v22, 0.0  ;;  %v1331_v11 = vmax.f32 %v1271_v59, 0.0  ;;  %v1274_v12 = vadd.f32 %v9962_v7, %v11932_v51  ;;  %v1265_v14 = vpop.f32.mrb[39].mxu0 }
 0x137   : > { %v977_v45 = vmax.f32 %v913_v27, 0.0  ;;  %v1329_v18 = vmax.f32 %v1263_v63, 0.0  ;;  %v1266_v19 = vadd.f32 %v11932_v51, %v1265_v14 }
 0x138   : > { %v3141_v47 = vpack.c.bf16 %v979_v33, %v978_v32  ;;  %v1332_v24 = vmax.f32 %v1274_v12, 0.0 }
 0x139   : > { %v3140_v50 = vpack.c.bf16 %v977_v45, %v976_v44  ;;  %v9929_v52 = vpop.f32.mrb[40].mxu1  ;;  %v1330_v27 = vmax.f32 %v1266_v19, 0.0 }
 0x13a   : > { %v934_v56 = vadd.f32 %v9929_v52, %v11932_v51  ;;  %v925_v57 = vpop.f32.mrb[41].mxu1  ;;  %v12142_v30 = vpack.c.bf16 %v1332_v24, %v1331_v11 }
 0x13b   : > { %v926_v29 = vadd.f32 %v11932_v51, %v925_v57  ;;  %v9930_v62 = vpop.f32.mrb[42].mxu1  ;;  %10175 = vmatprep.mubr.msk.bf16.mxu0 %vm393_vm0, %v3140_v50  ;;  %v12144_v43 = vpack.c.bf16 %v1330_v27, %v1329_v18  ;;  %v9965_v44 = vpop.f32.mrb[40].mxu0 }
 0x13c   : > { %v937_v9 = vadd.f32 %v9930_v62, %v11932_v51  ;;  %v928_v10 = vpop.f32.mrb[43].mxu1  ;;  %10176 = vmatmul.mubr.msk.bf16.gmra.mrb[132].mxu0 %vm393_vm0, %v3141_v47  ;;  %v982_v22 = vmax.f32 %v934_v56, 0.0  ;;  %v1287_v47 = vadd.f32 %v9965_v44, %v11932_v51  ;;  %v1278_v50 = vpop.f32.mrb[41].mxu0 }
 0x13d   : > { %v929_v15 = vadd.f32 %v11932_v51, %v928_v10  ;;  %v980_v25 = vmax.f32 %v926_v29, 0.0  ;;  %v1279_v56 = vadd.f32 %v11932_v51, %v1278_v50  ;;  %v9966_v57 = vpop.f32.mrb[42].mxu0 }
 0x13e   : > { %v983_v23 = vmax.f32 %v937_v9, 0.0  ;;  %v1335_v29 = vmax.f32 %v1287_v47, 0.0  ;;  %v1290_v62 = vadd.f32 %v9966_v57, %v11932_v51  ;;  %v1281_v63 = vpop.f32.mrb[43].mxu0 }
 0x13f   : > { %v981_v26 = vmax.f32 %v929_v15, 0.0  ;;  %v1333_v9 = vmax.f32 %v1279_v56, 0.0  ;;  %v1282_v10 = vadd.f32 %v11932_v51, %v1281_v63 }
 0x140   : > { %v3143_v28 = vpack.c.bf16 %v983_v23, %v982_v22  ;;  %v1336_v14 = vmax.f32 %v1290_v62, 0.0 }
 0x141   : > { %v3142_v32 = vpack.c.bf16 %v981_v26, %v980_v25  ;;  %v9933_v33 = vpop.f32.mrb[44].mxu1  ;;  %v1334_v19 = vmax.f32 %v1282_v10, 0.0 }
 0x142   : > { %v950_v45 = vadd.f32 %v9933_v33, %v11932_v51  ;;  %v941_v46 = vpop.f32.mrb[45].mxu1  ;;  %v12156_v23 = vpack.c.bf16 %v1336_v14, %v1335_v29 }
 0x143   : > { %v942_v52 = vadd.f32 %v11932_v51, %v941_v46  ;;  %v9934_v54 = vpop.f32.mrb[46].mxu1  ;;  %10179 = vmatprep.mubr.msk.bf16.mxu0 %vm393_vm0, %v3142_v32  ;;  %v12158_v26 = vpack.c.bf16 %v1334_v19, %v1333_v9  ;;  %v9969_v27 = vpop.f32.mrb[44].mxu0 }
 0x144   : > { %v953_v59 = vadd.f32 %v9934_v54, %v11932_v51  ;;  %v944_v60 = vpop.f32.mrb[47].mxu1  ;;  %10180 = vmatmul.mubr.msk.bf16.gmra.mrb[136].mxu0 %vm393_vm0, %v3143_v28  ;;  %v986_v11 = vmax.f32 %v950_v45, 0.0  ;;  %v1303_v33 = vadd.f32 %v9969_v27, %v11932_v51  ;;  %v1294_v44 = vpop.f32.mrb[45].mxu0 }
 0x145   : > { %v945_v7 = vadd.f32 %v11932_v51, %v944_v60  ;;  %v984_v15 = vmax.f32 %v942_v52, 0.0  ;;  %v1295_v47 = vadd.f32 %v11932_v51, %v1294_v44  ;;  %v9970_v50 = vpop.f32.mrb[46].mxu0  ;;  %v12188_v44 = vld [vmem:[%s14104_s2 + $0x38] sm:$0xff]  }
 0x146   : > { %v987_v12 = vmax.f32 %v953_v59, 0.0  ;;  %v1339_v56 = vmax.f32 %v1303_v33, 0.0  ;;  %v1306_v57 = vadd.f32 %v9970_v50, %v11932_v51  ;;  %v1297_v59 = vpop.f32.mrb[47].mxu0 }
 0x147   : > { %v985_v18 = vmax.f32 %v945_v7, 0.0  ;;  %v1337_v29 = vmax.f32 %v1295_v47, 0.0  ;;  %v1298_v62 = vadd.f32 %v11932_v51, %v1297_v59 }
 0x148   : > { %v3145_v22 = vpack.c.bf16 %v987_v12, %v986_v11  ;;  %v1340_v9 = vmax.f32 %v1306_v57, 0.0 }
 0x149   : > { %v3144_v24 = vpack.c.bf16 %v985_v18, %v984_v15  ;;  %v9977_v25 = vpop.f32.mrb[48].mxu1  ;;  %v1338_v12 = vmax.f32 %v1298_v62, 0.0 }
 0x14a   : > { %v1544_v28 = vadd.f32 %v9977_v25, %v11932_v51  ;;  %v1535_v32 = vpop.f32.mrb[49].mxu1  ;;  %v12174_v15 = vpack.c.bf16 %v1340_v9, %v1339_v56 }
 0x14b   : > { %v1536_v45 = vadd.f32 %v11932_v51, %v1535_v32  ;;  %v9978_v46 = vpop.f32.mrb[50].mxu1  ;;  %10183 = vmatprep.mubr.msk.bf16.mxu0 %vm393_vm0, %v3144_v24  ;;  %v10013_v24 = vpop.f32.mrb[48].mxu0 }
 0x14c   : > { %v1547_v52 = vadd.f32 %v9978_v46, %v11932_v51  ;;  %v1538_v54 = vpop.f32.mrb[51].mxu1  ;;  %10184 = vmatmul.mubr.msk.bf16.gmra.mrb[140].mxu0 %vm393_vm0, %v3145_v22  ;;  %v1664_v63 = vmax.f32 %v1544_v28, 0.0  ;;  %v12178_v22 = vpack.c.bf16 %v1338_v12, %v1337_v29  ;;  %v1897_v27 = vadd.f32 %v10013_v24, %v11932_v51  ;;  %v1888_v28 = vpop.f32.mrb[49].mxu0 }
 0x14d   : > { %v1539_v60 = vadd.f32 %v11932_v51, %v1538_v54  ;;  %10191 = vmatprep.mubr.msk.bf16.mxu0 %vm393_vm0, %v11974_v40  ;;  %v1662_v10 = vmax.f32 %v1536_v45, 0.0  ;;  %v1889_v45 = vadd.f32 %v11932_v51, %v1888_v28  ;;  %v10014_v46 = vpop.f32.mrb[50].mxu0 }
 0x14e   : > { %v1665_v7 = vmax.f32 %v1547_v52, 0.0  ;;  %v2017_v52 = vmax.f32 %v1897_v27, 0.0  ;;  %v1900_v54 = vadd.f32 %v10014_v46, %v11932_v51  ;;  %v1891_v56 = vpop.f32.mrb[51].mxu0 }
 0x14f   : > { %v1663_v11 = vmax.f32 %v1539_v60, 0.0  ;;  %v2015_v59 = vmax.f32 %v1889_v45, 0.0  ;;  %v1892_v60 = vadd.f32 %v11932_v51, %v1891_v56 }
 0x150   : > { %v12172_v14 = vpack.c.bf16 %v1665_v7, %v1664_v63 }
 0x151   : > { %v12176_v18 = vpack.c.bf16 %v1663_v11, %v1662_v10  ;;  %v9981_v19 = vpop.f32.mrb[52].mxu1  ;;  %v2016_v9 = vmax.f32 %v1892_v60, 0.0 }
 0x152   : > { %v1560_v40 = vadd.f32 %v9981_v19, %v11932_v51  ;;  %v1551_v25 = vpop.f32.mrb[53].mxu1 }
 0x153   : > { %v1552_v32 = vadd.f32 %v11932_v51, %v1551_v25  ;;  %v9982_v33 = vpop.f32.mrb[54].mxu1  ;;  %10299 = vmatprep.mubr.msk.bf16.mxu1 %vm393_vm0, %v12176_v18  ;;  %v12217_v19 = vpack.c.bf16 %v2016_v9, %v2015_v59  ;;  %v10017_v24 = vpop.f32.mrb[52].mxu0 }
 0x154   : > { %v1563_v47 = vadd.f32 %v9982_v33, %v11932_v51  ;;  %v1554_v50 = vpop.f32.mrb[55].mxu1  ;;  %10192 = vmatmul.mubr.msk.bf16.vlgmr.msra.gmra.mrb[112].mxu0 %vm393_vm0, %v11970_v37  ;;  %10300 = vmatmul.mubr.msk.bf16.vlgmr.msra.gmra.mrb[144].mxu1 %vm393_vm0, %v12172_v14  ;;  %v1668_v29 = vmax.f32 %v1560_v40, 0.0  ;;  %v2018_v37 = vmax.f32 %v1900_v54, 0.0  ;;  %v1913_v27 = vadd.f32 %v10017_v24, %v11932_v51  ;;  %v1904_v28 = vpop.f32.mrb[53].mxu0 }
 0x155   : > { %v1555_v57 = vadd.f32 %v11932_v51, %v1554_v50  ;;  %10332 = vmatpush3.bf16.msra.mxu1 %v11898_v36  ;;  %10195 = vmatprep.mubr.msk.bf16.mxu0 %vm393_vm0, %v11996_v8  ;;  %v1666_v63 = vmax.f32 %v1552_v32, 0.0  ;;  %v12208_v36 = vld [vmem:[%s14104_s2 + $0x40] sm:$0xff]   ;;  %v10018_v45 = vpop.f32.mrb[54].mxu0 }
 0x156   : > { %v1669_v62 = vmax.f32 %v1563_v47, 0.0  ;;  %10333 = vmatprep.subr.bf16.mxu1 %v12039_v21  ;;  %10224 = vmatpush3.bf16.msra.mxu0 %v12057_v49  ;;  %v12212_v10 = vpack.c.bf16 %v2018_v37, %v2017_v52  ;;  %v2021_v50 = vmax.f32 %v1913_v27, 0.0  ;;  %v1916_v52 = vadd.f32 %v10018_v45, %v11932_v51  ;;  %v1907_v54 = vpop.f32.mrb[55].mxu0 }
 0x157   : > { %v1667_v7 = vmax.f32 %v1555_v57, 0.0  ;;  %10225 = vmatprep.subr.bf16.mxu0 %v12188_v44  ;;  %v1908_v59 = vadd.f32 %v11932_v51, %v1907_v54 }
 0x158   : > { %v12210_v8 = vpack.c.bf16 %v1669_v62, %v1668_v29  ;;  %v2022_v62 = vmax.f32 %v1916_v52, 0.0 }
 0x159   : > { %v12214_v11 = vpack.c.bf16 %v1667_v7, %v1666_v63  ;;  %v9985_v12 = vpop.f32.mrb[56].mxu1  ;;  %10334 = vmatpush3.bf16.msra.mxu1 %v12039_v21  ;;  %v1905_v21 = vadd.f32 %v11932_v51, %v1904_v28  ;;  %v2020_v63 = vmax.f32 %v1908_v59, 0.0 }
 0x15a   : > { %v1576_v40 = vadd.f32 %v9985_v12, %v11932_v51  ;;  %v1567_v25 = vpop.f32.mrb[57].mxu1  ;;  %10226 = vmatpush3.bf16.msra.mxu0 %v12188_v44  ;;  %10367 = vmatprep.subr.bf16.mxu1 %v12057_v49  ;;  %v12240_v9 = vpack.c.bf16 %v2022_v62, %v2021_v50 }
 0x15b   : > { %v1568_v32 = vadd.f32 %v11932_v51, %v1567_v25  ;;  %v9986_v33 = vpop.f32.mrb[58].mxu1  ;;  %10303 = vmatprep.mubr.msk.bf16.mxu1 %vm393_vm0, %v12214_v11  ;;  %10259 = vmatprep.subr.bf16.mxu0 %v12208_v36  ;;  %v2019_v57 = vmax.f32 %v1905_v21, 0.0  ;;  %v10021_v27 = vpop.f32.mrb[56].mxu0 }
 0x15c   : > { %v1579_v46 = vadd.f32 %v9986_v33, %v11932_v51  ;;  %v1570_v47 = vpop.f32.mrb[59].mxu1  ;;  %10196 = vmatmul.mubr.msk.bf16.gmra.mrb[116].mxu0 %vm393_vm0, %v11992_v3  ;;  %10304 = vmatmul.mubr.msk.bf16.gmra.mrb[148].mxu1 %vm393_vm0, %v12210_v8  ;;  %v1672_v60 = vmax.f32 %v1576_v40, 0.0  ;;  %v1929_v40 = vadd.f32 %v10021_v27, %v11932_v51  ;;  %v1920_v33 = vpop.f32.mrb[57].mxu0 }
 0x15d   : > { %v1571_v56 = vadd.f32 %v11932_v51, %v1570_v47  ;;  %10199 = vmatprep.mubr.msk.bf16.mxu0 %vm393_vm0, %v12016_v1  ;;  %v1670_v37 = vmax.f32 %v1568_v32, 0.0  ;;  %v12244_v25 = vpack.c.bf16 %v2020_v63, %v2019_v57  ;;  %v1921_v45 = vadd.f32 %v11932_v51, %v1920_v33  ;;  %v12261_v57 = vld [vmem:[%s14105_s3] ss:$0 sm:$0xff] }
 0x15e   : > { %v1673_v29 = vmax.f32 %v1579_v46, 0.0  ;;  %v10022_v46 = vpop.f32.mrb[58].mxu0  ;;  %v2025_v52 = vmax.f32 %v1929_v40, 0.0 }
 0x15f   : > { %v1671_v3 = vmax.f32 %v1571_v56, 0.0  ;;  %v1932_v54 = vadd.f32 %v10022_v46, %v11932_v51  ;;  %v1923_v56 = vpop.f32.mrb[59].mxu0 }
 0x160   : > { %v12238_v7 = vpack.c.bf16 %v1673_v29, %v1672_v60  ;;  %v2023_v60 = vmax.f32 %v1921_v45, 0.0 }
 0x161   : > { %v12242_v12 = vpack.c.bf16 %v1671_v3, %v1670_v37  ;;  %v9989_v24 = vpop.f32.mrb[60].mxu1  ;;  %v2026_v37 = vmax.f32 %v1932_v54, 0.0 }
 0x162   : > { %v1592_v1 = vadd.f32 %v9989_v24, %v11932_v51  ;;  %v1583_v28 = vpop.f32.mrb[61].mxu1 }
 0x163   : > { %v1584_v32 = vadd.f32 %v11932_v51, %v1583_v28  ;;  %v9990_v21 = vpop.f32.mrb[62].mxu1  ;;  %10307 = vmatprep.mubr.msk.bf16.mxu1 %vm393_vm0, %v12242_v12  ;;  %v12269_v27 = vpack.c.bf16 %v2026_v37, %v2025_v52 }
 0x164   : > { %v1595_v47 = vadd.f32 %v9990_v21, %v11932_v51  ;;  %v1586_v50 = vpop.f32.mrb[63].mxu1  ;;  %10200 = vmatmul.mubr.msk.bf16.gmra.mrb[120].mxu0 %vm393_vm0, %v12012_v41  ;;  %10308 = vmatmul.mubr.msk.bf16.gmra.mrb[152].mxu1 %vm393_vm0, %v12238_v7  ;;  %v1924_v41 = vadd.f32 %v12261_v57, %v1923_v56  ;;  %v1676_v29 = vmax.f32 %v1592_v1, 0.0  ;;  %v10025_v21 = vpop.f32.mrb[60].mxu0 }
 0x165   : > { %v1587_v59 = vadd.f32 %v12261_v57, %v1586_v50  ;;  %10203 = vmatprep.mubr.msk.bf16.mxu0 %vm393_vm0, %v12032_v16  ;;  %v1674_v3 = vmax.f32 %v1584_v32, 0.0  ;;  %v1945_v1 = vadd.f32 %v12261_v57, %v10025_v21  ;;  %v1936_v46 = vpop.f32.mrb[61].mxu0 }
 0x166   : > { %v1677_v62 = vmax.f32 %v1595_v47, 0.0  ;;  %v2024_v51 = vmax.f32 %v1924_v41, 0.0  ;;  %v1937_v50 = vadd.f32 %v12261_v57, %v1936_v46  ;;  %v10026_v52 = vpop.f32.mrb[62].mxu0 }
 0x167   : > { %v1675_v63 = vmax.f32 %v1587_v59, 0.0  ;;  %v2029_v59 = vmax.f32 %v1945_v1, 0.0  ;;  %v1939_v41 = vpop.f32.mrb[63].mxu0 }
 0x168   : > { %v12267_v24 = vpack.c.bf16 %v1677_v62, %v1676_v29  ;;  %v12273_v33 = vpack.c.bf16 %v2024_v51, %v2023_v60  ;;  %v1948_v60 = vadd.f32 %v12261_v57, %v10026_v52  ;;  %v2027_v62 = vmax.f32 %v1937_v50, 0.0 }
 0x169   : > { %v12271_v28 = vpack.c.bf16 %v1675_v63, %v1674_v3  ;;  %v9993_v40 = vpop.f32.mrb[64].mxu1  ;;  %v1940_v37 = vadd.f32 %v12261_v57, %v1939_v41 }
 0x16a   : > { %v1608_v16 = vadd.f32 %v12261_v57, %v9993_v40  ;;  %v1599_v45 = vpop.f32.mrb[65].mxu1  ;;  %v2030_v51 = vmax.f32 %v1948_v60, 0.0 }
 0x16b   : > { %v1600_v32 = vadd.f32 %v12261_v57, %v1599_v45  ;;  %v9994_v47 = vpop.f32.mrb[66].mxu1  ;;  %10311 = vmatprep.mubr.msk.bf16.mxu1 %vm393_vm0, %v12271_v28  ;;  %v2028_v21 = vmax.f32 %v1940_v37, 0.0 }
 0x16c   : > { %v1611_v54 = vadd.f32 %v12261_v57, %v9994_v47  ;;  %v1602_v56 = vpop.f32.mrb[67].mxu1  ;;  %10204 = vmatmul.mubr.msk.bf16.gmra.mrb[124].mxu0 %vm393_vm0, %v12030_v13  ;;  %10312 = vmatmul.mubr.msk.bf16.gmra.mrb[156].mxu1 %vm393_vm0, %v12267_v24  ;;  %v1680_v3 = vmax.f32 %v1608_v16, 0.0  ;;  %v12293_v1 = vpack.c.bf16 %v2030_v51, %v2029_v59 }
 0x16d   : > { %v1603_v29 = vadd.f32 %v12261_v57, %v1602_v56  ;;  %10207 = vmatprep.mubr.msk.bf16.mxu0 %vm393_vm0, %v11950_v6  ;;  %v1678_v40 = vmax.f32 %v1600_v32, 0.0  ;;  %v12297_v52 = vpack.c.bf16 %v2028_v21, %v2027_v62  ;;  %v10029_v56 = vpop.f32.mrb[64].mxu0 }
 0x16e   : > { %v1681_v63 = vmax.f32 %v1611_v54, 0.0  ;;  %v1961_v16 = vadd.f32 %v12261_v57, %v10029_v56  ;;  %v1952_v54 = vpop.f32.mrb[65].mxu0 }
 0x16f   : > { %v1679_v13 = vmax.f32 %v1603_v29, 0.0  ;;  %v1953_v59 = vadd.f32 %v12261_v57, %v1952_v54  ;;  %v10030_v41 = vpop.f32.mrb[66].mxu0 }
 0x170   : > { %v12291_v45 = vpack.c.bf16 %v1681_v63, %v1680_v3  ;;  %v2033_v37 = vmax.f32 %v1961_v16, 0.0  ;;  %v1964_v3 = vadd.f32 %v12261_v57, %v10030_v41  ;;  %v1955_v63 = vpop.f32.mrb[67].mxu0 }
 0x171   : > { %v12295_v46 = vpack.c.bf16 %v1679_v13, %v1678_v40  ;;  %v9997_v47 = vpop.f32.mrb[68].mxu1  ;;  %v2031_v40 = vmax.f32 %v1953_v59, 0.0  ;;  %v1956_v13 = vadd.f32 %v12261_v57, %v1955_v63 }
 0x172   : > { %14114 = vst [vmem:[#allocation2_spill] sm:$0xff] %v12291_v45  ;;  %v1624_v6 = vadd.f32 %v12261_v57, %v9997_v47  ;;  %v1615_v50 = vpop.f32.mrb[69].mxu1  ;;  %v2034_v56 = vmax.f32 %v1964_v3, 0.0 }
 0x173   : > { %14115 = vst [vmem:[#allocation3_spill] sm:$0xff] %v12295_v46  ;;  %v1616_v32 = vadd.f32 %v12261_v57, %v1615_v50  ;;  %v9998_v60 = vpop.f32.mrb[70].mxu1  ;;  %10315 = vmatprep.mubr.msk.bf16.mxu1 %vm393_vm0, %v12295_v46  ;;  %v2032_v54 = vmax.f32 %v1956_v13, 0.0  ;;  %v10033_v46 = vpop.f32.mrb[68].mxu0 }
 0x174   : > { %v1627_v29 = vadd.f32 %v12261_v57, %v9998_v60  ;;  %v1618_v62 = vpop.f32.mrb[71].mxu1  ;;  %10208 = vmatmul.mubr.msk.bf16.gmra.mrb[128].mxu0 %vm393_vm0, %v11948_v5  ;;  %10316 = vmatmul.mubr.msk.bf16.gmra.mrb[160].mxu1 %vm393_vm0, %v12291_v45  ;;  %v1684_v21 = vmax.f32 %v1624_v6, 0.0  ;;  %v12317_v16 = vpack.c.bf16 %v2034_v56, %v2033_v37  ;;  %v1977_v6 = vadd.f32 %v12261_v57, %v10033_v46 }
 0x175   : > { %v1619_v51 = vadd.f32 %v12261_v57, %v1618_v62  ;;  %10211 = vmatprep.mubr.msk.bf16.mxu0 %vm393_vm0, %v11972_v38  ;;  %v1682_v50 = vmax.f32 %v1616_v32, 0.0  ;;  %v12321_v62 = vpack.c.bf16 %v2032_v54, %v2031_v40 }
 0x176   : > { %v1685_v47 = vmax.f32 %v1627_v29, 0.0  ;;  %v1968_v29 = vpop.f32.mrb[69].mxu0 }
 0x177   : > { %v1683_v5 = vmax.f32 %v1619_v51, 0.0  ;;  %v1969_v37 = vadd.f32 %v12261_v57, %v1968_v29  ;;  %v10034_v63 = vpop.f32.mrb[70].mxu0 }
 0x178   : > { %v12315_v60 = vpack.c.bf16 %v1685_v47, %v1684_v21  ;;  %v1980_v46 = vadd.f32 %v12261_v57, %v10034_v63  ;;  %v1971_v13 = vpop.f32.mrb[71].mxu0 }
 0x179   : > { %v12319_v41 = vpack.c.bf16 %v1683_v5, %v1682_v50  ;;  %v10001_v45 = vpop.f32.mrb[72].mxu1  ;;  %v2035_v47 = vmax.f32 %v1969_v37, 0.0  ;;  %v1972_v56 = vadd.f32 %v12261_v57, %v1971_v13 }
 0x17a   : > { %14116 = vst [vmem:[#allocation4_spill] sm:$0xff] %v12315_v60  ;;  %v1640_v38 = vadd.f32 %v12261_v57, %v10001_v45  ;;  %v1631_v59 = vpop.f32.mrb[73].mxu1  ;;  %v2037_v45 = vmax.f32 %v1977_v6, 0.0  ;;  %v2038_v54 = vmax.f32 %v1980_v46, 0.0 }
 0x17b   : > { %14117 = vst [vmem:[#allocation5_spill] sm:$0xff] %v12319_v41  ;;  %v1632_v32 = vadd.f32 %v12261_v57, %v1631_v59  ;;  %v10002_v3 = vpop.f32.mrb[74].mxu1  ;;  %10319 = vmatprep.mubr.msk.bf16.mxu1 %vm393_vm0, %v12319_v41  ;;  %v2036_v29 = vmax.f32 %v1972_v56, 0.0  ;;  %v10037_v41 = vpop.f32.mrb[72].mxu0 }
 0x17c   : > { %v1643_v51 = vadd.f32 %v12261_v57, %v10002_v3  ;;  %v1634_v40 = vpop.f32.mrb[75].mxu1  ;;  %10212 = vmatmul.mubr.msk.bf16.gmra.mrb[132].mxu0 %vm393_vm0, %v11967_v35  ;;  %10320 = vmatmul.mubr.msk.bf16.gmra.mrb[164].mxu1 %vm393_vm0, %v12315_v60  ;;  %v1688_v50 = vmax.f32 %v1640_v38, 0.0  ;;  %v12341_v6 = vpack.c.bf16 %v2038_v54, %v2037_v45  ;;  %v1993_v38 = vadd.f32 %v12261_v57, %v10037_v41 }
 0x17d   : > { %v1635_v21 = vadd.f32 %v12261_v57, %v1634_v40  ;;  %10215 = vmatprep.mubr.msk.bf16.mxu0 %vm393_vm0, %v11994_v4  ;;  %v1686_v59 = vmax.f32 %v1632_v32, 0.0  ;;  %v12345_v40 = vpack.c.bf16 %v2036_v29, %v2035_v47 }
 0x17e   : > { %v1689_v5 = vmax.f32 %v1643_v51, 0.0  ;;  %v1984_v51 = vpop.f32.mrb[73].mxu0 }
 0x17f   : > { %v1687_v35 = vmax.f32 %v1635_v21, 0.0  ;;  %v1985_v45 = vadd.f32 %v12261_v57, %v1984_v51  ;;  %v10038_v13 = vpop.f32.mrb[74].mxu0 }
 0x180   : > { %v12339_v3 = vpack.c.bf16 %v1689_v5, %v1688_v50  ;;  %v1996_v41 = vadd.f32 %v12261_v57, %v10038_v13  ;;  %v1987_v56 = vpop.f32.mrb[75].mxu0 }
 0x181   : > { %v12343_v63 = vpack.c.bf16 %v1687_v35, %v1686_v59  ;;  %v10005_v60 = vpop.f32.mrb[76].mxu1  ;;  %v2039_v5 = vmax.f32 %v1985_v45, 0.0  ;;  %v1988_v54 = vadd.f32 %v12261_v57, %v1987_v56 }
 0x182   : > { %14118 = vst [vmem:[#allocation6_spill] sm:$0xff] %v12339_v3  ;;  %v1656_v4 = vadd.f32 %v12261_v57, %v10005_v60  ;;  %v1647_v37 = vpop.f32.mrb[77].mxu1  ;;  %v2041_v60 = vmax.f32 %v1993_v38, 0.0  ;;  %v2042_v29 = vmax.f32 %v1996_v41, 0.0 }
 0x183   : > { %14119 = vst [vmem:[#allocation7_spill] sm:$0xff] %v12343_v63  ;;  %v1648_v32 = vadd.f32 %v12261_v57, %v1647_v37  ;;  %v10006_v46 = vpop.f32.mrb[78].mxu1  ;;  %10323 = vmatprep.mubr.msk.bf16.mxu1 %vm393_vm0, %v12343_v63  ;;  %v2040_v51 = vmax.f32 %v1988_v54, 0.0  ;;  %v10041_v63 = vpop.f32.mrb[76].mxu0 }
 0x184   : > { %v1659_v21 = vadd.f32 %v12261_v57, %v10006_v46  ;;  %v1650_v47 = vpop.f32.mrb[79].mxu1  ;;  %10216 = vmatmul.mubr.msk.bf16.gmra.mrb[136].mxu0 %vm393_vm0, %v11990_v2  ;;  %10324 = vmatmul.mubr.msk.bf16.gmra.mrb[168].mxu1 %vm393_vm0, %v12339_v3  ;;  %v1692_v59 = vmax.f32 %v1656_v4, 0.0  ;;  %v12365_v38 = vpack.c.bf16 %v2042_v29, %v2041_v60  ;;  %v2009_v4 = vadd.f32 %v12261_v57, %v10041_v63 }
 0x185   : > { %v1651_v50 = vadd.f32 %v12261_v57, %v1650_v47  ;;  %10219 = vmatprep.mubr.msk.bf16.mxu0 %vm393_vm0, %v12014_v42  ;;  %v1690_v37 = vmax.f32 %v1648_v32, 0.0  ;;  %v12369_v47 = vpack.c.bf16 %v2040_v51, %v2039_v5 }
 0x186   : > { %v1693_v35 = vmax.f32 %v1659_v21, 0.0  ;;  %v2000_v21 = vpop.f32.mrb[77].mxu0  ;;  %v2045_v5 = vmax.f32 %v2009_v4, 0.0 }
 0x187   : > { %v1691_v2 = vmax.f32 %v1651_v50, 0.0  ;;  %v2001_v60 = vadd.f32 %v12261_v57, %v2000_v21  ;;  %v10042_v56 = vpop.f32.mrb[78].mxu0 }
 0x188   : > { %v12363_v46 = vpack.c.bf16 %v1693_v35, %v1692_v59  ;;  %v2012_v54 = vadd.f32 %v12261_v57, %v10042_v56  ;;  %v2003_v59 = vpop.f32.mrb[79].mxu0 }
 0x189   : > { %v12367_v13 = vpack.c.bf16 %v1691_v2, %v1690_v37  ;;  %v10049_v3 = vpop.f32.mrb[80].mxu1  ;;  %v2043_v29 = vmax.f32 %v2001_v60, 0.0  ;;  %v2004_v37 = vadd.f32 %v12261_v57, %v2003_v59 }
 0x18a   : > { %14120 = vst [vmem:[#allocation8_spill] sm:$0xff] %v12363_v46  ;;  %v2250_v42 = vadd.f32 %v12261_v57, %v10049_v3  ;;  %v2241_v45 = vpop.f32.mrb[81].mxu1  ;;  %v2046_v51 = vmax.f32 %v2012_v54, 0.0  ;;  %v12407_v54 = vld [vmem:[%s14104_s2 + $0x48] sm:$0xff]  }
 0x18b   : > { %10327 = vmatprep.mubr.msk.bf16.mxu1 %vm393_vm0, %v12367_v13  ;;  %v2242_v32 = vadd.f32 %v12261_v57, %v2241_v45  ;;  %v10050_v41 = vpop.f32.mrb[82].mxu1  ;;  %v2044_v45 = vmax.f32 %v2004_v37, 0.0 }
 0x18c   : > { %10220 = vmatmul.mubr.msk.bf16.gmra.mrb[140].mxu0 %vm393_vm0, %v12010_v39  ;;  %10328 = vmatmul.mubr.msk.bf16.gmra.mrb[172].mxu1 %vm393_vm0, %v12363_v46  ;;  %v2370_v3 = vmax.f32 %v2250_v42, 0.0  ;;  %v2253_v50 = vadd.f32 %v12261_v57, %v10050_v41  ;;  %v2244_v63 = vpop.f32.mrb[83].mxu1  ;;  %v12391_v21 = vpack.c.bf16 %v2046_v51, %v2045_v5 }
 0x18d   : > { %10227 = vmatprep.mubr.msk.bf16.mxu0 %vm393_vm0, %v12063_v58  ;;  %10335 = vmatprep.mubr.msk.bf16.mxu1 %vm393_vm0, %v12063_v58  ;;  %v2368_v35 = vmax.f32 %v2242_v32, 0.0  ;;  %v2245_v39 = vadd.f32 %v12261_v57, %v2244_v63  ;;  %v12395_v46 = vpack.c.bf16 %v2044_v45, %v2043_v29 }
 0x18e   : > { %v2371_v2 = vmax.f32 %v2253_v50, 0.0 }
 0x18f   : > { %v2369_v42 = vmax.f32 %v2245_v39, 0.0 }
 0x190   : > { %v12389_v4 = vpack.c.bf16 %v2371_v2, %v2370_v3 }
 0x191   : > { %v12393_v41 = vpack.c.bf16 %v2369_v42, %v2368_v35  ;;  %v10053_v56 = vpop.f32.mrb[84].mxu1 }
 0x192   : > { %v2266_v58 = vadd.f32 %v12261_v57, %v10053_v56  ;;  %v2257_v32 = vpop.f32.mrb[85].mxu1 }
 0x193   : > { %v2258_v60 = vadd.f32 %v12261_v57, %v2257_v32  ;;  %v10054_v63 = vpop.f32.mrb[86].mxu1 }
 0x194   : > { %10228 = vmatmul.mubr.msk.bf16.vlgmr.msra.gmra.mrb[112].mxu0 %vm393_vm0, %v12060_v55  ;;  %10336 = vmatmul.mubr.msk.bf16.vlgmr.msra.gmra.mrb[144].mxu1 %vm393_vm0, %v12060_v55  ;;  %v2374_v3 = vmax.f32 %v2266_v58, 0.0  ;;  %v2269_v50 = vadd.f32 %v12261_v57, %v10054_v63  ;;  %v2260_v5 = vpop.f32.mrb[87].mxu1 }
 0x195   : > { %10368 = vmatpush3.bf16.msra.mxu1 %v12057_v49  ;;  %10231 = vmatprep.mubr.msk.bf16.mxu0 %vm393_vm0, %v12082_v34  ;;  %v2372_v59 = vmax.f32 %v2258_v60, 0.0  ;;  %v2261_v35 = vadd.f32 %v12261_v57, %v2260_v5 }
 0x196   : > { %10339 = vmatprep.mubr.msk.bf16.mxu1 %vm393_vm0, %v12082_v34  ;;  %v2375_v55 = vmax.f32 %v2269_v50, 0.0  ;;  %10369 = vmatprep.subr.bf16.mxu1 %v12188_v44 }
 0x197   : > { %v2373_v39 = vmax.f32 %v2261_v35, 0.0  ;;  %10260 = vmatpush3.bf16.msra.mxu0 %v12208_v36 }
 0x198   : > { %v12417_v29 = vpack.c.bf16 %v2375_v55, %v2374_v3  ;;  %10261 = vmatprep.subr.bf16.mxu0 %v12407_v54 }
 0x199   : > { %v12420_v49 = vpack.c.bf16 %v2373_v39, %v2372_v59  ;;  %v10057_v37 = vpop.f32.mrb[88].mxu1  ;;  %10370 = vmatpush3.bf16.msra.mxu1 %v12188_v44 }
 0x19a   : > { %v2282_v2 = vadd.f32 %v12261_v57, %v10057_v37  ;;  %v2273_v51 = vpop.f32.mrb[89].mxu1  ;;  %10403 = vmatprep.subr.bf16.mxu1 %v12208_v36 }
 0x19b   : > { %v2274_v34 = vadd.f32 %v12261_v57, %v2273_v51  ;;  %v10058_v42 = vpop.f32.mrb[90].mxu1  ;;  %10262 = vmatpush3.bf16.msra.mxu0 %v12407_v54 }
 0x19c   : > { %10232 = vmatmul.mubr.msk.bf16.gmra.mrb[116].mxu0 %vm393_vm0, %v12080_v31  ;;  %10340 = vmatmul.mubr.msk.bf16.gmra.mrb[148].mxu1 %vm393_vm0, %v12080_v31  ;;  %v2378_v45 = vmax.f32 %v2282_v2, 0.0  ;;  %v2285_v56 = vadd.f32 %v12261_v57, %v10058_v42  ;;  %v2276_v44 = vpop.f32.mrb[91].mxu1 }
 0x19d   : > { %10235 = vmatprep.mubr.msk.bf16.mxu0 %vm393_vm0, %v12100_v20  ;;  %10343 = vmatprep.mubr.msk.bf16.mxu1 %vm393_vm0, %v12100_v20  ;;  %v2376_v58 = vmax.f32 %v2274_v34, 0.0  ;;  %v2277_v32 = vadd.f32 %v12261_v57, %v2276_v44 }
 0x19e   : > { %v2379_v60 = vmax.f32 %v2285_v56, 0.0 }
 0x19f   : > { %v2377_v63 = vmax.f32 %v2277_v32, 0.0 }
 0x1a0   : > { %v12437_v3 = vpack.c.bf16 %v2379_v60, %v2378_v45 }
 0x1a1   : > { %v12439_v50 = vpack.c.bf16 %v2377_v63, %v2376_v58  ;;  %v10061_v31 = vpop.f32.mrb[92].mxu1 }
 0x1a2   : > { %v2298_v5 = vadd.f32 %v12261_v57, %v10061_v31  ;;  %v2289_v59 = vpop.f32.mrb[93].mxu1 }
 0x1a3   : > { %v2290_v35 = vadd.f32 %v12261_v57, %v2289_v59  ;;  %v10062_v55 = vpop.f32.mrb[94].mxu1 }
 0x1a4   : > { %10236 = vmatmul.mubr.msk.bf16.gmra.mrb[120].mxu0 %vm393_vm0, %v12098_v17  ;;  %10344 = vmatmul.mubr.msk.bf16.gmra.mrb[152].mxu1 %vm393_vm0, %v12098_v17  ;;  %v2382_v20 = vmax.f32 %v2298_v5, 0.0  ;;  %v2301_v39 = vadd.f32 %v12261_v57, %v10062_v55  ;;  %v2292_v37 = vpop.f32.mrb[95].mxu1 }
 0x1a5   : > { %10239 = vmatprep.mubr.msk.bf16.mxu0 %vm393_vm0, %v12116_v0  ;;  %10347 = vmatprep.mubr.msk.bf16.mxu1 %vm393_vm0, %v12116_v0  ;;  %v2380_v2 = vmax.f32 %v2290_v35, 0.0  ;;  %v2293_v51 = vadd.f32 %v12261_v57, %v2292_v37 }
 0x1a6   : > { %v2383_v34 = vmax.f32 %v2301_v39, 0.0 }
 0x1a7   : > { %v2381_v42 = vmax.f32 %v2293_v51, 0.0 }
 0x1a8   : > { %v12453_v45 = vpack.c.bf16 %v2383_v34, %v2382_v20 }
 0x1a9   : > { %v12455_v56 = vpack.c.bf16 %v2381_v42, %v2380_v2  ;;  %v10065_v17 = vpop.f32.mrb[96].mxu1 }
 0x1aa   : > { %v2314_v44 = vadd.f32 %v12261_v57, %v10065_v17  ;;  %v2305_v58 = vpop.f32.mrb[97].mxu1 }
 0x1ab   : > { %v2306_v32 = vadd.f32 %v12261_v57, %v2305_v58  ;;  %v10066_v60 = vpop.f32.mrb[98].mxu1 }
 0x1ac   : > { %10240 = vmatmul.mubr.msk.bf16.gmra.mrb[124].mxu0 %vm393_vm0, %v12114_v61  ;;  %10348 = vmatmul.mubr.msk.bf16.gmra.mrb[156].mxu1 %vm393_vm0, %v12114_v61  ;;  %v2386_v0 = vmax.f32 %v2314_v44, 0.0  ;;  %v2317_v63 = vadd.f32 %v12261_v57, %v10066_v60  ;;  %v2308_v31 = vpop.f32.mrb[99].mxu1 }
 0x1ad   : > { %10243 = vmatprep.mubr.msk.bf16.mxu0 %vm393_vm0, %v12130_v53  ;;  %10351 = vmatprep.mubr.msk.bf16.mxu1 %vm393_vm0, %v12130_v53  ;;  %v2384_v5 = vmax.f32 %v2306_v32, 0.0  ;;  %v2309_v59 = vadd.f32 %v12261_v57, %v2308_v31 }
 0x1ae   : > { %v2387_v35 = vmax.f32 %v2317_v63, 0.0 }
 0x1af   : > { %v2385_v55 = vmax.f32 %v2309_v59, 0.0 }
 0x1b0   : > { %v12469_v20 = vpack.c.bf16 %v2387_v35, %v2386_v0 }
 0x1b1   : > { %v12471_v39 = vpack.c.bf16 %v2385_v55, %v2384_v5  ;;  %v10069_v61 = vpop.f32.mrb[100].mxu1 }
 0x1b2   : > { %v2330_v37 = vadd.f32 %v12261_v57, %v10069_v61  ;;  %v2321_v2 = vpop.f32.mrb[101].mxu1 }
 0x1b3   : > { %v2322_v51 = vadd.f32 %v12261_v57, %v2321_v2  ;;  %v10070_v34 = vpop.f32.mrb[102].mxu1 }
 0x1b4   : > { %10244 = vmatmul.mubr.msk.bf16.gmra.mrb[128].mxu0 %vm393_vm0, %v12128_v48  ;;  %10352 = vmatmul.mubr.msk.bf16.gmra.mrb[160].mxu1 %vm393_vm0, %v12128_v48  ;;  %v2390_v53 = vmax.f32 %v2330_v37, 0.0  ;;  %v2333_v42 = vadd.f32 %v12261_v57, %v10070_v34  ;;  %v2324_v17 = vpop.f32.mrb[103].mxu1 }
 0x1b5   : > { %10247 = vmatprep.mubr.msk.bf16.mxu0 %vm393_vm0, %v12144_v43  ;;  %10355 = vmatprep.mubr.msk.bf16.mxu1 %vm393_vm0, %v12144_v43  ;;  %v2388_v44 = vmax.f32 %v2322_v51, 0.0  ;;  %v2325_v58 = vadd.f32 %v12261_v57, %v2324_v17 }
 0x1b6   : > { %v2391_v32 = vmax.f32 %v2333_v42, 0.0 }
 0x1b7   : > { %v2389_v60 = vmax.f32 %v2325_v58, 0.0 }
 0x1b8   : > { %v12485_v0 = vpack.c.bf16 %v2391_v32, %v2390_v53 }
 0x1b9   : > { %v12487_v63 = vpack.c.bf16 %v2389_v60, %v2388_v44  ;;  %v10073_v48 = vpop.f32.mrb[104].mxu1 }
 0x1ba   : > { %v2346_v31 = vadd.f32 %v12261_v57, %v10073_v48  ;;  %v2337_v5 = vpop.f32.mrb[105].mxu1 }
 0x1bb   : > { %v2338_v59 = vadd.f32 %v12261_v57, %v2337_v5  ;;  %v10074_v35 = vpop.f32.mrb[106].mxu1 }
 0x1bc   : > { %10248 = vmatmul.mubr.msk.bf16.gmra.mrb[132].mxu0 %vm393_vm0, %v12142_v30  ;;  %10356 = vmatmul.mubr.msk.bf16.gmra.mrb[164].mxu1 %vm393_vm0, %v12142_v30  ;;  %v2394_v43 = vmax.f32 %v2346_v31, 0.0  ;;  %v2349_v55 = vadd.f32 %v12261_v57, %v10074_v35  ;;  %v2340_v61 = vpop.f32.mrb[107].mxu1 }
 0x1bd   : > { %10251 = vmatprep.mubr.msk.bf16.mxu0 %vm393_vm0, %v12158_v26  ;;  %10359 = vmatprep.mubr.msk.bf16.mxu1 %vm393_vm0, %v12158_v26  ;;  %v2392_v37 = vmax.f32 %v2338_v59, 0.0  ;;  %v2341_v2 = vadd.f32 %v12261_v57, %v2340_v61 }
 0x1be   : > { %v2395_v51 = vmax.f32 %v2349_v55, 0.0 }
 0x1bf   : > { %v2393_v34 = vmax.f32 %v2341_v2, 0.0 }
 0x1c0   : > { %v12501_v53 = vpack.c.bf16 %v2395_v51, %v2394_v43 }
 0x1c1   : > { %v12503_v42 = vpack.c.bf16 %v2393_v34, %v2392_v37  ;;  %v10077_v30 = vpop.f32.mrb[108].mxu1 }
 0x1c2   : > { %v2362_v17 = vadd.f32 %v12261_v57, %v10077_v30  ;;  %v2353_v44 = vpop.f32.mrb[109].mxu1 }
 0x1c3   : > { %v2354_v58 = vadd.f32 %v12261_v57, %v2353_v44  ;;  %v10078_v32 = vpop.f32.mrb[110].mxu1 }
 0x1c4   : > { %10252 = vmatmul.mubr.msk.bf16.gmra.mrb[136].mxu0 %vm393_vm0, %v12156_v23  ;;  %10360 = vmatmul.mubr.msk.bf16.gmra.mrb[168].mxu1 %vm393_vm0, %v12156_v23  ;;  %v2398_v26 = vmax.f32 %v2362_v17, 0.0  ;;  %v2365_v60 = vadd.f32 %v12261_v57, %v10078_v32  ;;  %v2356_v48 = vpop.f32.mrb[111].mxu1 }
 0x1c5   : > { %10255 = vmatprep.mubr.msk.bf16.mxu0 %vm393_vm0, %v12178_v22  ;;  %10363 = vmatprep.mubr.msk.bf16.mxu1 %vm393_vm0, %v12178_v22  ;;  %v2396_v31 = vmax.f32 %v2354_v58, 0.0  ;;  %v2357_v5 = vadd.f32 %v12261_v57, %v2356_v48 }
 0x1c6   : > { %v2399_v59 = vmax.f32 %v2365_v60, 0.0 }
 0x1c7   : > { %v2397_v35 = vmax.f32 %v2357_v5, 0.0 }
 0x1c8   : > { %v12517_v43 = vpack.c.bf16 %v2399_v59, %v2398_v26 }
 0x1c9   : > { %v12519_v55 = vpack.c.bf16 %v2397_v35, %v2396_v31  ;;  %v10121_v23 = vpop.f32.mrb[112].mxu1 }
 0x1ca   : > { %v2956_v61 = vadd.f32 %v12261_v57, %v10121_v23  ;;  %v2947_v37 = vpop.f32.mrb[113].mxu1 }
 0x1cb   : > { %v2948_v2 = vadd.f32 %v12261_v57, %v2947_v37  ;;  %v10122_v51 = vpop.f32.mrb[114].mxu1 }
 0x1cc   : > { %10256 = vmatmul.mubr.msk.bf16.gmra.mrb[140].mxu0 %vm393_vm0, %v12174_v15  ;;  %10364 = vmatmul.mubr.msk.bf16.gmra.mrb[172].mxu1 %vm393_vm0, %v12174_v15  ;;  %v3076_v22 = vmax.f32 %v2956_v61, 0.0  ;;  %v2959_v34 = vadd.f32 %v12261_v57, %v10122_v51  ;;  %v2950_v30 = vpop.f32.mrb[115].mxu1 }
 0x1cd   : > { %10263 = vmatprep.mubr.msk.bf16.mxu0 %vm393_vm0, %v12176_v18  ;;  %10371 = vmatprep.mubr.msk.bf16.mxu1 %vm393_vm0, %v12217_v19  ;;  %v3074_v17 = vmax.f32 %v2948_v2, 0.0  ;;  %v2951_v44 = vadd.f32 %v12261_v57, %v2950_v30  ;;  %v12560_v30 = vld [vmem:[%s14104_s2 + $0x20] sm:$0xff]  }
 0x1ce   : > { %v3077_v58 = vmax.f32 %v2959_v34, 0.0 }
 0x1cf   : > { %v3075_v32 = vmax.f32 %v2951_v44, 0.0 }
 0x1d0   : > { %v12533_v26 = vpack.c.bf16 %v3077_v58, %v3076_v22 }
 0x1d1   : > { %v12535_v60 = vpack.c.bf16 %v3075_v32, %v3074_v17  ;;  %v10125_v15 = vpop.f32.mrb[116].mxu1 }
 0x1d2   : > { %14121 = vst [vmem:[#allocation9_spill] sm:$0xff] %v12533_v26  ;;  %v2972_v48 = vadd.f32 %v12261_v57, %v10125_v15  ;;  %v2963_v31 = vpop.f32.mrb[117].mxu1 }
 0x1d3   : > { %14122 = vst [vmem:[#allocation10_spill] sm:$0xff] %v12535_v60  ;;  %v2964_v5 = vadd.f32 %v12261_v57, %v2963_v31  ;;  %v10126_v59 = vpop.f32.mrb[118].mxu1 }
 0x1d4   : > { %10264 = vmatmul.mubr.msk.bf16.vlgmr.msra.gmra.mrb[112].mxu0 %vm393_vm0, %v12172_v14  ;;  %10372 = vmatmul.mubr.msk.bf16.vlgmr.msra.gmra.mrb[144].mxu1 %vm393_vm0, %v12212_v10  ;;  %v3080_v18 = vmax.f32 %v2972_v48, 0.0  ;;  %v2975_v35 = vadd.f32 %v12261_v57, %v10126_v59  ;;  %v2966_v23 = vpop.f32.mrb[119].mxu1 }
 0x1d5   : > { %10267 = vmatprep.mubr.msk.bf16.mxu0 %vm393_vm0, %v12214_v11  ;;  %10404 = vmatpush3.bf16.msra.mxu1 %v12208_v36  ;;  %v3078_v61 = vmax.f32 %v2964_v5, 0.0  ;;  %v2967_v37 = vadd.f32 %v12261_v57, %v2966_v23 }
 0x1d6   : > { %10375 = vmatprep.mubr.msk.bf16.mxu1 %vm393_vm0, %v12244_v25  ;;  %v3081_v2 = vmax.f32 %v2975_v35, 0.0  ;;  %10405 = vmatprep.subr.bf16.mxu1 %v12407_v54 }
 0x1d7   : > { %v3079_v14 = vmax.f32 %v2967_v37, 0.0 }
 0x1d8   : > { %v12551_v51 = vpack.c.bf16 %v3081_v2, %v3080_v18 }
 0x1d9   : > { %v12553_v22 = vpack.c.bf16 %v3079_v14, %v3078_v61  ;;  %v10129_v34 = vpop.f32.mrb[120].mxu1  ;;  %10406 = vmatpush3.bf16.msra.mxu1 %v12407_v54 }
 0x1da   : > { %14123 = vst [vmem:[#allocation11_spill] sm:$0xff] %v12551_v51  ;;  %v2988_v11 = vadd.f32 %v12261_v57, %v10129_v34  ;;  %v2979_v36 = vpop.f32.mrb[121].mxu1  ;;  %10507 = vmatprep.subr.bf16.mxu1 %v12560_v30 }
 0x1db   : > { %14124 = vst [vmem:[#allocation12_spill] sm:$0xff] %v12553_v22  ;;  %v2980_v17 = vadd.f32 %v12261_v57, %v2979_v36  ;;  %v10130_v44 = vpop.f32.mrb[122].mxu1 }
 0x1dc   : > { %10268 = vmatmul.mubr.msk.bf16.gmra.mrb[116].mxu0 %vm393_vm0, %v12210_v8  ;;  %10376 = vmatmul.mubr.msk.bf16.gmra.mrb[148].mxu1 %vm393_vm0, %v12240_v9  ;;  %v3084_v54 = vmax.f32 %v2988_v11, 0.0  ;;  %v2991_v58 = vadd.f32 %v12261_v57, %v10130_v44  ;;  %v2982_v32 = vpop.f32.mrb[123].mxu1 }
 0x1dd   : > { %10271 = vmatprep.mubr.msk.bf16.mxu0 %vm393_vm0, %v12242_v12  ;;  %10379 = vmatprep.mubr.msk.bf16.mxu1 %vm393_vm0, %v12273_v33  ;;  %v3082_v15 = vmax.f32 %v2980_v17, 0.0  ;;  %v2983_v48 = vadd.f32 %v12261_v57, %v2982_v32 }
 0x1de   : > { %v3085_v31 = vmax.f32 %v2991_v58, 0.0 }
 0x1df   : > { %v3083_v5 = vmax.f32 %v2983_v48, 0.0 }
 0x1e0   : > { %v12574_v59 = vpack.c.bf16 %v3085_v31, %v3084_v54 }
 0x1e1   : > { %v12576_v8 = vpack.c.bf16 %v3083_v5, %v3082_v15  ;;  %v10133_v18 = vpop.f32.mrb[124].mxu1 }
 0x1e2   : > { %14125 = vst [vmem:[#allocation13_spill] sm:$0xff] %v12574_v59  ;;  %v3004_v35 = vadd.f32 %v12261_v57, %v10133_v18  ;;  %v2995_v23 = vpop.f32.mrb[125].mxu1  ;;  %v14129_v18 = vld [vmem:[#allocation3_spill] sm:$0xff] }
 0x1e3   : > { %14126 = vst [vmem:[#allocation14_spill] sm:$0xff] %v12576_v8  ;;  %v2996_v61 = vadd.f32 %v12261_v57, %v2995_v23  ;;  %v10134_v37 = vpop.f32.mrb[126].mxu1 }
 0x1e4   : > { %10272 = vmatmul.mubr.msk.bf16.gmra.mrb[120].mxu0 %vm393_vm0, %v12238_v7  ;;  %10380 = vmatmul.mubr.msk.bf16.gmra.mrb[152].mxu1 %vm393_vm0, %v12269_v27  ;;  %v3088_v12 = vmax.f32 %v3004_v35, 0.0  ;;  %v3007_v2 = vadd.f32 %v12261_v57, %v10134_v37  ;;  %v2998_v14 = vpop.f32.mrb[127].mxu1 }
 0x1e5   : > { %10275 = vmatprep.mubr.msk.bf16.mxu0 %vm393_vm0, %v12271_v28  ;;  %10383 = vmatprep.mubr.msk.bf16.mxu1 %vm393_vm0, %v12297_v52  ;;  %v3086_v34 = vmax.f32 %v2996_v61, 0.0  ;;  %v2999_v11 = vadd.f32 %v12261_v57, %v2998_v14 }
 0x1e6   : > { %v3089_v36 = vmax.f32 %v3007_v2, 0.0 }
 0x1e7   : > { %v3087_v17 = vmax.f32 %v2999_v11, 0.0 }
 0x1e8   : > { %v12590_v44 = vpack.c.bf16 %v3089_v36, %v3088_v12 }
 0x1e9   : > { %v12592_v7 = vpack.c.bf16 %v3087_v17, %v3086_v34  ;;  %v10137_v54 = vpop.f32.mrb[128].mxu1  ;;  %v14132_v17 = vld [vmem:[#allocation2_spill] sm:$0xff] }
 0x1ea   : > { %14127 = vst [vmem:[#allocation15_spill] sm:$0xff] %v12590_v44  ;;  %v3020_v58 = vadd.f32 %v12261_v57, %v10137_v54  ;;  %v3011_v32 = vpop.f32.mrb[129].mxu1 }
 0x1eb   : > { %14128 = vst [vmem:[#allocation16_spill] sm:$0xff] %v12592_v7  ;;  %v3012_v15 = vadd.f32 %v12261_v57, %v3011_v32  ;;  %v10138_v48 = vpop.f32.mrb[130].mxu1 }
 0x1ec   : > { %10276 = vmatmul.mubr.msk.bf16.gmra.mrb[124].mxu0 %vm393_vm0, %v12267_v24  ;;  %10384 = vmatmul.mubr.msk.bf16.gmra.mrb[156].mxu1 %vm393_vm0, %v12293_v1  ;;  %v3092_v28 = vmax.f32 %v3020_v58, 0.0  ;;  %v3023_v31 = vadd.f32 %v12261_v57, %v10138_v48  ;;  %v3014_v5 = vpop.f32.mrb[131].mxu1 }
 0x1ed   : > { %10279 = vmatprep.mubr.msk.bf16.mxu0 %vm393_vm0, %v14129_v18  ;;  %10387 = vmatprep.mubr.msk.bf16.mxu1 %vm393_vm0, %v12321_v62  ;;  %v3090_v35 = vmax.f32 %v3012_v15, 0.0  ;;  %v3015_v23 = vadd.f32 %v12261_v57, %v3014_v5  ;;  %v14133_v15 = vld [vmem:[#allocation5_spill] sm:$0xff] }
 0x1ee   : > { %v3093_v61 = vmax.f32 %v3023_v31, 0.0 }
 0x1ef   : > { %v3091_v37 = vmax.f32 %v3015_v23, 0.0 }
 0x1f0   : > { %v12606_v12 = vpack.c.bf16 %v3093_v61, %v3092_v28 }
 0x1f1   : > { %v12608_v24 = vpack.c.bf16 %v3091_v37, %v3090_v35  ;;  %v10141_v2 = vpop.f32.mrb[132].mxu1 }
 0x1f2   : > { %14130 = vst [vmem:[#allocation3_spill] sm:$0xff] %v12606_v12  ;;  %v3036_v14 = vadd.f32 %v12261_v57, %v10141_v2  ;;  %v3027_v34 = vpop.f32.mrb[133].mxu1  ;;  %v14143_v12 = vld [vmem:[#allocation8_spill] sm:$0xff] }
 0x1f3   : > { %14131 = vst [vmem:[#allocation17_spill] sm:$0xff] %v12608_v24  ;;  %v3028_v11 = vadd.f32 %v12261_v57, %v3027_v34  ;;  %v10142_v36 = vpop.f32.mrb[134].mxu1  ;;  %v14136_v34 = vld [vmem:[#allocation4_spill] sm:$0xff] }
 0x1f4   : > { %10280 = vmatmul.mubr.msk.bf16.gmra.mrb[128].mxu0 %vm393_vm0, %v14132_v17  ;;  %10388 = vmatmul.mubr.msk.bf16.gmra.mrb[160].mxu1 %vm393_vm0, %v12317_v16  ;;  %v3096_v54 = vmax.f32 %v3036_v14, 0.0  ;;  %v3039_v58 = vadd.f32 %v12261_v57, %v10142_v36  ;;  %v3030_v32 = vpop.f32.mrb[135].mxu1 }
 0x1f5   : > { %10283 = vmatprep.mubr.msk.bf16.mxu0 %vm393_vm0, %v14133_v15  ;;  %10391 = vmatprep.mubr.msk.bf16.mxu1 %vm393_vm0, %v12345_v40  ;;  %v3094_v48 = vmax.f32 %v3028_v11, 0.0  ;;  %v3031_v28 = vadd.f32 %v12261_v57, %v3030_v32 }
 0x1f6   : > { %v3097_v31 = vmax.f32 %v3039_v58, 0.0 }
 0x1f7   : > { %v3095_v5 = vmax.f32 %v3031_v28, 0.0 }
 0x1f8   : > { %v12622_v18 = vpack.c.bf16 %v3097_v31, %v3096_v54  ;;  %v14137_v54 = vld [vmem:[#allocation7_spill] sm:$0xff] }
 0x1f9   : > { %v12624_v35 = vpack.c.bf16 %v3095_v5, %v3094_v48  ;;  %v10145_v23 = vpop.f32.mrb[136].mxu1 }
 0x1fa   : > { %14134 = vst [vmem:[#allocation2_spill] sm:$0xff] %v12622_v18  ;;  %v3052_v61 = vadd.f32 %v12261_v57, %v10145_v23  ;;  %v3043_v37 = vpop.f32.mrb[137].mxu1 }
 0x1fb   : > { %14135 = vst [vmem:[#allocation5_spill] sm:$0xff] %v12624_v35  ;;  %v3044_v2 = vadd.f32 %v12261_v57, %v3043_v37  ;;  %v10146_v14 = vpop.f32.mrb[138].mxu1 }
 0x1fc   : > { %10284 = vmatmul.mubr.msk.bf16.gmra.mrb[132].mxu0 %vm393_vm0, %v14136_v34  ;;  %10392 = vmatmul.mubr.msk.bf16.gmra.mrb[164].mxu1 %vm393_vm0, %v12341_v6  ;;  %v3100_v11 = vmax.f32 %v3052_v61, 0.0  ;;  %v3055_v36 = vadd.f32 %v12261_v57, %v10146_v14  ;;  %v3046_v17 = vpop.f32.mrb[139].mxu1  ;;  %v14140_v34 = vld [vmem:[#allocation6_spill] sm:$0xff] }
 0x1fd   : > { %10287 = vmatprep.mubr.msk.bf16.mxu0 %vm393_vm0, %v14137_v54  ;;  %10395 = vmatprep.mubr.msk.bf16.mxu1 %vm393_vm0, %v12369_v47  ;;  %v3098_v58 = vmax.f32 %v3044_v2, 0.0  ;;  %v3047_v32 = vadd.f32 %v12261_v57, %v3046_v17 }
 0x1fe   : > { %v3101_v15 = vmax.f32 %v3055_v36, 0.0 }
 0x1ff   : > { %v3099_v48 = vmax.f32 %v3047_v32, 0.0 }
 0x200   : > { %v12638_v28 = vpack.c.bf16 %v3101_v15, %v3100_v11 }
 0x201   : > { %v12640_v31 = vpack.c.bf16 %v3099_v48, %v3098_v58  ;;  %v10149_v5 = vpop.f32.mrb[140].mxu1  ;;  %v10085_v58 = vpop.f32.mrb[80].mxu0 }
 0x202   : > { %14138 = vst [vmem:[#allocation4_spill] sm:$0xff] %v12638_v28  ;;  %v3068_v23 = vadd.f32 %v12261_v57, %v10149_v5  ;;  %v3059_v61 = vpop.f32.mrb[141].mxu1  ;;  %v2603_v15 = vadd.f32 %v12261_v57, %v10085_v58  ;;  %v2594_v48 = vpop.f32.mrb[81].mxu0 }
 0x203   : > { %14139 = vst [vmem:[#allocation7_spill] sm:$0xff] %v12640_v31  ;;  %v3060_v37 = vadd.f32 %v12261_v57, %v3059_v61  ;;  %v10150_v14 = vpop.f32.mrb[142].mxu1  ;;  %v10086_v61 = vpop.f32.mrb[82].mxu0 }
 0x204   : > { %10288 = vmatmul.mubr.msk.bf16.gmra.mrb[136].mxu0 %vm393_vm0, %v14140_v34  ;;  %10396 = vmatmul.mubr.msk.bf16.gmra.mrb[168].mxu1 %vm393_vm0, %v12365_v38  ;;  %v3104_v2 = vmax.f32 %v3068_v23, 0.0  ;;  %v3071_v36 = vadd.f32 %v12261_v57, %v10150_v14  ;;  %v3062_v11 = vpop.f32.mrb[143].mxu1  ;;  %v2595_v23 = vadd.f32 %v12261_v57, %v2594_v48  ;;  %v2723_v34 = vmax.f32 %v2603_v15, 0.0  ;;  %v2597_v28 = vpop.f32.mrb[83].mxu0 }
 0x205   : > { %10291 = vmatprep.mubr.msk.bf16.mxu0 %vm393_vm0, %v12367_v13  ;;  %10399 = vmatprep.mubr.msk.bf16.mxu1 %vm393_vm0, %v12395_v46  ;;  %v3102_v17 = vmax.f32 %v3060_v37, 0.0  ;;  %v3063_v54 = vadd.f32 %v12261_v57, %v3062_v11  ;;  %v2606_v13 = vadd.f32 %v12261_v57, %v10086_v61  ;;  %v2598_v11 = vadd.f32 %v12261_v57, %v2597_v28  ;;  %v10089_v18 = vpop.f32.mrb[84].mxu0 }
 0x206   : > { %v3105_v32 = vmax.f32 %v3071_v36, 0.0  ;;  %v2721_v37 = vmax.f32 %v2595_v23, 0.0  ;;  %v2619_v58 = vadd.f32 %v12261_v57, %v10089_v18  ;;  %v2610_v35 = vpop.f32.mrb[85].mxu0 }
 0x207   : > { %v3103_v5 = vmax.f32 %v3063_v54, 0.0  ;;  %v2724_v36 = vmax.f32 %v2606_v13, 0.0  ;;  %v2722_v54 = vmax.f32 %v2598_v11, 0.0  ;;  %v2611_v48 = vadd.f32 %v12261_v57, %v2610_v35 }
 0x208   : > { %v12656_v14 = vpack.c.bf16 %v3105_v32, %v3104_v2  ;;  %v2727_v32 = vmax.f32 %v2619_v58, 0.0 }
 0x209   : > { %v12659_v31 = vpack.c.bf16 %v3103_v5, %v3102_v17  ;;  %v12668_v2 = vpack.c.bf16 %v2724_v36, %v2723_v34  ;;  %v10090_v17 = vpop.f32.mrb[86].mxu0  ;;  %v12672_v28 = vpack.c.bf16 %v2722_v54, %v2721_v37  ;;  %v2725_v5 = vmax.f32 %v2611_v48, 0.0 }
 0x20a   : > { %14141 = vst [vmem:[#allocation6_spill] sm:$0xff] %v12656_v14  ;;  %v2622_v18 = vadd.f32 %v12261_v57, %v10090_v17  ;;  %v2613_v15 = vpop.f32.mrb[87].mxu0 }
 0x20b   : > { %14142 = vst [vmem:[#allocation18_spill] sm:$0xff] %v12659_v31  ;;  %v2614_v35 = vadd.f32 %v12261_v57, %v2613_v15  ;;  %v10093_v23 = vpop.f32.mrb[88].mxu0 }
 0x20c   : > { %10292 = vmatmul.mubr.msk.bf16.gmra.mrb[140].mxu0 %vm393_vm0, %v14143_v12  ;;  %10400 = vmatmul.mubr.msk.bf16.gmra.mrb[172].mxu1 %vm393_vm0, %v12391_v21  ;;  %v2728_v12 = vmax.f32 %v2622_v18, 0.0  ;;  %v2635_v61 = vadd.f32 %v12261_v57, %v10093_v23  ;;  %v2626_v13 = vpop.f32.mrb[89].mxu0 }
 0x20d   : > { %10407 = vmatprep.mubr.msk.bf16.mxu1 %vm393_vm0, %v12393_v41  ;;  %v2726_v34 = vmax.f32 %v2614_v35, 0.0  ;;  %v2627_v11 = vadd.f32 %v12261_v57, %v2626_v13  ;;  %v10094_v36 = vpop.f32.mrb[90].mxu0 }
 0x20e   : > { %v12678_v14 = vpack.c.bf16 %v2728_v12, %v2727_v32  ;;  %v2731_v37 = vmax.f32 %v2635_v61, 0.0  ;;  %v2638_v58 = vadd.f32 %v12261_v57, %v10094_v36  ;;  %v2629_v54 = vpop.f32.mrb[91].mxu0  ;;  %v12702_v36 = vld [vmem:[%s14105_s3] ss:$0 sm:$0xff] }
 0x20f   : > { %v12681_v17 = vpack.c.bf16 %v2726_v34, %v2725_v5  ;;  %v2729_v48 = vmax.f32 %v2627_v11, 0.0  ;;  %v2630_v15 = vadd.f32 %v12261_v57, %v2629_v54  ;;  %v10097_v31 = vpop.f32.mrb[92].mxu0 }
 0x210   : > { %v2732_v18 = vmax.f32 %v2638_v58, 0.0  ;;  %v2651_v23 = vadd.f32 %v12261_v57, %v10097_v31  ;;  %v2642_v24 = vpop.f32.mrb[93].mxu0  ;;  %v11587_v31 = vld [vmem:[%s14104_s2 + $0x28] sm:$0xff]  }
 0x211   : > { %v2730_v35 = vmax.f32 %v2630_v15, 0.0  ;;  %v2643_v32 = vadd.f32 %v12261_v57, %v2642_v24  ;;  %v10098_v12 = vpop.f32.mrb[94].mxu0 }
 0x212   : > { %v12691_v5 = vpack.c.bf16 %v2732_v18, %v2731_v37  ;;  %v2735_v61 = vmax.f32 %v2651_v23, 0.0  ;;  %v2654_v13 = vadd.f32 %v12261_v57, %v10098_v12  ;;  %v2645_v34 = vpop.f32.mrb[95].mxu0 }
 0x213   : > { %v12697_v11 = vpack.c.bf16 %v2730_v35, %v2729_v48  ;;  %v2733_v24 = vmax.f32 %v2643_v32, 0.0  ;;  %v10101_v37 = vpop.f32.mrb[96].mxu0 }
 0x214   : > { %10408 = vmatmul.mubr.msk.bf16.vlgmr.msra.gmra.mrb[144].mxu1 %vm393_vm0, %v12389_v4  ;;  %v2736_v58 = vmax.f32 %v2654_v13, 0.0  ;;  %v2667_v57 = vadd.f32 %v12702_v36, %v10101_v37  ;;  %v2658_v54 = vpop.f32.mrb[97].mxu0 }
 0x215   : > { %10411 = vmatprep.mubr.msk.bf16.mxu1 %vm393_vm0, %v12420_v49  ;;  %10508 = vmatpush3.bf16.msra.mxu1 %v12560_v30  ;;  %v2646_v30 = vadd.f32 %v12702_v36, %v2645_v34  ;;  %v2659_v18 = vadd.f32 %v12702_v36, %v2658_v54  ;;  %v10102_v23 = vpop.f32.mrb[98].mxu0  ;;  %v12713_v34 = vld [vmem:[%s14104_s2 + $0x10] sm:$0xff]  }
 0x216   : > { %10509 = vmatprep.subr.bf16.mxu1 %v11587_v31  ;;  %v12707_v48 = vpack.c.bf16 %v2736_v58, %v2735_v61  ;;  %v2739_v35 = vmax.f32 %v2667_v57, 0.0  ;;  %v2670_v32 = vadd.f32 %v12702_v36, %v10102_v23  ;;  %v2661_v12 = vpop.f32.mrb[99].mxu0 }
 0x217   : > { %v2734_v15 = vmax.f32 %v2646_v30, 0.0  ;;  %v2737_v30 = vmax.f32 %v2659_v18, 0.0  ;;  %v2662_v37 = vadd.f32 %v12702_v36, %v2661_v12  ;;  %v10105_v54 = vpop.f32.mrb[100].mxu0 }
 0x218   : > { %v2683_v61 = vadd.f32 %v12702_v36, %v10105_v54  ;;  %v2674_v58 = vpop.f32.mrb[101].mxu0 }
 0x219   : > { %10510 = vmatpush3.bf16.msra.mxu1 %v11587_v31  ;;  %v12716_v13 = vpack.c.bf16 %v2734_v15, %v2733_v24  ;;  %v2740_v31 = vmax.f32 %v2670_v32, 0.0  ;;  %v2738_v57 = vmax.f32 %v2662_v37, 0.0  ;;  %v2675_v23 = vadd.f32 %v12702_v36, %v2674_v58  ;;  %v10106_v44 = vpop.f32.mrb[102].mxu0 }
 0x21a   : > { %10543 = vmatprep.subr.bf16.mxu1 %v12713_v34  ;;  %v2743_v15 = vmax.f32 %v2683_v61, 0.0  ;;  %v2686_v18 = vadd.f32 %v12702_v36, %v10106_v44  ;;  %v2677_v12 = vpop.f32.mrb[103].mxu0 }
 0x21b   : > { %v12725_v24 = vpack.c.bf16 %v2740_v31, %v2739_v35  ;;  %v12728_v32 = vpack.c.bf16 %v2738_v57, %v2737_v30  ;;  %v2741_v54 = vmax.f32 %v2675_v23, 0.0  ;;  %v2678_v7 = vadd.f32 %v12702_v36, %v2677_v12  ;;  %v10109_v59 = vpop.f32.mrb[104].mxu0 }
 0x21c   : > { %10412 = vmatmul.mubr.msk.bf16.gmra.mrb[148].mxu1 %vm393_vm0, %v12417_v29  ;;  %v2744_v8 = vmax.f32 %v2686_v18, 0.0  ;;  %v2699_v37 = vadd.f32 %v12702_v36, %v10109_v59  ;;  %v2690_v58 = vpop.f32.mrb[105].mxu0 }
 0x21d   : > { %10415 = vmatprep.mubr.msk.bf16.mxu1 %vm393_vm0, %v12439_v50  ;;  %v2742_v51 = vmax.f32 %v2678_v7, 0.0  ;;  %v2691_v22 = vadd.f32 %v12702_v36, %v2690_v58  ;;  %v10110_v26 = vpop.f32.mrb[106].mxu0 }
 0x21e   : > { %v12733_v35 = vpack.c.bf16 %v2744_v8, %v2743_v15  ;;  %v2747_v31 = vmax.f32 %v2699_v37, 0.0  ;;  %v2702_v44 = vadd.f32 %v12702_v36, %v10110_v26  ;;  %v2693_v61 = vpop.f32.mrb[107].mxu0 }
 0x21f   : > { %v12736_v30 = vpack.c.bf16 %v2742_v51, %v2741_v54  ;;  %v2745_v57 = vmax.f32 %v2691_v22, 0.0  ;;  %v2694_v23 = vadd.f32 %v12702_v36, %v2693_v61  ;;  %v10113_v12 = vpop.f32.mrb[108].mxu0 }
 0x220   : > { %v2748_v18 = vmax.f32 %v2702_v44, 0.0  ;;  %v2715_v59 = vadd.f32 %v12702_v36, %v10113_v12  ;;  %v2706_v60 = vpop.f32.mrb[109].mxu0 }
 0x221   : > { %v2746_v7 = vmax.f32 %v2694_v23, 0.0  ;;  %v2707_v8 = vadd.f32 %v12702_v36, %v2706_v60  ;;  %v10114_v15 = vpop.f32.mrb[110].mxu0 }
 0x222   : > { %v12745_v26 = vpack.c.bf16 %v2748_v18, %v2747_v31  ;;  %v2751_v51 = vmax.f32 %v2715_v59, 0.0  ;;  %v2718_v22 = vadd.f32 %v12702_v36, %v10114_v15  ;;  %v2709_v54 = vpop.f32.mrb[111].mxu0  ;;  %v11591_v31 = vld [vmem:[%s14104_s2 + $0x30] sm:$0xff]  }
 0x223   : > { %v12748_v37 = vpack.c.bf16 %v2746_v7, %v2745_v57  ;;  %v2749_v58 = vmax.f32 %v2707_v8, 0.0  ;;  %v2710_v44 = vadd.f32 %v12702_v36, %v2709_v54  ;;  %v11590_v36 = vld [vmem:[%s14104_s2 + $0x18] sm:$0xff]  }
 0x224   : > { %10416 = vmatmul.mubr.msk.bf16.gmra.mrb[152].mxu1 %vm393_vm0, %v12437_v3  ;;  %v2752_v61 = vmax.f32 %v2718_v22, 0.0 }
 0x225   : > { %10419 = vmatprep.mubr.msk.bf16.mxu1 %vm393_vm0, %v12455_v56  ;;  %v2750_v12 = vmax.f32 %v2710_v44, 0.0 }
 0x226   : > { %v12751_v23 = vpack.c.bf16 %v2752_v61, %v2751_v51 }
 0x227   : > { %v12753_v60 = vpack.c.bf16 %v2750_v12, %v2749_v58 }
 0x22c   : > { %10420 = vmatmul.mubr.msk.bf16.gmra.mrb[156].mxu1 %vm393_vm0, %v12453_v45 }
 0x22d   : > { %10423 = vmatprep.mubr.msk.bf16.mxu1 %vm393_vm0, %v12471_v39 }
 0x234   : > { %10424 = vmatmul.mubr.msk.bf16.gmra.mrb[160].mxu1 %vm393_vm0, %v12469_v20 }
 0x235   : > { %10427 = vmatprep.mubr.msk.bf16.mxu1 %vm393_vm0, %v12487_v63 }
 0x23c   : > { %10428 = vmatmul.mubr.msk.bf16.gmra.mrb[164].mxu1 %vm393_vm0, %v12485_v0 }
 0x23d   : > { %10431 = vmatprep.mubr.msk.bf16.mxu1 %vm393_vm0, %v12503_v42 }
 0x244   : > { %10432 = vmatmul.mubr.msk.bf16.gmra.mrb[168].mxu1 %vm393_vm0, %v12501_v53 }
 0x245   : > { %10435 = vmatprep.mubr.msk.bf16.mxu1 %vm393_vm0, %v12519_v55 }
 0x24c   : > { %10436 = vmatmul.mubr.msk.bf16.gmra.mrb[172].mxu1 %vm393_vm0, %v12517_v43 }
 0x24d   : > { %10511 = vmatprep.mubr.msk.bf16.mxu1 %vm393_vm0, %v12393_v41  ;;  %v11592_v41 = vld [vmem:[%s14104_s2 + $0x38] sm:$0xff]  }
 0x254   : > { %10512 = vmatmul.mubr.msk.bf16.vlgmr.msra.gmra.mrb[176].mxu1 %vm393_vm0, %v12389_v4  ;;  %v11375_v4 = vld [vmem:[%s14104_s2 + $0x58] sm:$0xff]  }
 0x255   : > { %10515 = vmatprep.mubr.msk.bf16.mxu1 %vm393_vm0, %v12420_v49  ;;  %10544 = vmatpush3.bf16.msra.mxu1 %v12713_v34 }
 0x256   : > { %10545 = vmatprep.subr.bf16.mxu1 %v11590_v36  ;;  %10439 = vmatprep.subr.bf16.mxu0 %v11375_v4 }
 0x257   : > { %10440 = vmatpush3.bf16.msra.mxu0 %v11375_v4 }
 0x259   : > { %10546 = vmatpush3.bf16.msra.mxu1 %v11590_v36 }
 0x25a   : > { %10579 = vmatprep.subr.bf16.mxu1 %v11591_v31 }
 0x25c   : > { %10516 = vmatmul.mubr.msk.bf16.gmra.mrb[180].mxu1 %vm393_vm0, %v12417_v29  ;;  %v12827_v29 = vld [vmem:[%s14104_s2 + $0x40] sm:$0xff]  }
 0x25d   : > { %10519 = vmatprep.mubr.msk.bf16.mxu1 %vm393_vm0, %v12439_v50 }
 0x264   : > { %10520 = vmatmul.mubr.msk.bf16.gmra.mrb[184].mxu1 %vm393_vm0, %v12437_v3 }
 0x265   : > { %10523 = vmatprep.mubr.msk.bf16.mxu1 %vm393_vm0, %v12455_v56 }
 0x26c   : > { %10524 = vmatmul.mubr.msk.bf16.gmra.mrb[188].mxu1 %vm393_vm0, %v12453_v45 }
 0x26d   : > { %10527 = vmatprep.mubr.msk.bf16.mxu1 %vm393_vm0, %v12471_v39 }
 0x274   : > { %10528 = vmatmul.mubr.msk.bf16.gmra.mrb[192].mxu1 %vm393_vm0, %v12469_v20 }
 0x275   : > { %10531 = vmatprep.mubr.msk.bf16.mxu1 %vm393_vm0, %v12487_v63 }
 0x27c   : > { %10532 = vmatmul.mubr.msk.bf16.gmra.mrb[196].mxu1 %vm393_vm0, %v12485_v0 }
 0x27d   : > { %10535 = vmatprep.mubr.msk.bf16.mxu1 %vm393_vm0, %v12503_v42 }
 0x284   : > { %10536 = vmatmul.mubr.msk.bf16.gmra.mrb[200].mxu1 %vm393_vm0, %v12501_v53 }
 0x285   : > { %10539 = vmatprep.mubr.msk.bf16.mxu1 %vm393_vm0, %v12519_v55 }
 0x28c   : > { %10540 = vmatmul.mubr.msk.bf16.gmra.mrb[204].mxu1 %vm393_vm0, %v12517_v43 }
 0x28d   : > { %10547 = vmatprep.mubr.msk.bf16.mxu1 %vm393_vm0, %v12217_v19 }
 0x294   : > { %10548 = vmatmul.mubr.msk.bf16.vlgmr.msra.gmra.mrb[176].mxu1 %vm393_vm0, %v12212_v10  ;;  %v12841_v10 = vld [vmem:[%s14105_s3 + $0x1] ss:$0 sm:$0xff] }
 0x295   : > { %10551 = vmatprep.mubr.msk.bf16.mxu1 %vm393_vm0, %v12244_v25  ;;  %10580 = vmatpush3.bf16.msra.mxu1 %v11591_v31 }
 0x296   : > { %10581 = vmatprep.subr.bf16.mxu1 %v11592_v41 }
 0x299   : > { %10582 = vmatpush3.bf16.msra.mxu1 %v11592_v41 }
 0x29a   : > { %10615 = vmatprep.subr.bf16.mxu1 %v12827_v29 }
 0x29c   : > { %10552 = vmatmul.mubr.msk.bf16.gmra.mrb[180].mxu1 %vm393_vm0, %v12240_v9 }
 0x29d   : > { %10555 = vmatprep.mubr.msk.bf16.mxu1 %vm393_vm0, %v12273_v33 }
 0x2a4   : > { %10556 = vmatmul.mubr.msk.bf16.gmra.mrb[184].mxu1 %vm393_vm0, %v12269_v27 }
 0x2a5   : > { %10559 = vmatprep.mubr.msk.bf16.mxu1 %vm393_vm0, %v12297_v52  ;;  %v12852_v52 = vld [vmem:[%s14104_s2 + $0x50] sm:$0xff]  }
 0x2a6   : > { %10473 = vmatprep.subr.bf16.mxu0 %v12852_v52 }
 0x2a7   : > { %v10265_v19 = vpop.f32.mrb[112].mxu0 }
 0x2a8   : > { %v4140_v25 = vadd.f32 %v10265_v19, %v12841_v10  ;;  %v3975_v49 = vpop.f32.mrb[113].mxu0 }
 0x2a9   : > { %v4138_v9 = vadd.f32 %v12841_v10, %v3975_v49  ;;  %v10266_v3 = vpop.f32.mrb[114].mxu0 }
 0x2aa   : > { %v4141_v33 = vadd.f32 %v10266_v3, %v12841_v10  ;;  %v3978_v50 = vpop.f32.mrb[115].mxu0  ;;  %v4172_v45 = vmax.f32 %v4140_v25, 0.0 }
 0x2ab   : > { %v4139_v27 = vadd.f32 %v12841_v10, %v3978_v50  ;;  %v4170_v20 = vmax.f32 %v4138_v9, 0.0 }
 0x2ac   : > { %v4173_v56 = vmax.f32 %v4141_v33, 0.0  ;;  %10560 = vmatmul.mubr.msk.bf16.gmra.mrb[188].mxu1 %vm393_vm0, %v12293_v1 }
 0x2ad   : > { %v4171_v39 = vmax.f32 %v4139_v27, 0.0  ;;  %10563 = vmatprep.mubr.msk.bf16.mxu1 %vm393_vm0, %v12321_v62 }
 0x2ae   : > { %v12856_v0 = vpack.c.bf16 %v4173_v56, %v4172_v45 }
 0x2af   : > { %v12859_v63 = vpack.c.bf16 %v4171_v39, %v4170_v20  ;;  %v10269_v53 = vpop.f32.mrb[116].mxu0 }
 0x2b0   : > { %v4144_v42 = vadd.f32 %v10269_v53, %v12841_v10  ;;  %v3991_v1 = vpop.f32.mrb[117].mxu0 }
 0x2b1   : > { %v4142_v43 = vadd.f32 %v12841_v10, %v3991_v1  ;;  %v10270_v55 = vpop.f32.mrb[118].mxu0 }
 0x2b2   : > { %v4145_v34 = vadd.f32 %v10270_v55, %v12841_v10  ;;  %v3994_v57 = vpop.f32.mrb[119].mxu0  ;;  %v4176_v59 = vmax.f32 %v4144_v42, 0.0 }
 0x2b3   : > { %v4143_v18 = vadd.f32 %v12841_v10, %v3994_v57  ;;  %v4174_v7 = vmax.f32 %v4142_v43, 0.0 }
 0x2b4   : > { %v4177_v62 = vmax.f32 %v4145_v34, 0.0  ;;  %10564 = vmatmul.mubr.msk.bf16.gmra.mrb[192].mxu1 %vm393_vm0, %v12317_v16 }
 0x2b5   : > { %v4175_v8 = vmax.f32 %v4143_v18, 0.0  ;;  %10567 = vmatprep.mubr.msk.bf16.mxu1 %vm393_vm0, %v12345_v40 }
 0x2b6   : > { %v12869_v15 = vpack.c.bf16 %v4177_v62, %v4176_v59 }
 0x2b7   : > { %v12871_v51 = vpack.c.bf16 %v4175_v8, %v4174_v7  ;;  %v10273_v22 = vpop.f32.mrb[120].mxu0 }
 0x2b8   : > { %v4148_v54 = vadd.f32 %v10273_v22, %v12841_v10  ;;  %v4007_v58 = vpop.f32.mrb[121].mxu0 }
 0x2b9   : > { %v4146_v44 = vadd.f32 %v12841_v10, %v4007_v58  ;;  %v10274_v61 = vpop.f32.mrb[122].mxu0 }
 0x2ba   : > { %v4149_v12 = vadd.f32 %v10274_v61, %v12841_v10  ;;  %v4010_v36 = vpop.f32.mrb[123].mxu0  ;;  %v4180_v31 = vmax.f32 %v4148_v54, 0.0 }
 0x2bb   : > { %v4147_v16 = vadd.f32 %v12841_v10, %v4010_v36  ;;  %v4178_v40 = vmax.f32 %v4146_v44, 0.0 }
 0x2bc   : > { %v4181_v4 = vmax.f32 %v4149_v12, 0.0  ;;  %10568 = vmatmul.mubr.msk.bf16.gmra.mrb[196].mxu1 %vm393_vm0, %v12341_v6 }
 0x2bd   : > { %v4179_v41 = vmax.f32 %v4147_v16, 0.0  ;;  %10571 = vmatprep.mubr.msk.bf16.mxu1 %vm393_vm0, %v12369_v47 }
 0x2be   : > { %v12881_v19 = vpack.c.bf16 %v4181_v4, %v4180_v31 }
 0x2bf   : > { %v12883_v25 = vpack.c.bf16 %v4179_v41, %v4178_v40  ;;  %v10277_v49 = vpop.f32.mrb[124].mxu0 }
 0x2c0   : > { %v4152_v9 = vadd.f32 %v10277_v49, %v12841_v10  ;;  %v4023_v3 = vpop.f32.mrb[125].mxu0 }
 0x2c1   : > { %v4150_v33 = vadd.f32 %v12841_v10, %v4023_v3  ;;  %v10278_v50 = vpop.f32.mrb[126].mxu0 }
 0x2c2   : > { %v4153_v27 = vadd.f32 %v10278_v50, %v12841_v10  ;;  %v4026_v45 = vpop.f32.mrb[127].mxu0  ;;  %v4184_v56 = vmax.f32 %v4152_v9, 0.0  ;;  %v11594_v9 = vld [vmem:[%s14104_s2 + $0x48] sm:$0xff]  }
 0x2c3   : > { %v4151_v6 = vadd.f32 %v12841_v10, %v4026_v45  ;;  %v4182_v47 = vmax.f32 %v4150_v33, 0.0 }
 0x2c4   : > { %v4185_v20 = vmax.f32 %v4153_v27, 0.0  ;;  %10572 = vmatmul.mubr.msk.bf16.gmra.mrb[200].mxu1 %vm393_vm0, %v12365_v38 }
 0x2c5   : > { %v4183_v39 = vmax.f32 %v4151_v6, 0.0  ;;  %10575 = vmatprep.mubr.msk.bf16.mxu1 %vm393_vm0, %v12395_v46 }
 0x2c6   : > { %v12893_v53 = vpack.c.bf16 %v4185_v20, %v4184_v56 }
 0x2c7   : > { %v12895_v42 = vpack.c.bf16 %v4183_v39, %v4182_v47  ;;  %v10281_v1 = vpop.f32.mrb[128].mxu0 }
 0x2c8   : > { %v4156_v43 = vadd.f32 %v10281_v1, %v12841_v10  ;;  %v4039_v55 = vpop.f32.mrb[129].mxu0 }
 0x2c9   : > { %v4154_v34 = vadd.f32 %v12841_v10, %v4039_v55  ;;  %v10282_v57 = vpop.f32.mrb[130].mxu0 }
 0x2ca   : > { %v4157_v18 = vadd.f32 %v10282_v57, %v12841_v10  ;;  %v4042_v59 = vpop.f32.mrb[131].mxu0  ;;  %v4188_v62 = vmax.f32 %v4156_v43, 0.0 }
 0x2cb   : > { %v4155_v38 = vadd.f32 %v12841_v10, %v4042_v59  ;;  %v4186_v46 = vmax.f32 %v4154_v34, 0.0 }
 0x2cc   : > { %v4189_v7 = vmax.f32 %v4157_v18, 0.0  ;;  %10576 = vmatmul.mubr.msk.bf16.gmra.mrb[204].mxu1 %vm393_vm0, %v12391_v21 }
 0x2cd   : > { %v4187_v8 = vmax.f32 %v4155_v38, 0.0  ;;  %10583 = vmatprep.mubr.msk.bf16.mxu1 %vm393_vm0, %v12672_v28 }
 0x2ce   : > { %v12905_v22 = vpack.c.bf16 %v4189_v7, %v4188_v62 }
 0x2cf   : > { %v12907_v54 = vpack.c.bf16 %v4187_v8, %v4186_v46  ;;  %v10285_v58 = vpop.f32.mrb[132].mxu0 }
 0x2d0   : > { %v4160_v44 = vadd.f32 %v10285_v58, %v12841_v10  ;;  %v4055_v61 = vpop.f32.mrb[133].mxu0 }
 0x2d1   : > { %v4158_v12 = vadd.f32 %v12841_v10, %v4055_v61  ;;  %v10286_v36 = vpop.f32.mrb[134].mxu0 }
 0x2d2   : > { %v4161_v16 = vadd.f32 %v10286_v36, %v12841_v10  ;;  %v4058_v31 = vpop.f32.mrb[135].mxu0  ;;  %v4192_v4 = vmax.f32 %v4160_v44, 0.0 }
 0x2d3   : > { %v4159_v21 = vadd.f32 %v12841_v10, %v4058_v31  ;;  %v4190_v28 = vmax.f32 %v4158_v12, 0.0 }
 0x2d4   : > { %v4193_v40 = vmax.f32 %v4161_v16, 0.0  ;;  %10584 = vmatmul.mubr.msk.bf16.vlgmr.msra.gmra.mrb[176].mxu1 %vm393_vm0, %v12668_v2 }
 0x2d5   : > { %v4191_v41 = vmax.f32 %v4159_v21, 0.0  ;;  %10587 = vmatprep.mubr.msk.bf16.mxu1 %vm393_vm0, %v12681_v17  ;;  %10616 = vmatpush3.bf16.msra.mxu1 %v12827_v29 }
 0x2d6   : > { %v12918_v49 = vpack.c.bf16 %v4193_v40, %v4192_v4  ;;  %10617 = vmatprep.subr.bf16.mxu1 %v11594_v9 }
 0x2d7   : > { %v12923_v3 = vpack.c.bf16 %v4191_v41, %v4190_v28  ;;  %v10289_v33 = vpop.f32.mrb[136].mxu0 }
 0x2d8   : > { %v4164_v50 = vadd.f32 %v10289_v33, %v12841_v10  ;;  %v4071_v2 = vpop.f32.mrb[137].mxu0 }
 0x2d9   : > { %v4162_v27 = vadd.f32 %v12841_v10, %v4071_v2  ;;  %v10290_v45 = vpop.f32.mrb[138].mxu0  ;;  %10618 = vmatpush3.bf16.msra.mxu1 %v11594_v9 }
 0x2da   : > { %v4165_v17 = vadd.f32 %v10290_v45, %v12841_v10  ;;  %v4074_v29 = vpop.f32.mrb[139].mxu0  ;;  %v4196_v56 = vmax.f32 %v4164_v50, 0.0  ;;  %v12961_v45 = vld [vmem:[%s14104_s2 + $0x60] sm:$0xff]  }
 0x2db   : > { %v4163_v6 = vadd.f32 %v12841_v10, %v4074_v29  ;;  %v4194_v47 = vmax.f32 %v4162_v27, 0.0 }
 0x2dc   : > { %v4197_v20 = vmax.f32 %v4165_v17, 0.0  ;;  %10588 = vmatmul.mubr.msk.bf16.gmra.mrb[180].mxu1 %vm393_vm0, %v12678_v14 }
 0x2dd   : > { %v4195_v39 = vmax.f32 %v4163_v6, 0.0  ;;  %10591 = vmatprep.mubr.msk.bf16.mxu1 %vm393_vm0, %v12697_v11 }
 0x2de   : > { %v12933_v1 = vpack.c.bf16 %v4197_v20, %v4196_v56 }
 0x2df   : > { %v12935_v43 = vpack.c.bf16 %v4195_v39, %v4194_v47  ;;  %v10293_v55 = vpop.f32.mrb[140].mxu0 }
 0x2e0   : > { %v4168_v34 = vadd.f32 %v10293_v55, %v12841_v10  ;;  %v4087_v57 = vpop.f32.mrb[141].mxu0 }
 0x2e1   : > { %v4166_v18 = vadd.f32 %v12841_v10, %v4087_v57  ;;  %v10294_v59 = vpop.f32.mrb[142].mxu0 }
 0x2e2   : > { %v4169_v38 = vadd.f32 %v10294_v59, %v12841_v10  ;;  %v4090_v62 = vpop.f32.mrb[143].mxu0  ;;  %v4200_v7 = vmax.f32 %v4168_v34, 0.0 }
 0x2e3   : > { %v4167_v14 = vadd.f32 %v12841_v10, %v4090_v62  ;;  %v4198_v11 = vmax.f32 %v4166_v18, 0.0 }
 0x2e4   : > { %v4201_v46 = vmax.f32 %v4169_v38, 0.0  ;;  %10592 = vmatmul.mubr.msk.bf16.gmra.mrb[184].mxu1 %vm393_vm0, %v12691_v5 }
 0x2e5   : > { %v4199_v8 = vmax.f32 %v4167_v14, 0.0  ;;  %10595 = vmatprep.mubr.msk.bf16.mxu1 %vm393_vm0, %v12716_v13 }
 0x2e6   : > { %v12945_v58 = vpack.c.bf16 %v4201_v46, %v4200_v7 }
 0x2e7   : > { %v12947_v44 = vpack.c.bf16 %v4199_v8, %v4198_v11  ;;  %v10409_v61 = vpop.f32.mrb[144].mxu1 }
 0x2e8   : > { %v5058_v12 = vadd.f32 %v10409_v61, %v12841_v10  ;;  %v4897_v36 = vpop.f32.mrb[145].mxu1 }
 0x2e9   : > { %v5056_v16 = vadd.f32 %v12841_v10, %v4897_v36  ;;  %v10410_v31 = vpop.f32.mrb[146].mxu1 }
 0x2ea   : > { %v5059_v21 = vadd.f32 %v10410_v31, %v12841_v10  ;;  %v4900_v4 = vpop.f32.mrb[147].mxu1  ;;  %v5090_v40 = vmax.f32 %v5058_v12, 0.0 }
 0x2eb   : > { %v5057_v5 = vadd.f32 %v12841_v10, %v4900_v4  ;;  %v5088_v13 = vmax.f32 %v5056_v16, 0.0 }
 0x2ec   : > { %v5091_v28 = vmax.f32 %v5059_v21, 0.0  ;;  %10596 = vmatmul.mubr.msk.bf16.gmra.mrb[188].mxu1 %vm393_vm0, %v12707_v48 }
 0x2ed   : > { %v5089_v41 = vmax.f32 %v5057_v5, 0.0  ;;  %10599 = vmatprep.mubr.msk.bf16.mxu1 %vm393_vm0, %v12728_v32 }
 0x2ee   : > { %v5123_v9 = vpack.c.bf16 %v5091_v28, %v5090_v40 }
 0x2ef   : > { %v5122_v33 = vpack.c.bf16 %v5089_v41, %v5088_v13  ;;  %v10413_v50 = vpop.f32.mrb[148].mxu1 }
 0x2f0   : > { %v5062_v2 = vadd.f32 %v10413_v50, %v12841_v10  ;;  %v4913_v27 = vpop.f32.mrb[149].mxu1 }
 0x2f1   : > { %v5060_v17 = vadd.f32 %v12841_v10, %v4913_v27  ;;  %v10414_v48 = vpop.f32.mrb[150].mxu1  ;;  %10441 = vmatprep.mubr.msk.bf16.mxu0 %vm5144_vm1, %v5122_v33 }
 0x2f2   : > { %v5063_v29 = vadd.f32 %v10414_v48, %v12841_v10  ;;  %v4916_v32 = vpop.f32.mrb[151].mxu1  ;;  %10442 = vmatmul.mubr.msk.bf16.vlgmr.msra.gmra.mrb[144].mxu0 %vm5144_vm1, %v5123_v9  ;;  %v5094_v56 = vmax.f32 %v5062_v2, 0.0 }
 0x2f3   : > { %v5061_v6 = vadd.f32 %v12841_v10, %v4916_v32  ;;  %10474 = vmatpush3.bf16.msra.mxu0 %v12852_v52  ;;  %v5092_v47 = vmax.f32 %v5060_v17, 0.0 }
 0x2f4   : > { %v5095_v20 = vmax.f32 %v5063_v29, 0.0  ;;  %10600 = vmatmul.mubr.msk.bf16.gmra.mrb[192].mxu1 %vm393_vm0, %v12725_v24  ;;  %10651 = vmatprep.subr.bf16.mxu0 %v12961_v45 }
 0x2f5   : > { %v5093_v39 = vmax.f32 %v5061_v6, 0.0  ;;  %10603 = vmatprep.mubr.msk.bf16.mxu1 %vm393_vm0, %v12736_v30 }
 0x2f6   : > { %v5125_v55 = vpack.c.bf16 %v5095_v20, %v5094_v56  ;;  %v14144_v20 = vld [vmem:[#allocation10_spill] sm:$0xff] }
 0x2f7   : > { %v5124_v34 = vpack.c.bf16 %v5093_v39, %v5092_v47  ;;  %v10417_v57 = vpop.f32.mrb[152].mxu1 }
 0x2f8   : > { %v5066_v18 = vadd.f32 %v10417_v57, %v12841_v10  ;;  %v4929_v59 = vpop.f32.mrb[153].mxu1 }
 0x2f9   : > { %v5064_v52 = vadd.f32 %v12841_v10, %v4929_v59  ;;  %v10418_v38 = vpop.f32.mrb[154].mxu1  ;;  %10445 = vmatprep.mubr.msk.bf16.mxu0 %vm5144_vm1, %v5124_v34 }
 0x2fa   : > { %v5067_v24 = vadd.f32 %v10418_v38, %v12841_v10  ;;  %v4932_v62 = vpop.f32.mrb[155].mxu1  ;;  %10446 = vmatmul.mubr.msk.bf16.gmra.mrb[148].mxu0 %vm5144_vm1, %v5125_v55  ;;  %v5098_v7 = vmax.f32 %v5066_v18, 0.0 }
 0x2fb   : > { %v5065_v14 = vadd.f32 %v12841_v10, %v4932_v62  ;;  %v5096_v46 = vmax.f32 %v5064_v52, 0.0 }
 0x2fc   : > { %v5099_v30 = vmax.f32 %v5067_v24, 0.0  ;;  %10604 = vmatmul.mubr.msk.bf16.gmra.mrb[196].mxu1 %vm393_vm0, %v12733_v35 }
 0x2fd   : > { %v5097_v11 = vmax.f32 %v5065_v14, 0.0  ;;  %10607 = vmatprep.mubr.msk.bf16.mxu1 %vm393_vm0, %v12748_v37  ;;  %v14145_v14 = vld [vmem:[#allocation9_spill] sm:$0xff] }
 0x2fe   : > { %v5127_v8 = vpack.c.bf16 %v5099_v30, %v5098_v7 }
 0x2ff   : > { %v5126_v61 = vpack.c.bf16 %v5097_v11, %v5096_v46  ;;  %v10421_v12 = vpop.f32.mrb[156].mxu1  ;;  %v14146_v46 = vld [vmem:[#allocation12_spill] sm:$0xff] }
 0x300   : > { %v5070_v36 = vadd.f32 %v10421_v12, %v12841_v10  ;;  %v4945_v16 = vpop.f32.mrb[157].mxu1 }
 0x301   : > { %v5068_v31 = vadd.f32 %v12841_v10, %v4945_v16  ;;  %v10422_v21 = vpop.f32.mrb[158].mxu1  ;;  %10449 = vmatprep.mubr.msk.bf16.mxu0 %vm5144_vm1, %v5126_v61 }
 0x302   : > { %v5071_v4 = vadd.f32 %v10422_v21, %v12841_v10  ;;  %v4948_v5 = vpop.f32.mrb[159].mxu1  ;;  %10450 = vmatmul.mubr.msk.bf16.gmra.mrb[152].mxu0 %vm5144_vm1, %v5127_v8  ;;  %v5102_v40 = vmax.f32 %v5070_v36, 0.0 }
 0x303   : > { %v5069_v35 = vadd.f32 %v12841_v10, %v4948_v5  ;;  %v5100_v28 = vmax.f32 %v5068_v31, 0.0 }
 0x304   : > { %v5103_v37 = vmax.f32 %v5071_v4, 0.0  ;;  %10608 = vmatmul.mubr.msk.bf16.gmra.mrb[200].mxu1 %vm393_vm0, %v12745_v26 }
 0x305   : > { %v5101_v13 = vmax.f32 %v5069_v35, 0.0  ;;  %10611 = vmatprep.mubr.msk.bf16.mxu1 %vm393_vm0, %v12753_v60 }
 0x306   : > { %v5129_v41 = vpack.c.bf16 %v5103_v37, %v5102_v40  ;;  %v14147_v37 = vld [vmem:[#allocation11_spill] sm:$0xff] }
 0x307   : > { %v5128_v9 = vpack.c.bf16 %v5101_v13, %v5100_v28  ;;  %v10425_v33 = vpop.f32.mrb[160].mxu1 }
 0x308   : > { %v5074_v50 = vadd.f32 %v10425_v33, %v12841_v10  ;;  %v4961_v2 = vpop.f32.mrb[161].mxu1 }
 0x309   : > { %v5072_v27 = vadd.f32 %v12841_v10, %v4961_v2  ;;  %v10426_v17 = vpop.f32.mrb[162].mxu1  ;;  %10453 = vmatprep.mubr.msk.bf16.mxu0 %vm5144_vm1, %v5128_v9 }
 0x30a   : > { %v5075_v48 = vadd.f32 %v10426_v17, %v12841_v10  ;;  %v4964_v29 = vpop.f32.mrb[163].mxu1  ;;  %10454 = vmatmul.mubr.msk.bf16.gmra.mrb[156].mxu0 %vm5144_vm1, %v5129_v41  ;;  %v5106_v32 = vmax.f32 %v5074_v50, 0.0  ;;  %v14148_v41 = vld [vmem:[#allocation14_spill] sm:$0xff] }
 0x30b   : > { %v5073_v26 = vadd.f32 %v12841_v10, %v4964_v29  ;;  %v5104_v6 = vmax.f32 %v5072_v27, 0.0 }
 0x30c   : > { %v5107_v60 = vmax.f32 %v5075_v48, 0.0  ;;  %10612 = vmatmul.mubr.msk.bf16.gmra.mrb[204].mxu1 %vm393_vm0, %v12751_v23 }
 0x30d   : > { %v5105_v56 = vmax.f32 %v5073_v26, 0.0  ;;  %10619 = vmatprep.mubr.msk.bf16.mxu1 %vm393_vm0, %v14144_v20 }
 0x30e   : > { %v5131_v47 = vpack.c.bf16 %v5107_v60, %v5106_v32 }
 0x30f   : > { %v5130_v39 = vpack.c.bf16 %v5105_v56, %v5104_v6  ;;  %v10429_v55 = vpop.f32.mrb[164].mxu1  ;;  %v14149_v56 = vld [vmem:[#allocation13_spill] sm:$0xff] }
 0x310   : > { %v5078_v34 = vadd.f32 %v10429_v55, %v12841_v10  ;;  %v4977_v57 = vpop.f32.mrb[165].mxu1 }
 0x311   : > { %v5076_v18 = vadd.f32 %v12841_v10, %v4977_v57  ;;  %v10430_v59 = vpop.f32.mrb[166].mxu1  ;;  %10457 = vmatprep.mubr.msk.bf16.mxu0 %vm5144_vm1, %v5130_v39  ;;  %v14150_v39 = vld [vmem:[#allocation16_spill] sm:$0xff]  ;;  %v14151_v57 = vld [vmem:[#allocation15_spill] sm:$0xff] }
 0x312   : > { %v5079_v52 = vadd.f32 %v10430_v59, %v12841_v10  ;;  %v4980_v38 = vpop.f32.mrb[167].mxu1  ;;  %10458 = vmatmul.mubr.msk.bf16.gmra.mrb[160].mxu0 %vm5144_vm1, %v5131_v47  ;;  %v5110_v24 = vmax.f32 %v5078_v34, 0.0  ;;  %v14153_v59 = vld [vmem:[#allocation3_spill] sm:$0xff] }
 0x313   : > { %v5077_v23 = vadd.f32 %v12841_v10, %v4980_v38  ;;  %v5108_v7 = vmax.f32 %v5076_v18, 0.0  ;;  %v14152_v18 = vld [vmem:[#allocation17_spill] sm:$0xff] }
 0x314   : > { %v5111_v62 = vmax.f32 %v5079_v52, 0.0  ;;  %10620 = vmatmul.mubr.msk.bf16.vlgmr.msra.gmra.mrb[176].mxu1 %vm393_vm0, %v14145_v14  ;;  %v14154_v52 = vld [vmem:[#allocation5_spill] sm:$0xff]  ;;  %v257_v14 = vld [vmem:[%s14105_s3 + $0x20] sm:$0xff] }
 0x315   : > { %v5109_v30 = vmax.f32 %v5077_v23, 0.0  ;;  %10623 = vmatprep.mubr.msk.bf16.mxu1 %vm393_vm0, %v14146_v46 }
 0x316   : > { %v5133_v11 = vpack.c.bf16 %v5111_v62, %v5110_v24  ;;  %v256_v62 = vld [vmem:[%s14105_s3 + $0x18] sm:$0xff] }
 0x317   : > { %v5132_v8 = vpack.c.bf16 %v5109_v30, %v5108_v7  ;;  %v10433_v61 = vpop.f32.mrb[168].mxu1 }
 0x318   : > { %v5082_v12 = vadd.f32 %v10433_v61, %v12841_v10  ;;  %v4993_v36 = vpop.f32.mrb[169].mxu1  ;;  %v10867_v61 = vpack.c.bf16 %v257_v14, %v256_v62 }
 0x319   : > { %v5080_v16 = vadd.f32 %v12841_v10, %v4993_v36  ;;  %v10434_v31 = vpop.f32.mrb[170].mxu1  ;;  %10461 = vmatprep.mubr.msk.bf16.mxu0 %vm5144_vm1, %v5132_v8 }
 0x31a   : > { %v5083_v21 = vadd.f32 %v10434_v31, %v12841_v10  ;;  %v4996_v4 = vpop.f32.mrb[171].mxu1  ;;  %10462 = vmatmul.mubr.msk.bf16.gmra.mrb[164].mxu0 %vm5144_vm1, %v5133_v11  ;;  %v5114_v35 = vmax.f32 %v5082_v12, 0.0 }
 0x31b   : > { %v5081_v5 = vadd.f32 %v12841_v10, %v4996_v4  ;;  %v5112_v28 = vmax.f32 %v5080_v16, 0.0 }
 0x31c   : > { %v5115_v40 = vmax.f32 %v5083_v21, 0.0  ;;  %10624 = vmatmul.mubr.msk.bf16.gmra.mrb[180].mxu1 %vm393_vm0, %v14147_v37 }
 0x31d   : > { %v5113_v13 = vmax.f32 %v5081_v5, 0.0  ;;  %10627 = vmatprep.mubr.msk.bf16.mxu1 %vm393_vm0, %v14148_v41 }
 0x31e   : > { %v5135_v9 = vpack.c.bf16 %v5115_v40, %v5114_v35 }
 0x31f   : > { %v5134_v33 = vpack.c.bf16 %v5113_v13, %v5112_v28  ;;  %v10437_v50 = vpop.f32.mrb[172].mxu1 }
 0x320   : > { %v5086_v2 = vadd.f32 %v10437_v50, %v12841_v10  ;;  %v5009_v27 = vpop.f32.mrb[173].mxu1 }
 0x321   : > { %v5084_v17 = vadd.f32 %v12841_v10, %v5009_v27  ;;  %v10438_v48 = vpop.f32.mrb[174].mxu1  ;;  %10465 = vmatprep.mubr.msk.bf16.mxu0 %vm5144_vm1, %v5134_v33 }
 0x322   : > { %v5087_v29 = vadd.f32 %v10438_v48, %v12841_v10  ;;  %v5012_v26 = vpop.f32.mrb[175].mxu1  ;;  %10466 = vmatmul.mubr.msk.bf16.gmra.mrb[168].mxu0 %vm5144_vm1, %v5135_v9  ;;  %v5118_v60 = vmax.f32 %v5086_v2, 0.0 }
 0x323   : > { %v5085_v32 = vadd.f32 %v12841_v10, %v5012_v26  ;;  %v5116_v20 = vmax.f32 %v5084_v17, 0.0 }
 0x324   : > { %v5119_v6 = vmax.f32 %v5087_v29, 0.0  ;;  %10628 = vmatmul.mubr.msk.bf16.gmra.mrb[184].mxu1 %vm393_vm0, %v14149_v56 }
 0x325   : > { %v5117_v47 = vmax.f32 %v5085_v32, 0.0  ;;  %10631 = vmatprep.mubr.msk.bf16.mxu1 %vm393_vm0, %v14150_v39 }
 0x326   : > { %v5137_v55 = vpack.c.bf16 %v5119_v6, %v5118_v60 }
 0x327   : > { %v5136_v34 = vpack.c.bf16 %v5117_v47, %v5116_v20 }
 0x329   : > { %10469 = vmatprep.mubr.msk.bf16.mxu0 %vm5144_vm1, %v5136_v34 }
 0x32a   : > { %10470 = vmatmul.mubr.msk.bf16.gmra.mrb[172].mxu0 %vm5144_vm1, %v5137_v55 }
 0x32b   : > { %10475 = vmatprep.mubr.msk.bf16.mxu0 %vm5144_vm1, %v12859_v63  ;;  %v14155_v63 = vld [vmem:[#allocation2_spill] sm:$0xff] }
 0x32c   : > { %10632 = vmatmul.mubr.msk.bf16.gmra.mrb[188].mxu1 %vm393_vm0, %v14151_v57 }
 0x32d   : > { %10635 = vmatprep.mubr.msk.bf16.mxu1 %vm393_vm0, %v14152_v18 }
 0x332   : > { %10476 = vmatmul.mubr.msk.bf16.vlgmr.msra.gmra.mrb[144].mxu0 %vm5144_vm1, %v12856_v0  ;;  %v14156_v0 = vld [vmem:[#allocation7_spill] sm:$0xff] }
 0x333   : > { %10479 = vmatprep.mubr.msk.bf16.mxu0 %vm5144_vm1, %v12871_v51  ;;  %10652 = vmatpush3.bf16.msra.mxu0 %v12961_v45  ;;  %v14157_v51 = vld [vmem:[#allocation4_spill] sm:$0xff]  ;;  %v14158_v45 = vld [vmem:[#allocation18_spill] sm:$0xff] }
 0x334   : > { %10636 = vmatmul.mubr.msk.bf16.gmra.mrb[192].mxu1 %vm393_vm0, %v14153_v59 }
 0x335   : > { %10639 = vmatprep.mubr.msk.bf16.mxu1 %vm393_vm0, %v14154_v52 }
 0x33a   : > { %10480 = vmatmul.mubr.msk.bf16.gmra.mrb[148].mxu0 %vm5144_vm1, %v12869_v15  ;;  %v14159_v15 = vld [vmem:[#allocation6_spill] sm:$0xff] }
 0x33b   : > { %10483 = vmatprep.mubr.msk.bf16.mxu0 %vm5144_vm1, %v12883_v25  ;;  %v255_v25 = vld [vmem:[%s14105_s3 + $0x10] sm:$0xff] }
 0x33c   : > { %10640 = vmatmul.mubr.msk.bf16.gmra.mrb[196].mxu1 %vm393_vm0, %v14155_v63 }
 0x33d   : > { %10643 = vmatprep.mubr.msk.bf16.mxu1 %vm393_vm0, %v14156_v0 }
 0x342   : > { %10484 = vmatmul.mubr.msk.bf16.gmra.mrb[152].mxu0 %vm5144_vm1, %v12881_v19  ;;  %v254_v19 = vld [vmem:[%s14105_s3 + $0x8] sm:$0xff] }
 0x343   : > { %10487 = vmatprep.mubr.msk.bf16.mxu0 %vm5144_vm1, %v12895_v42 }
 0x344   : > { %10644 = vmatmul.mubr.msk.bf16.gmra.mrb[200].mxu1 %vm393_vm0, %v14157_v51 }
 0x345   : > { %10647 = vmatprep.mubr.msk.bf16.mxu1 %vm393_vm0, %v14158_v45 }
 0x34a   : > { %10488 = vmatmul.mubr.msk.bf16.gmra.mrb[156].mxu0 %vm5144_vm1, %v12893_v53  ;;  %v10863_v53 = vpack.c.bf16 %v255_v25, %v254_v19 }
 0x34b   : > { %10491 = vmatprep.mubr.msk.bf16.mxu0 %vm5144_vm1, %v12907_v54 }
 0x34c   : > { %10648 = vmatmul.mubr.msk.bf16.gmra.mrb[204].mxu1 %vm393_vm0, %v14159_v15  ;;  %10864 = vmatprep.subr.bf16.mxu0 %v10863_v53 }
 0x352   : > { %10492 = vmatmul.mubr.msk.bf16.gmra.mrb[160].mxu0 %vm5144_vm1, %v12905_v22 }
 0x353   : > { %10495 = vmatprep.mubr.msk.bf16.mxu0 %vm5144_vm1, %v12923_v3 }
 0x35a   : > { %10496 = vmatmul.mubr.msk.bf16.gmra.mrb[164].mxu0 %vm5144_vm1, %v12918_v49 }
 0x35b   : > { %10499 = vmatprep.mubr.msk.bf16.mxu0 %vm5144_vm1, %v12935_v43 }
 0x362   : > { %10500 = vmatmul.mubr.msk.bf16.gmra.mrb[168].mxu0 %vm5144_vm1, %v12933_v1 }
 0x363   : > { %10503 = vmatprep.mubr.msk.bf16.mxu0 %vm5144_vm1, %v12947_v44 }
 0x36a   : > { %10504 = vmatmul.mubr.msk.bf16.gmra.mrb[172].mxu0 %vm5144_vm1, %v12945_v58 }
 0x3e7   : > { %v10621_v42 = vpop.f32.mrb[176].mxu1 }
 0x3e8   : > { %v6407_v22 = vadd.f32 %v10621_v42, %v12841_v10  ;;  %v6246_v54 = vpop.f32.mrb[177].mxu1 }
 0x3e9   : > { %v6405_v49 = vadd.f32 %v12841_v10, %v6246_v54  ;;  %v10622_v3 = vpop.f32.mrb[178].mxu1 }
 0x3ea   : > { %v6408_v1 = vadd.f32 %v10622_v3, %v12841_v10  ;;  %v6249_v43 = vpop.f32.mrb[179].mxu1  ;;  %v6439_v44 = vmax.f32 %v6407_v22, 0.0 }
 0x3eb   : > { %v6406_v58 = vadd.f32 %v12841_v10, %v6249_v43  ;;  %v6437_v23 = vmax.f32 %v6405_v49, 0.0 }
 0x3ec   : > { %v6440_v38 = vmax.f32 %v6408_v1, 0.0 }
 0x3ed   : > { %v6438_v24 = vmax.f32 %v6406_v58, 0.0 }
 0x3ee   : > { %v6472_v7 = vpack.c.bf16 %v6440_v38, %v6439_v44 }
 0x3ef   : > { %v6471_v30 = vpack.c.bf16 %v6438_v24, %v6437_v23  ;;  %v10625_v46 = vpop.f32.mrb[180].mxu1 }
 0x3f0   : > { %v6411_v11 = vadd.f32 %v10625_v46, %v12841_v10  ;;  %v6262_v8 = vpop.f32.mrb[181].mxu1 }
 0x3f1   : > { %v6409_v12 = vadd.f32 %v12841_v10, %v6262_v8  ;;  %v10626_v36 = vpop.f32.mrb[182].mxu1  ;;  %10653 = vmatprep.mubr.msk.bf16.mxu0 %vm5144_vm1, %v6471_v30 }
 0x3f2   : > { %v6412_v16 = vadd.f32 %v10626_v36, %v12841_v10  ;;  %v6265_v31 = vpop.f32.mrb[183].mxu1  ;;  %10654 = vmatmul.mubr.msk.bf16.vlgmr.msra.gmra.mrb[144].mxu0 %vm5144_vm1, %v6472_v7  ;;  %v6443_v4 = vmax.f32 %v6411_v11, 0.0 }
 0x3f3   : > { %v6410_v21 = vadd.f32 %v12841_v10, %v6265_v31  ;;  %10866 = vmatpush3.bf16.msra.mxu0 %v10863_v53  ;;  %v6441_v35 = vmax.f32 %v6409_v12, 0.0 }
 0x3f4   : > { %v6444_v5 = vmax.f32 %v6412_v16, 0.0  ;;  %10868 = vmatprep.subr.bf16.mxu0 %v10867_v61 }
 0x3f5   : > { %v6442_v40 = vmax.f32 %v6410_v21, 0.0 }
 0x3f6   : > { %v6474_v37 = vpack.c.bf16 %v6444_v5, %v6443_v4 }
 0x3f7   : > { %v6473_v28 = vpack.c.bf16 %v6442_v40, %v6441_v35  ;;  %v10629_v13 = vpop.f32.mrb[184].mxu1  ;;  %10870 = vmatpush3.bf16.msra.mxu0 %v10867_v61 }
 0x3f8   : > { %v6415_v41 = vadd.f32 %v10629_v13, %v12841_v10  ;;  %v6278_v9 = vpop.f32.mrb[185].mxu1 }
 0x3f9   : > { %v6413_v33 = vadd.f32 %v12841_v10, %v6278_v9  ;;  %v10630_v50 = vpop.f32.mrb[186].mxu1  ;;  %10657 = vmatprep.mubr.msk.bf16.mxu0 %vm5144_vm1, %v6473_v28 }
 0x3fa   : > { %v6416_v2 = vadd.f32 %v10630_v50, %v12841_v10  ;;  %v6281_v27 = vpop.f32.mrb[187].mxu1  ;;  %10658 = vmatmul.mubr.msk.bf16.gmra.mrb[148].mxu0 %vm5144_vm1, %v6474_v37  ;;  %v6447_v48 = vmax.f32 %v6415_v41, 0.0 }
 0x3fb   : > { %v6414_v17 = vadd.f32 %v12841_v10, %v6281_v27  ;;  %v6445_v26 = vmax.f32 %v6413_v33, 0.0 }
 0x3fc   : > { %v6448_v29 = vmax.f32 %v6416_v2, 0.0 }
 0x3fd   : > { %v6446_v32 = vmax.f32 %v6414_v17, 0.0 }
 0x3fe   : > { %v6476_v60 = vpack.c.bf16 %v6448_v29, %v6447_v48 }
 0x3ff   : > { %v6475_v6 = vpack.c.bf16 %v6446_v32, %v6445_v26  ;;  %v10633_v56 = vpop.f32.mrb[188].mxu1 }
 0x400   : > { %v6419_v20 = vadd.f32 %v10633_v56, %v12841_v10  ;;  %v6294_v47 = vpop.f32.mrb[189].mxu1 }
 0x401   : > { %v6417_v39 = vadd.f32 %v12841_v10, %v6294_v47  ;;  %v10634_v55 = vpop.f32.mrb[190].mxu1  ;;  %10661 = vmatprep.mubr.msk.bf16.mxu0 %vm5144_vm1, %v6475_v6 }
 0x402   : > { %v6420_v34 = vadd.f32 %v10634_v55, %v12841_v10  ;;  %v6297_v57 = vpop.f32.mrb[191].mxu1  ;;  %10662 = vmatmul.mubr.msk.bf16.gmra.mrb[152].mxu0 %vm5144_vm1, %v6476_v60  ;;  %v6451_v59 = vmax.f32 %v6419_v20, 0.0 }
 0x403   : > { %v6418_v18 = vadd.f32 %v12841_v10, %v6297_v57  ;;  %v6449_v63 = vmax.f32 %v6417_v39, 0.0 }
 0x404   : > { %v6452_v52 = vmax.f32 %v6420_v34, 0.0 }
 0x405   : > { %v6450_v0 = vmax.f32 %v6418_v18, 0.0  ;;  %v13150_v18 = vld [vmem:[%s14105_s3 + $0x2] ss:$0 sm:$0xff] }
 0x406   : > { %v6478_v51 = vpack.c.bf16 %v6452_v52, %v6451_v59 }
 0x407   : > { %v6477_v45 = vpack.c.bf16 %v6450_v0, %v6449_v63  ;;  %v10637_v15 = vpop.f32.mrb[192].mxu1 }
 0x408   : > { %v6423_v19 = vadd.f32 %v10637_v15, %v12841_v10  ;;  %v6310_v25 = vpop.f32.mrb[193].mxu1 }
 0x409   : > { %v6421_v53 = vadd.f32 %v12841_v10, %v6310_v25  ;;  %v10638_v42 = vpop.f32.mrb[194].mxu1  ;;  %10665 = vmatprep.mubr.msk.bf16.mxu0 %vm5144_vm1, %v6477_v45 }
 0x40a   : > { %v6424_v22 = vadd.f32 %v10638_v42, %v12841_v10  ;;  %v6313_v54 = vpop.f32.mrb[195].mxu1  ;;  %10666 = vmatmul.mubr.msk.bf16.gmra.mrb[156].mxu0 %vm5144_vm1, %v6478_v51  ;;  %v6455_v3 = vmax.f32 %v6423_v19, 0.0 }
 0x40b   : > { %v6422_v49 = vadd.f32 %v12841_v10, %v6313_v54  ;;  %v6453_v43 = vmax.f32 %v6421_v53, 0.0 }
 0x40c   : > { %v6456_v1 = vmax.f32 %v6424_v22, 0.0 }
 0x40d   : > { %v6454_v58 = vmax.f32 %v6422_v49, 0.0 }
 0x40e   : > { %v6480_v44 = vpack.c.bf16 %v6456_v1, %v6455_v3 }
 0x40f   : > { %v6479_v38 = vpack.c.bf16 %v6454_v58, %v6453_v43  ;;  %v10641_v23 = vpop.f32.mrb[196].mxu1 }
 0x410   : > { %v6427_v24 = vadd.f32 %v10641_v23, %v12841_v10  ;;  %v6326_v62 = vpop.f32.mrb[197].mxu1 }
 0x411   : > { %v6425_v14 = vadd.f32 %v12841_v10, %v6326_v62  ;;  %v10642_v7 = vpop.f32.mrb[198].mxu1  ;;  %10669 = vmatprep.mubr.msk.bf16.mxu0 %vm5144_vm1, %v6479_v38 }
 0x412   : > { %v6428_v30 = vadd.f32 %v10642_v7, %v12841_v10  ;;  %v6329_v46 = vpop.f32.mrb[199].mxu1  ;;  %10670 = vmatmul.mubr.msk.bf16.gmra.mrb[160].mxu0 %vm5144_vm1, %v6480_v44  ;;  %v6459_v8 = vmax.f32 %v6427_v24, 0.0 }
 0x413   : > { %v6426_v11 = vadd.f32 %v12841_v10, %v6329_v46  ;;  %v6457_v12 = vmax.f32 %v6425_v14, 0.0 }
 0x414   : > { %v6460_v61 = vmax.f32 %v6428_v30, 0.0 }
 0x415   : > { %v6458_v36 = vmax.f32 %v6426_v11, 0.0 }
 0x416   : > { %v6482_v16 = vpack.c.bf16 %v6460_v61, %v6459_v8 }
 0x417   : > { %v6481_v31 = vpack.c.bf16 %v6458_v36, %v6457_v12  ;;  %v10645_v21 = vpop.f32.mrb[200].mxu1 }
 0x418   : > { %v6431_v4 = vadd.f32 %v10645_v21, %v12841_v10  ;;  %v6342_v5 = vpop.f32.mrb[201].mxu1 }
 0x419   : > { %v6429_v35 = vadd.f32 %v12841_v10, %v6342_v5  ;;  %v10646_v40 = vpop.f32.mrb[202].mxu1  ;;  %10673 = vmatprep.mubr.msk.bf16.mxu0 %vm5144_vm1, %v6481_v31 }
 0x41a   : > { %v6432_v37 = vadd.f32 %v10646_v40, %v12841_v10  ;;  %v6345_v28 = vpop.f32.mrb[203].mxu1  ;;  %10674 = vmatmul.mubr.msk.bf16.gmra.mrb[164].mxu0 %vm5144_vm1, %v6482_v16  ;;  %v6463_v41 = vmax.f32 %v6431_v4, 0.0 }
 0x41b   : > { %v6430_v13 = vadd.f32 %v12841_v10, %v6345_v28  ;;  %v6461_v33 = vmax.f32 %v6429_v35, 0.0 }
 0x41c   : > { %v6464_v9 = vmax.f32 %v6432_v37, 0.0 }
 0x41d   : > { %v6462_v50 = vmax.f32 %v6430_v13, 0.0 }
 0x41e   : > { %v6484_v2 = vpack.c.bf16 %v6464_v9, %v6463_v41 }
 0x41f   : > { %v6483_v27 = vpack.c.bf16 %v6462_v50, %v6461_v33  ;;  %v10649_v17 = vpop.f32.mrb[204].mxu1 }
 0x420   : > { %v6435_v48 = vadd.f32 %v10649_v17, %v12841_v10  ;;  %v6358_v29 = vpop.f32.mrb[205].mxu1 }
 0x421   : > { %v6433_v26 = vadd.f32 %v12841_v10, %v6358_v29  ;;  %v10650_v32 = vpop.f32.mrb[206].mxu1  ;;  %10677 = vmatprep.mubr.msk.bf16.mxu0 %vm5144_vm1, %v6483_v27 }
 0x422   : > { %v6436_v60 = vadd.f32 %v10650_v32, %v12841_v10  ;;  %v6361_v6 = vpop.f32.mrb[207].mxu1  ;;  %10678 = vmatmul.mubr.msk.bf16.gmra.mrb[168].mxu0 %vm5144_vm1, %v6484_v2  ;;  %v6467_v20 = vmax.f32 %v6435_v48, 0.0 }
 0x423   : > { %v6434_v56 = vadd.f32 %v12841_v10, %v6361_v6  ;;  %v6465_v39 = vmax.f32 %v6433_v26, 0.0 }
 0x424   : > { %v6468_v47 = vmax.f32 %v6436_v60, 0.0 }
 0x425   : > { %v6466_v55 = vmax.f32 %v6434_v56, 0.0 }
 0x426   : > { %v6486_v34 = vpack.c.bf16 %v6468_v47, %v6467_v20 }
 0x427   : > { %v6485_v57 = vpack.c.bf16 %v6466_v55, %v6465_v39 }
 0x429   : > { %10681 = vmatprep.mubr.msk.bf16.mxu0 %vm5144_vm1, %v6485_v57 }
 0x42a   : > { %10682 = vmatmul.mubr.msk.bf16.gmra.mrb[172].mxu0 %vm5144_vm1, %v6486_v34 }
 0x4c5   : > { %v10655_v59 = vpop.f32.mrb[144].mxu0 }
 0x4c6   : > { %v6575_v52 = vpop.f32.mrb[145].mxu0  ;;  %v6740_v0 = vadd.f32 %v10655_v59, %v13150_v18 }
 0x4c7   : > { %v6738_v63 = vadd.f32 %v13150_v18, %v6575_v52  ;;  %v10656_v10 = vpop.f32.mrb[146].mxu0 }
 0x4c8   : > { %v6578_v51 = vpop.f32.mrb[147].mxu0  ;;  %v6741_v19 = vadd.f32 %v10656_v10, %v13150_v18  ;;  %v6772_v53 = vmax.f32 %v6740_v0, 0.0 }
 0x4c9   : > { %v6770_v45 = vmax.f32 %v6738_v63, 0.0  ;;  %v6739_v15 = vadd.f32 %v13150_v18, %v6578_v51 }
 0x4ca   : > { %v6773_v54 = vmax.f32 %v6741_v19, 0.0 }
 0x4cb   : > { %v6771_v25 = vmax.f32 %v6739_v15, 0.0  ;;  %10693 = vmatprep.mubr.msk.f32.mxu0 %vm393_vm0, %v6770_v45 }
 0x4cd   : > { %v10659_v42 = vpop.f32.mrb[148].mxu0  ;;  %10694 = vmatmul.mubr.msk.f32.vlgmr.msra.gmra.mrb[176].mxu0 %vm393_vm0, %v6771_v25 }
 0x4ce   : > { %v6591_v22 = vpop.f32.mrb[149].mxu0  ;;  %10696 = vmatprep.mubr.msk.f32.mxu0 %vm393_vm0, %v6772_v53  ;;  %v6744_v1 = vadd.f32 %v10659_v42, %v13150_v18 }
 0x4cf   : > { %v6742_v49 = vadd.f32 %v13150_v18, %v6591_v22  ;;  %v10660_v3 = vpop.f32.mrb[150].mxu0 }
 0x4d0   : > { %v6594_v43 = vpop.f32.mrb[151].mxu0  ;;  %v6745_v38 = vadd.f32 %v10660_v3, %v13150_v18  ;;  %v6776_v24 = vmax.f32 %v6744_v1, 0.0 }
 0x4d1   : > { %v6774_v58 = vmax.f32 %v6742_v49, 0.0  ;;  %v6743_v44 = vadd.f32 %v13150_v18, %v6594_v43  ;;  %10697 = vmatmul.mubr.msk.f32.gmra.mrb[178].mxu0 %vm393_vm0, %v6773_v54 }
 0x4d2   : > { %v6777_v7 = vmax.f32 %v6745_v38, 0.0 }
 0x4d3   : > { %v6775_v23 = vmax.f32 %v6743_v44, 0.0  ;;  %10699 = vmatprep.mubr.msk.f32.mxu0 %vm393_vm0, %v6774_v58 }
 0x4d5   : > { %v10663_v62 = vpop.f32.mrb[152].mxu0  ;;  %10700 = vmatmul.mubr.msk.f32.gmra.mrb[180].mxu0 %vm393_vm0, %v6775_v23 }
 0x4d6   : > { %v6607_v14 = vpop.f32.mrb[153].mxu0  ;;  %10702 = vmatprep.mubr.msk.f32.mxu0 %vm393_vm0, %v6776_v24  ;;  %v6748_v11 = vadd.f32 %v10663_v62, %v13150_v18 }
 0x4d7   : > { %v6746_v30 = vadd.f32 %v13150_v18, %v6607_v14  ;;  %v10664_v46 = vpop.f32.mrb[154].mxu0 }
 0x4d8   : > { %v6610_v8 = vpop.f32.mrb[155].mxu0  ;;  %v6749_v36 = vadd.f32 %v10664_v46, %v13150_v18  ;;  %v6780_v31 = vmax.f32 %v6748_v11, 0.0 }
 0x4d9   : > { %v6778_v61 = vmax.f32 %v6746_v30, 0.0  ;;  %v6747_v12 = vadd.f32 %v13150_v18, %v6610_v8  ;;  %10703 = vmatmul.mubr.msk.f32.gmra.mrb[182].mxu0 %vm393_vm0, %v6777_v7 }
 0x4da   : > { %v6781_v5 = vmax.f32 %v6749_v36, 0.0 }
 0x4db   : > { %v6779_v16 = vmax.f32 %v6747_v12, 0.0  ;;  %10705 = vmatprep.mubr.msk.f32.mxu0 %vm393_vm0, %v6778_v61 }
 0x4dd   : > { %v10667_v21 = vpop.f32.mrb[156].mxu0  ;;  %10706 = vmatmul.mubr.msk.f32.gmra.mrb[184].mxu0 %vm393_vm0, %v6779_v16  ;;  %v11378_v16 = vld [vmem:[%s14104_s2 + $0x68] sm:$0xff]  }
 0x4de   : > { %v6623_v4 = vpop.f32.mrb[157].mxu0  ;;  %10708 = vmatprep.mubr.msk.f32.mxu0 %vm393_vm0, %v6780_v31  ;;  %v6752_v37 = vadd.f32 %v10667_v21, %v13150_v18  ;;  %10741 = vmatprep.subr.bf16.mxu0 %v11378_v16 }
 0x4df   : > { %v6750_v35 = vadd.f32 %v13150_v18, %v6623_v4  ;;  %v10668_v40 = vpop.f32.mrb[158].mxu0  ;;  %10742 = vmatpush3.bf16.msra.mxu0 %v11378_v16 }
 0x4e0   : > { %v6626_v28 = vpop.f32.mrb[159].mxu0  ;;  %v6753_v9 = vadd.f32 %v10668_v40, %v13150_v18  ;;  %v6784_v50 = vmax.f32 %v6752_v37, 0.0 }
 0x4e1   : > { %v6782_v13 = vmax.f32 %v6750_v35, 0.0  ;;  %v6751_v41 = vadd.f32 %v13150_v18, %v6626_v28  ;;  %10709 = vmatmul.mubr.msk.f32.gmra.mrb[186].mxu0 %vm393_vm0, %v6781_v5 }
 0x4e2   : > { %v6785_v17 = vmax.f32 %v6753_v9, 0.0 }
 0x4e3   : > { %v6783_v33 = vmax.f32 %v6751_v41, 0.0  ;;  %10711 = vmatprep.mubr.msk.f32.mxu0 %vm393_vm0, %v6782_v13 }
 0x4e5   : > { %v10671_v2 = vpop.f32.mrb[160].mxu0  ;;  %10712 = vmatmul.mubr.msk.f32.gmra.mrb[188].mxu0 %vm393_vm0, %v6783_v33 }
 0x4e6   : > { %v6639_v27 = vpop.f32.mrb[161].mxu0  ;;  %10714 = vmatprep.mubr.msk.f32.mxu0 %vm393_vm0, %v6784_v50  ;;  %v6756_v26 = vadd.f32 %v10671_v2, %v13150_v18 }
 0x4e7   : > { %v6754_v48 = vadd.f32 %v13150_v18, %v6639_v27  ;;  %v10672_v29 = vpop.f32.mrb[162].mxu0 }
 0x4e8   : > { %v6642_v32 = vpop.f32.mrb[163].mxu0  ;;  %v6757_v56 = vadd.f32 %v10672_v29, %v13150_v18  ;;  %v6788_v47 = vmax.f32 %v6756_v26, 0.0 }
 0x4e9   : > { %v6786_v60 = vmax.f32 %v6754_v48, 0.0  ;;  %v6755_v6 = vadd.f32 %v13150_v18, %v6642_v32  ;;  %10715 = vmatmul.mubr.msk.f32.gmra.mrb[190].mxu0 %vm393_vm0, %v6785_v17 }
 0x4ea   : > { %v6789_v34 = vmax.f32 %v6757_v56, 0.0 }
 0x4eb   : > { %v6787_v20 = vmax.f32 %v6755_v6, 0.0  ;;  %10717 = vmatprep.mubr.msk.f32.mxu0 %vm393_vm0, %v6786_v60 }
 0x4ed   : > { %v10675_v39 = vpop.f32.mrb[164].mxu0  ;;  %10718 = vmatmul.mubr.msk.f32.gmra.mrb[192].mxu0 %vm393_vm0, %v6787_v20 }
 0x4ee   : > { %v6655_v55 = vpop.f32.mrb[165].mxu0  ;;  %10720 = vmatprep.mubr.msk.f32.mxu0 %vm393_vm0, %v6788_v47  ;;  %v6760_v52 = vadd.f32 %v10675_v39, %v13150_v18 }
 0x4ef   : > { %v6758_v57 = vadd.f32 %v13150_v18, %v6655_v55  ;;  %v10676_v59 = vpop.f32.mrb[166].mxu0 }
 0x4f0   : > { %v6658_v63 = vpop.f32.mrb[167].mxu0  ;;  %v6761_v51 = vadd.f32 %v10676_v59, %v13150_v18  ;;  %v6792_v15 = vmax.f32 %v6760_v52, 0.0 }
 0x4f1   : > { %v6790_v10 = vmax.f32 %v6758_v57, 0.0  ;;  %v6759_v0 = vadd.f32 %v13150_v18, %v6658_v63  ;;  %10721 = vmatmul.mubr.msk.f32.gmra.mrb[194].mxu0 %vm393_vm0, %v6789_v34 }
 0x4f2   : > { %v6793_v53 = vmax.f32 %v6761_v51, 0.0 }
 0x4f3   : > { %v6791_v45 = vmax.f32 %v6759_v0, 0.0  ;;  %10723 = vmatprep.mubr.msk.f32.mxu0 %vm393_vm0, %v6790_v10 }
 0x4f5   : > { %v10679_v19 = vpop.f32.mrb[168].mxu0  ;;  %10724 = vmatmul.mubr.msk.f32.gmra.mrb[196].mxu0 %vm393_vm0, %v6791_v45 }
 0x4f6   : > { %v6671_v25 = vpop.f32.mrb[169].mxu0  ;;  %10726 = vmatprep.mubr.msk.f32.mxu0 %vm393_vm0, %v6792_v15  ;;  %v6764_v54 = vadd.f32 %v10679_v19, %v13150_v18 }
 0x4f7   : > { %v6762_v42 = vadd.f32 %v13150_v18, %v6671_v25  ;;  %v10680_v22 = vpop.f32.mrb[170].mxu0 }
 0x4f8   : > { %v6674_v49 = vpop.f32.mrb[171].mxu0  ;;  %v6765_v43 = vadd.f32 %v10680_v22, %v13150_v18  ;;  %v6796_v44 = vmax.f32 %v6764_v54, 0.0 }
 0x4f9   : > { %v6794_v3 = vmax.f32 %v6762_v42, 0.0  ;;  %v6763_v1 = vadd.f32 %v13150_v18, %v6674_v49  ;;  %10727 = vmatmul.mubr.msk.f32.gmra.mrb[198].mxu0 %vm393_vm0, %v6793_v53 }
 0x4fa   : > { %v6797_v24 = vmax.f32 %v6765_v43, 0.0 }
 0x4fb   : > { %v6795_v58 = vmax.f32 %v6763_v1, 0.0  ;;  %10729 = vmatprep.mubr.msk.f32.mxu0 %vm393_vm0, %v6794_v3 }
 0x4fd   : > { %v10683_v38 = vpop.f32.mrb[172].mxu0  ;;  %10730 = vmatmul.mubr.msk.f32.gmra.mrb[200].mxu0 %vm393_vm0, %v6795_v58 }
 0x4fe   : > { %v6687_v23 = vpop.f32.mrb[173].mxu0  ;;  %10732 = vmatprep.mubr.msk.f32.mxu0 %vm393_vm0, %v6796_v44  ;;  %v6768_v7 = vadd.f32 %v10683_v38, %v13150_v18 }
 0x4ff   : > { %v6766_v62 = vadd.f32 %v13150_v18, %v6687_v23  ;;  %v10684_v14 = vpop.f32.mrb[174].mxu0 }
 0x500   : > { %v6690_v30 = vpop.f32.mrb[175].mxu0  ;;  %v6769_v8 = vadd.f32 %v10684_v14, %v13150_v18  ;;  %v6800_v12 = vmax.f32 %v6768_v7, 0.0 }
 0x501   : > { %v6798_v46 = vmax.f32 %v6766_v62, 0.0  ;;  %v6767_v11 = vadd.f32 %v13150_v18, %v6690_v30  ;;  %10733 = vmatmul.mubr.msk.f32.gmra.mrb[202].mxu0 %vm393_vm0, %v6797_v24  ;;  %v13222_v18 = vld [vmem:[%s14105_s3 + $0x3] ss:$0 sm:$0xff] }
 0x502   : > { %v6801_v36 = vmax.f32 %v6769_v8, 0.0 }
 0x503   : > { %v6799_v61 = vmax.f32 %v6767_v11, 0.0  ;;  %10735 = vmatprep.mubr.msk.f32.mxu0 %vm393_vm0, %v6798_v46 }
 0x505   : > { %10736 = vmatmul.mubr.msk.f32.gmra.mrb[204].mxu0 %vm393_vm0, %v6799_v61 }
 0x506   : > { %10738 = vmatprep.mubr.msk.f32.mxu0 %vm393_vm0, %v6800_v12 }
 0x509   : > { %10739 = vmatmul.mubr.msk.f32.gmra.mrb[206].mxu0 %vm393_vm0, %v6801_v36 }
 0x5a0   : > { %v10695_v31 = vpop.f32.mrb[176].mxu0 }
 0x5a1   : > { %v13225_v21 = vadd.f32 %v10695_v31, %v13222_v18  ;;  %v6968_v4 = vpop.f32.mrb[177].mxu0 }
 0x5a2   : > { %v13228_v5 = vadd.f32 %v13222_v18, %v6968_v4 }
 0x5a3   : > { %v7160_v35 = vmul.f32 0.5, %v13225_v21 }
 0x5a4   : > { %v7159_v40 = vmul.f32 0.5, %v13228_v5  ;;  %v10698_v37 = vpop.f32.mrb[178].mxu0 }
 0x5a5   : > { %v13233_v28 = vadd.f32 %v10698_v37, %v13222_v18  ;;  %v6978_v13 = vpop.f32.mrb[179].mxu0  ;;  %v7193_v50 = vmul.f32 1.442695, %v7160_v35 }
 0x5a6   : > { %v7191_v41 = vmul.f32 1.442695, %v7159_v40  ;;  %v13236_v9 = vadd.f32 %v13222_v18, %v6978_v13 }
 0x5a7   : > { %v7162_v33 = vmul.f32 0.5, %v13233_v28 }
 0x5a8   : > { %11391 = vpow2.f32 %v7191_v41  ;;  %v7161_v2 = vmul.f32 0.5, %v13236_v9  ;;  %v10701_v27 = vpop.f32.mrb[180].mxu0 }
 0x5a9   : > { %v7197_v17 = vmul.f32 1.442695, %v7162_v33  ;;  %v13241_v48 = vadd.f32 %v10701_v27, %v13222_v18  ;;  %v6988_v29 = vpop.f32.mrb[181].mxu0 }
 0x5aa   : > { %v13244_v26 = vadd.f32 %v13222_v18, %v6988_v29  ;;  %v7195_v32 = vmul.f32 1.442695, %v7161_v2 }
 0x5ab   : > { %11393 = vpow2.f32 %v7197_v17  ;;  %v7164_v60 = vmul.f32 0.5, %v13241_v48 }
 0x5ac   : > { %11395 = vpow2.f32 %v7193_v50  ;;  %v7163_v6 = vmul.f32 0.5, %v13244_v26  ;;  %v10704_v56 = vpop.f32.mrb[182].mxu0 }
 0x5ad   : > { %v13249_v20 = vadd.f32 %v10704_v56, %v13222_v18  ;;  %v6998_v47 = vpop.f32.mrb[183].mxu0  ;;  %11397 = vpow2.f32 %v7195_v32  ;;  %v7201_v34 = vmul.f32 1.442695, %v7164_v60 }
 0x5ae   : > { %v7199_v39 = vmul.f32 1.442695, %v7163_v6  ;;  %v13252_v55 = vadd.f32 %v13222_v18, %v6998_v47 }
 0x5af   : > { %v7166_v57 = vmul.f32 0.5, %v13249_v20 }
 0x5b0   : > { %11399 = vpow2.f32 %v7199_v39  ;;  %v7165_v59 = vmul.f32 0.5, %v13252_v55  ;;  %v10707_v52 = vpop.f32.mrb[184].mxu0 }
 0x5b1   : > { %v13257_v63 = vadd.f32 %v10707_v52, %v13222_v18  ;;  %v7008_v10 = vpop.f32.mrb[185].mxu0  ;;  %11401 = vpow2.f32 %v7201_v34  ;;  %v7205_v15 = vmul.f32 1.442695, %v7166_v57 }
 0x5b2   : > { %v11392_v0 = vpop.eup %11391  ;;  %v7203_v51 = vmul.f32 1.442695, %v7165_v59  ;;  %v13260_v45 = vadd.f32 %v13222_v18, %v7008_v10 }
 0x5b3   : > { %v7168_v19 = vmul.f32 0.5, %v13257_v63  ;;  %7287 = vrot.lane.b32.xlu0 %v11392_v0, %s11603_s18 }
 0x5b4   : > { %11403 = vpow2.f32 %v7203_v51  ;;  %v7167_v25 = vmul.f32 0.5, %v13260_v45  ;;  %v10710_v53 = vpop.f32.mrb[186].mxu0 }
 0x5b5   : > { %v11394_v42 = vpop.eup %11393  ;;  %v13266_v22 = vadd.f32 %v10710_v53, %v13222_v18  ;;  %v7018_v54 = vpop.f32.mrb[187].mxu0  ;;  %11405 = vpow2.f32 %v7205_v15  ;;  %v7209_v43 = vmul.f32 1.442695, %v7168_v19 }
 0x5b6   : > { %v11396_v49 = vpop.eup %11395  ;;  %v7207_v3 = vmul.f32 1.442695, %v7167_v25  ;;  %v13269_v1 = vadd.f32 %v13222_v18, %v7018_v54  ;;  %7293 = vrot.lane.b32.xlu1 %v11394_v42, %s11603_s18 }
 0x5b7   : > { %v7170_v58 = vmul.f32 0.5, %v13266_v22  ;;  %7289 = vrot.lane.b32.xlu0 %v11396_v49, %s11603_s18  ;;  %v11398_v23 = vpop.eup %11397 }
 0x5b8   : > { %11407 = vpow2.f32 %v7207_v3  ;;  %v7169_v44 = vmul.f32 0.5, %v13269_v1  ;;  %v10713_v38 = vpop.f32.mrb[188].mxu0 }
 0x5b9   : > { %v13276_v24 = vadd.f32 %v10713_v38, %v13222_v18  ;;  %v7028_v62 = vpop.f32.mrb[189].mxu0  ;;  %11409 = vpow2.f32 %v7209_v43  ;;  %v7213_v46 = vmul.f32 1.442695, %v7170_v58 }
 0x5ba   : > { %v11400_v14 = vpop.eup %11399  ;;  %v7211_v7 = vmul.f32 1.442695, %v7169_v44  ;;  %v13279_v30 = vadd.f32 %v13222_v18, %v7028_v62  ;;  %7291 = vrot.lane.b32.xlu1 %v11398_v23, %s11603_s18 }
 0x5bb   : > { %v7172_v11 = vmul.f32 0.5, %v13276_v24  ;;  %7295 = vrot.lane.b32.xlu0 %v11400_v14, %s11603_s18  ;;  %v11402_v12 = vpop.eup %11401 }
 0x5bc   : > { %11411 = vpow2.f32 %v7211_v7  ;;  %v7171_v8 = vmul.f32 0.5, %v13279_v30  ;;  %v10716_v61 = vpop.f32.mrb[190].mxu0 }
 0x5bd   : > { %v13286_v36 = vadd.f32 %v10716_v61, %v13222_v18  ;;  %v7038_v16 = vpop.f32.mrb[191].mxu0  ;;  %11413 = vpow2.f32 %v7213_v46  ;;  %v7217_v40 = vmul.f32 1.442695, %v7172_v11 }
 0x5be   : > { %v11404_v31 = vpop.eup %11403  ;;  %v7215_v4 = vmul.f32 1.442695, %v7171_v8  ;;  %v13289_v35 = vadd.f32 %v13222_v18, %v7038_v16  ;;  %7297 = vrot.lane.b32.xlu1 %v11402_v12, %s11603_s18 }
 0x5bf   : > { %v7174_v37 = vmul.f32 0.5, %v13286_v36  ;;  %7299 = vrot.lane.b32.xlu0 %v11404_v31, %s11603_s18  ;;  %v11406_v33 = vpop.eup %11405 }
 0x5c0   : > { %11415 = vpow2.f32 %v7215_v4  ;;  %v7173_v13 = vmul.f32 0.5, %v13289_v35  ;;  %v10719_v41 = vpop.f32.mrb[192].mxu0 }
 0x5c1   : > { %v13296_v50 = vadd.f32 %v10719_v41, %v13222_v18  ;;  %v7048_v2 = vpop.f32.mrb[193].mxu0  ;;  %11417 = vpow2.f32 %v7217_v40  ;;  %v7221_v32 = vmul.f32 1.442695, %v7174_v37 }
 0x5c2   : > { %v11408_v27 = vpop.eup %11407  ;;  %v7219_v17 = vmul.f32 1.442695, %v7173_v13  ;;  %v13299_v29 = vadd.f32 %v13222_v18, %v7048_v2  ;;  %7301 = vrot.lane.b32.xlu1 %v11406_v33, %s11603_s18 }
 0x5c3   : > { %v7176_v60 = vmul.f32 0.5, %v13296_v50  ;;  %7303 = vrot.lane.b32.xlu0 %v11408_v27, %s11603_s18  ;;  %v11410_v47 = vpop.eup %11409 }
 0x5c4   : > { %11419 = vpow2.f32 %v7219_v17  ;;  %v7175_v6 = vmul.f32 0.5, %v13299_v29  ;;  %v10722_v56 = vpop.f32.mrb[194].mxu0 }
 0x5c5   : > { %v13306_v39 = vadd.f32 %v10722_v56, %v13222_v18  ;;  %v7058_v34 = vpop.f32.mrb[195].mxu0  ;;  %11421 = vpow2.f32 %v7221_v32  ;;  %v7225_v10 = vmul.f32 1.442695, %v7176_v60 }
 0x5c6   : > { %v11412_v57 = vpop.eup %11411  ;;  %v7223_v59 = vmul.f32 1.442695, %v7175_v6  ;;  %v13309_v52 = vadd.f32 %v13222_v18, %v7058_v34  ;;  %7305 = vrot.lane.b32.xlu1 %v11410_v47, %s11603_s18 }
 0x5c7   : > { %v7178_v0 = vmul.f32 0.5, %v13306_v39  ;;  %7307 = vrot.lane.b32.xlu0 %v11412_v57, %s11603_s18  ;;  %v11414_v19 = vpop.eup %11413 }
 0x5c8   : > { %11423 = vpow2.f32 %v7223_v59  ;;  %v7177_v51 = vmul.f32 0.5, %v13309_v52  ;;  %v10725_v15 = vpop.f32.mrb[196].mxu0 }
 0x5c9   : > { %v13316_v25 = vadd.f32 %v10725_v15, %v13222_v18  ;;  %v7068_v53 = vpop.f32.mrb[197].mxu0  ;;  %11425 = vpow2.f32 %v7225_v10  ;;  %v7229_v3 = vmul.f32 1.442695, %v7178_v0 }
 0x5ca   : > { %v11416_v42 = vpop.eup %11415  ;;  %v7227_v54 = vmul.f32 1.442695, %v7177_v51  ;;  %v13319_v49 = vadd.f32 %v13222_v18, %v7068_v53  ;;  %7309 = vrot.lane.b32.xlu1 %v11414_v19, %s11603_s18 }
 0x5cb   : > { %v7180_v43 = vmul.f32 0.5, %v13316_v25  ;;  %7311 = vrot.lane.b32.xlu0 %v11416_v42, %s11603_s18  ;;  %v11418_v38 = vpop.eup %11417 }
 0x5cc   : > { %11427 = vpow2.f32 %v7227_v54  ;;  %v7179_v58 = vmul.f32 0.5, %v13319_v49  ;;  %v10728_v44 = vpop.f32.mrb[198].mxu0 }
 0x5cd   : > { %v13326_v23 = vadd.f32 %v10728_v44, %v13222_v18  ;;  %v7078_v62 = vpop.f32.mrb[199].mxu0  ;;  %11429 = vpow2.f32 %v7229_v3  ;;  %v7233_v11 = vmul.f32 1.442695, %v7180_v43 }
 0x5ce   : > { %v11420_v14 = vpop.eup %11419  ;;  %v7231_v7 = vmul.f32 1.442695, %v7179_v58  ;;  %v13329_v46 = vadd.f32 %v13222_v18, %v7078_v62  ;;  %7313 = vrot.lane.b32.xlu1 %v11418_v38, %s11603_s18 }
 0x5cf   : > { %v7182_v8 = vmul.f32 0.5, %v13326_v23  ;;  %7315 = vrot.lane.b32.xlu0 %v11420_v14, %s11603_s18  ;;  %v11422_v16 = vpop.eup %11421 }
 0x5d0   : > { %11431 = vpow2.f32 %v7231_v7  ;;  %v7181_v61 = vmul.f32 0.5, %v13329_v46  ;;  %v10731_v12 = vpop.f32.mrb[200].mxu0 }
 0x5d1   : > { %v13336_v31 = vadd.f32 %v10731_v12, %v13222_v18  ;;  %v7088_v4 = vpop.f32.mrb[201].mxu0  ;;  %11433 = vpow2.f32 %v7233_v11  ;;  %v7237_v41 = vmul.f32 1.442695, %v7182_v8 }
 0x5d2   : > { %v11424_v40 = vpop.eup %11423  ;;  %v7235_v37 = vmul.f32 1.442695, %v7181_v61  ;;  %v13339_v13 = vadd.f32 %v13222_v18, %v7088_v4  ;;  %7317 = vrot.lane.b32.xlu1 %v11422_v16, %s11603_s18 }
 0x5d3   : > { %v7184_v33 = vmul.f32 0.5, %v13336_v31  ;;  %7319 = vrot.lane.b32.xlu0 %v11424_v40, %s11603_s18  ;;  %v11426_v17 = vpop.eup %11425 }
 0x5d4   : > { %11435 = vpow2.f32 %v7235_v37  ;;  %v7183_v2 = vmul.f32 0.5, %v13339_v13  ;;  %v10734_v27 = vpop.f32.mrb[202].mxu0 }
 0x5d5   : > { %v13346_v32 = vadd.f32 %v10734_v27, %v13222_v18  ;;  %v7098_v60 = vpop.f32.mrb[203].mxu0  ;;  %11437 = vpow2.f32 %v7237_v41  ;;  %v7241_v34 = vmul.f32 1.442695, %v7184_v33 }
 0x5d6   : > { %v11428_v6 = vpop.eup %11427  ;;  %v7239_v56 = vmul.f32 1.442695, %v7183_v2  ;;  %v13349_v47 = vadd.f32 %v13222_v18, %v7098_v60  ;;  %7321 = vrot.lane.b32.xlu1 %v11426_v17, %s11603_s18 }
 0x5d7   : > { %v7186_v57 = vmul.f32 0.5, %v13346_v32  ;;  %7323 = vrot.lane.b32.xlu0 %v11428_v6, %s11603_s18  ;;  %v11430_v0 = vpop.eup %11429  ;;  %v11379_v6 = vld [vmem:[%s14104_s2 + $0x70] sm:$0xff]  }
 0x5d8   : > { %11439 = vpow2.f32 %v7239_v56  ;;  %v7185_v59 = vmul.f32 0.5, %v13349_v47  ;;  %v10737_v10 = vpop.f32.mrb[204].mxu0  ;;  %v11380_v56 = vld [vmem:[%s14104_s2 + $0x78] sm:$0xff]   ;;  %10775 = vmatprep.subr.bf16.mxu1 %v11379_v6 }
 0x5d9   : > { %v13356_v51 = vadd.f32 %v10737_v10, %v13222_v18  ;;  %v7108_v15 = vpop.f32.mrb[205].mxu0  ;;  %11441 = vpow2.f32 %v7241_v34  ;;  %v7245_v54 = vmul.f32 1.442695, %v7186_v57  ;;  %v7127_v34 = vld [vmem:[%s13442_s23] sm:$0xff]  ;;  %10776 = vmatpush3.bf16.msra.mxu1 %v11379_v6 }
 0x5da   : > { %v11432_v19 = vpop.eup %11431  ;;  %v7243_v53 = vmul.f32 1.442695, %v7185_v59  ;;  %v13359_v42 = vadd.f32 %v13222_v18, %v7108_v15  ;;  %7325 = vrot.lane.b32.xlu1 %v11430_v0, %s11603_s18  ;;  %v7128_v59 = vld [vmem:[%s13442_s23 + $0x8] sm:$0xff]  ;;  %v7130_v0 = vld [vmem:[%s13442_s23 + $0x18] sm:$0xff]  ;;  %10777 = vmatprep.subr.bf16.mxu1 %v11380_v56 }
 0x5db   : > { %v7188_v3 = vmul.f32 0.5, %v13356_v51  ;;  %7327 = vrot.lane.b32.xlu0 %v11432_v19, %s11603_s18  ;;  %v11434_v44 = vpop.eup %11433  ;;  %v11381_v19 = vld [vmem:[%s14104_s2 + $0x80] sm:$0xff]  }
 0x5dc   : > { %11443 = vpow2.f32 %v7243_v53  ;;  %v7187_v43 = vmul.f32 0.5, %v13359_v42  ;;  %v10740_v58 = vpop.f32.mrb[206].mxu0 }
 0x5dd   : > { %v13366_v38 = vadd.f32 %v10740_v58, %v13222_v18  ;;  %v7118_v62 = vpop.f32.mrb[207].mxu0  ;;  %11445 = vpow2.f32 %v7245_v54  ;;  %v7249_v8 = vmul.f32 1.442695, %v7188_v3  ;;  %v7129_v3 = vld [vmem:[%s13442_s23 + $0x10] sm:$0xff]  ;;  %10778 = vmatpush3.bf16.msra.mxu1 %v11380_v56 }
 0x5de   : > { %v11436_v14 = vpop.eup %11435  ;;  %v7247_v7 = vmul.f32 1.442695, %v7187_v43  ;;  %v13369_v11 = vadd.f32 %v13222_v18, %v7118_v62  ;;  %7329 = vrot.lane.b32.xlu1 %v11434_v44, %s11603_s18  ;;  %10779 = vmatprep.subr.bf16.mxu1 %v11381_v19 }
 0x5df   : > { %v7190_v61 = vmul.f32 0.5, %v13366_v38  ;;  %7331 = vrot.lane.b32.xlu0 %v11436_v14, %s11603_s18  ;;  %v11438_v16 = vpop.eup %11437  ;;  %v7131_v14 = vld [vmem:[%s13442_s23 + $0x20] sm:$0xff] }
 0x5e0   : > { %11447 = vpow2.f32 %v7247_v7  ;;  %v7189_v12 = vmul.f32 0.5, %v13369_v11  ;;  %v11382_v7 = vld [vmem:[%s14104_s2 + $0x88] sm:$0xff]  }
 0x5e1   : > { %11449 = vpow2.f32 %v7249_v8  ;;  %v7253_v37 = vmul.f32 1.442695, %v7190_v61  ;;  %10780 = vmatpush3.bf16.msra.mxu1 %v11381_v19 }
 0x5e2   : > { %v11440_v4 = vpop.eup %11439  ;;  %v7251_v40 = vmul.f32 1.442695, %v7189_v12  ;;  %7333 = vrot.lane.b32.xlu1 %v11438_v16, %s11603_s18  ;;  %v7132_v16 = vld [vmem:[%s13442_s23 + $0x28] sm:$0xff]  ;;  %10781 = vmatprep.subr.bf16.mxu1 %v11382_v7 }
 0x5e3   : > { %7335 = vrot.lane.b32.xlu0 %v11440_v4, %s11603_s18  ;;  %v11442_v18 = vpop.eup %11441 }
 0x5e4   : > { %11451 = vpow2.f32 %v7251_v40 }
 0x5e5   : > { %11453 = vpow2.f32 %v7253_v37  ;;  %v7133_v37 = vld [vmem:[%s13442_s23 + $0x30] sm:$0xff]  ;;  %10782 = vmatpush3.bf16.msra.mxu1 %v11382_v7  ;;  %v7140_v7 = vld [vmem:[%s13442_s23 + $0x68] sm:$0xff] }
 0x5e6   : > { %v11444_v41 = vpop.eup %11443  ;;  %7337 = vrot.lane.b32.xlu1 %v11442_v18, %s11603_s18 }
 0x5e7   : > { %7339 = vrot.lane.b32.xlu0 %v11444_v41, %s11603_s18  ;;  %v11446_v33 = vpop.eup %11445 }
 0x5ea   : > { %v11448_v2 = vpop.eup %11447  ;;  %7341 = vrot.lane.b32.xlu1 %v11446_v33, %s11603_s18 }
 0x5eb   : > { %7343 = vrot.lane.b32.xlu0 %v11448_v2, %s11603_s18  ;;  %v11450_v27 = vpop.eup %11449 }
 0x5ee   : > { %v11452_v17 = vpop.eup %11451  ;;  %7345 = vrot.lane.b32.xlu1 %v11450_v27, %s11603_s18 }
 0x5ef   : > { %7347 = vrot.lane.b32.xlu0 %v11452_v17, %s11603_s18  ;;  %v11454_v60 = vpop.eup %11453 }
 0x5f2   : > { %7349 = vrot.lane.b32.xlu1 %v11454_v60, %s11603_s18  ;;  %v7135_v60 = vld [vmem:[%s13442_s23 + $0x40] sm:$0xff] }
 0x5f3   : > { %8520 = vrot.lane.b32.xlu0 %v13228_v5, %s11604_s19 }
 0x5f6   : > { %8522 = vrot.lane.b32.xlu1 %v13225_v21, %s11604_s19 }
 0x5f7   : > { %8524 = vrot.lane.b32.xlu0 %v13236_v9, %s11604_s19 }
 0x5fa   : > { %8526 = vrot.lane.b32.xlu1 %v13233_v28, %s11604_s19 }
 0x5fb   : > { %8528 = vrot.lane.b32.xlu0 %v13244_v26, %s11604_s19 }
 0x5fe   : > { %8530 = vrot.lane.b32.xlu1 %v13241_v48, %s11604_s19 }
 0x5ff   : > { %8532 = vrot.lane.b32.xlu0 %v13252_v55, %s11604_s19 }
 0x602   : > { %8534 = vrot.lane.b32.xlu1 %v13249_v20, %s11604_s19 }
 0x603   : > { %8536 = vrot.lane.b32.xlu0 %v13260_v45, %s11604_s19 }
 0x606   : > { %8538 = vrot.lane.b32.xlu1 %v13257_v63, %s11604_s19 }
 0x607   : > { %8540 = vrot.lane.b32.xlu0 %v13269_v1, %s11604_s19 }
 0x60a   : > { %8542 = vrot.lane.b32.xlu1 %v13266_v22, %s11604_s19 }
 0x60b   : > { %8544 = vrot.lane.b32.xlu0 %v13279_v30, %s11604_s19 }
 0x60e   : > { %8546 = vrot.lane.b32.xlu1 %v13276_v24, %s11604_s19 }
 0x60f   : > { %8548 = vrot.lane.b32.xlu0 %v13289_v35, %s11604_s19 }
 0x612   : > { %8550 = vrot.lane.b32.xlu1 %v13286_v36, %s11604_s19 }
 0x613   : > { %8552 = vrot.lane.b32.xlu0 %v13299_v29, %s11604_s19 }
 0x616   : > { %8554 = vrot.lane.b32.xlu1 %v13296_v50, %s11604_s19 }
 0x617   : > { %8556 = vrot.lane.b32.xlu0 %v13309_v52, %s11604_s19 }
 0x61a   : > { %8558 = vrot.lane.b32.xlu1 %v13306_v39, %s11604_s19 }
 0x61b   : > { %8560 = vrot.lane.b32.xlu0 %v13319_v49, %s11604_s19 }
 0x61e   : > { %8562 = vrot.lane.b32.xlu1 %v13316_v25, %s11604_s19 }
 0x61f   : > { %8564 = vrot.lane.b32.xlu0 %v13329_v46, %s11604_s19 }
 0x622   : > { %8566 = vrot.lane.b32.xlu1 %v13326_v23, %s11604_s19 }
 0x623   : > { %8568 = vrot.lane.b32.xlu0 %v13339_v13, %s11604_s19 }
 0x625   : > { %v7288_v57 = vpop.permute.xlu0 %7287 }
 0x626   : > { %8570 = vrot.lane.b32.xlu1 %v13336_v31, %s11604_s19  ;;  %v7383_v10 = vmul.f32 %v7288_v57, %v7127_v34  ;;  %v7136_v57 = vld [vmem:[%s13442_s23 + $0x48] sm:$0xff] }
 0x627   : > { %8572 = vrot.lane.b32.xlu0 %v13349_v47, %s11604_s19 }
 0x628   : > { %v7294_v15 = vpop.permute.xlu1 %7293  ;;  %v7415_v58 = vadd.f32 %v7383_v10, %v13228_v5 }
 0x629   : > { %v7290_v53 = vpop.permute.xlu0 %7289  ;;  %v7386_v43 = vmul.f32 %v7294_v15, %v7130_v0  ;;  %v7137_v0 = vld [vmem:[%s13442_s23 + $0x50] sm:$0xff] }
 0x62a   : > { %v7384_v54 = vmul.f32 %v7290_v53, %v7128_v59  ;;  %8574 = vrot.lane.b32.xlu1 %v13346_v32, %s11604_s19 }
 0x62b   : > { %8576 = vrot.lane.b32.xlu0 %v13359_v42, %s11604_s19  ;;  %v7418_v5 = vadd.f32 %v7386_v43, %v13233_v28  ;;  %v7134_v28 = vld [vmem:[%s13442_s23 + $0x38] sm:$0xff] }
 0x62c   : > { %v7416_v44 = vadd.f32 %v7384_v54, %v13225_v21  ;;  %v7292_v62 = vpop.permute.xlu1 %7291  ;;  %v7138_v54 = vld [vmem:[%s13442_s23 + $0x58] sm:$0xff] }
 0x62d   : > { %v7385_v8 = vmul.f32 %v7292_v62, %v7129_v3  ;;  %v7296_v61 = vpop.permute.xlu0 %7295 }
 0x62e   : > { %v7447_v12 = vpack.c.bf16 %v7416_v44, %v7415_v58  ;;  %8578 = vrot.lane.b32.xlu1 %v13356_v51, %s11604_s19  ;;  %v7387_v4 = vmul.f32 %v7296_v61, %v7131_v14 }
 0x62f   : > { %v7417_v21 = vadd.f32 %v7385_v8, %v13236_v9  ;;  %8580 = vrot.lane.b32.xlu0 %v13369_v11, %s11604_s19 }
 0x630   : > { %v7298_v40 = vpop.permute.xlu1 %7297  ;;  %10743 = vmatprep.mubr.msk.bf16.mxu0 %vm5144_vm1, %v7447_v12  ;;  %v7419_v9 = vadd.f32 %v7387_v4, %v13244_v26  ;;  %v7142_v4 = vld [vmem:[%s13442_s23 + $0x78] sm:$0xff] }
 0x631   : > { %v7448_v18 = vpack.c.bf16 %v7418_v5, %v7417_v21  ;;  %v7388_v41 = vmul.f32 %v7298_v40, %v7132_v16  ;;  %v7300_v33 = vpop.permute.xlu0 %7299 }
 0x632   : > { %8582 = vrot.lane.b32.xlu1 %v13366_v38, %s11604_s19  ;;  %v7389_v27 = vmul.f32 %v7300_v33, %v7133_v37 }
 0x633   : > { %v7420_v2 = vadd.f32 %v7388_v41, %v13241_v48  ;;  %10744 = vmatmul.mubr.msk.bf16.vlgmr.msra.gmra.mrb[208].mxu0 %vm5144_vm1, %v7448_v18 }
 0x634   : > { %v7302_v17 = vpop.permute.xlu1 %7301  ;;  %v7421_v59 = vadd.f32 %v7389_v27, %v13252_v55  ;;  %v7139_v55 = vld [vmem:[%s13442_s23 + $0x60] sm:$0xff] }
 0x635   : > { %v7449_v6 = vpack.c.bf16 %v7420_v2, %v7419_v9  ;;  %v7390_v56 = vmul.f32 %v7302_v17, %v7134_v28  ;;  %v7304_v34 = vpop.permute.xlu0 %7303  ;;  %v7144_v9 = vld [vmem:[%s13442_s23 + $0x88] sm:$0xff] }
 0x636   : > { %v7391_v26 = vmul.f32 %v7304_v34, %v7135_v60  ;;  %v7146_v34 = vld [vmem:[%s13442_s23 + $0x98] sm:$0xff] }
 0x637   : > { %v7422_v10 = vadd.f32 %v7390_v56, %v13249_v20  ;;  %10747 = vmatprep.mubr.msk.bf16.mxu0 %vm5144_vm1, %v7449_v6 }
 0x638   : > { %v7306_v48 = vpop.permute.xlu1 %7305  ;;  %v7423_v3 = vadd.f32 %v7391_v26, %v13260_v45  ;;  %v7141_v45 = vld [vmem:[%s13442_s23 + $0x70] sm:$0xff] }
 0x639   : > { %v7450_v15 = vpack.c.bf16 %v7422_v10, %v7421_v59  ;;  %v7392_v19 = vmul.f32 %v7306_v48, %v7136_v57  ;;  %v7308_v53 = vpop.permute.xlu0 %7307 }
 0x63a   : > { %v7393_v58 = vmul.f32 %v7308_v53, %v7137_v0 }
 0x63b   : > { %v7424_v43 = vadd.f32 %v7392_v19, %v13257_v63  ;;  %10748 = vmatmul.mubr.msk.bf16.gmra.mrb[212].mxu0 %vm5144_vm1, %v7450_v15  ;;  %v7148_v15 = vld [vmem:[%s13442_s23 + $0xa8] sm:$0xff] }
 0x63c   : > { %v7310_v20 = vpop.permute.xlu1 %7309  ;;  %v7425_v8 = vadd.f32 %v7393_v58, %v13269_v1  ;;  %v7143_v1 = vld [vmem:[%s13442_s23 + $0x80] sm:$0xff] }
 0x63d   : > { %v7451_v44 = vpack.c.bf16 %v7424_v43, %v7423_v3  ;;  %v7394_v62 = vmul.f32 %v7310_v20, %v7138_v54  ;;  %v7312_v14 = vpop.permute.xlu0 %7311  ;;  %v7150_v20 = vld [vmem:[%s13442_s23 + $0xb8] sm:$0xff] }
 0x63e   : > { %v7395_v12 = vmul.f32 %v7312_v14, %v7139_v55 }
 0x63f   : > { %v7426_v61 = vadd.f32 %v7394_v62, %v13266_v22  ;;  %10751 = vmatprep.mubr.msk.bf16.mxu0 %vm5144_vm1, %v7451_v44 }
 0x640   : > { %v7314_v63 = vpop.permute.xlu1 %7313  ;;  %v7427_v40 = vadd.f32 %v7395_v12, %v13279_v30  ;;  %v7145_v30 = vld [vmem:[%s13442_s23 + $0x90] sm:$0xff] }
 0x641   : > { %v7452_v16 = vpack.c.bf16 %v7426_v61, %v7425_v8  ;;  %v7396_v5 = vmul.f32 %v7314_v63, %v7140_v7  ;;  %v7316_v21 = vpop.permute.xlu0 %7315  ;;  %v7152_v61 = vld [vmem:[%s13442_s23 + $0xc8] sm:$0xff] }
 0x642   : > { %v7397_v18 = vmul.f32 %v7316_v21, %v7141_v45 }
 0x643   : > { %v7428_v37 = vadd.f32 %v7396_v5, %v13276_v24  ;;  %10752 = vmatmul.mubr.msk.bf16.gmra.mrb[216].mxu0 %vm5144_vm1, %v7452_v16 }
 0x644   : > { %v7318_v22 = vpop.permute.xlu1 %7317  ;;  %v7429_v2 = vadd.f32 %v7397_v18, %v13289_v35  ;;  %v7147_v35 = vld [vmem:[%s13442_s23 + $0xa0] sm:$0xff] }
 0x645   : > { %v7453_v41 = vpack.c.bf16 %v7428_v37, %v7427_v40  ;;  %v7398_v33 = vmul.f32 %v7318_v22, %v7142_v4  ;;  %v7320_v28 = vpop.permute.xlu0 %7319  ;;  %v7154_v4 = vld [vmem:[%s13442_s23 + $0xd8] sm:$0xff] }
 0x646   : > { %v7399_v17 = vmul.f32 %v7320_v28, %v7143_v1 }
 0x647   : > { %v7430_v27 = vadd.f32 %v7398_v33, %v13286_v36  ;;  %10755 = vmatprep.mubr.msk.bf16.mxu0 %vm5144_vm1, %v7453_v41  ;;  %v7156_v33 = vld [vmem:[%s13442_s23 + $0xe8] sm:$0xff] }
 0x648   : > { %v7322_v24 = vpop.permute.xlu1 %7321  ;;  %v7431_v57 = vadd.f32 %v7399_v17, %v13299_v29  ;;  %v7149_v29 = vld [vmem:[%s13442_s23 + $0xb0] sm:$0xff] }
 0x649   : > { %v7454_v60 = vpack.c.bf16 %v7430_v27, %v7429_v2  ;;  %v7400_v6 = vmul.f32 %v7322_v24, %v7144_v9  ;;  %v7324_v56 = vpop.permute.xlu0 %7323  ;;  %v7157_v27 = vld [vmem:[%s13442_s23 + $0xf0] sm:$0xff] }
 0x64a   : > { %v7401_v10 = vmul.f32 %v7324_v56, %v7145_v30  ;;  %v7158_v30 = vld [vmem:[%s13442_s23 + $0xf8] sm:$0xff] }
 0x64b   : > { %v7432_v59 = vadd.f32 %v7400_v6, %v13296_v50  ;;  %10756 = vmatmul.mubr.msk.bf16.gmra.mrb[220].mxu0 %vm5144_vm1, %v7454_v60 }
 0x64c   : > { %v7326_v36 = vpop.permute.xlu1 %7325  ;;  %v7433_v19 = vadd.f32 %v7401_v10, %v13309_v52  ;;  %v7151_v52 = vld [vmem:[%s13442_s23 + $0xc0] sm:$0xff] }
 0x64d   : > { %v7455_v26 = vpack.c.bf16 %v7432_v59, %v7431_v57  ;;  %v7402_v48 = vmul.f32 %v7326_v36, %v7146_v34  ;;  %v7328_v0 = vpop.permute.xlu0 %7327  ;;  %v11387_v36 = vld [vmem:[%s14104_s2 + $0xb0] sm:$0xff]  }
 0x64e   : > { %v7403_v54 = vmul.f32 %v7328_v0, %v7147_v35  ;;  %v11388_v35 = vld [vmem:[%s14104_s2 + $0xb8] sm:$0xff]  }
 0x64f   : > { %v7434_v53 = vadd.f32 %v7402_v48, %v13306_v39  ;;  %10759 = vmatprep.mubr.msk.bf16.mxu0 %vm5144_vm1, %v7455_v26  ;;  %v11389_v26 = vld [vmem:[%s14104_s2 + $0xc0] sm:$0xff]  }
 0x650   : > { %v7330_v50 = vpop.permute.xlu1 %7329  ;;  %v7435_v55 = vadd.f32 %v7403_v54, %v13319_v49  ;;  %v7153_v49 = vld [vmem:[%s13442_s23 + $0xd0] sm:$0xff]  ;;  %v13576_v48 = vld [vmem:[%s14105_s3 + $0x4] ss:$0 sm:$0xff] }
 0x651   : > { %v7456_v3 = vpack.c.bf16 %v7434_v53, %v7433_v19  ;;  %v7404_v43 = vmul.f32 %v7330_v50, %v7148_v15  ;;  %v7332_v58 = vpop.permute.xlu0 %7331 }
 0x652   : > { %v7405_v62 = vmul.f32 %v7332_v58, %v7149_v29 }
 0x653   : > { %v7436_v44 = vadd.f32 %v7404_v43, %v13316_v25  ;;  %10760 = vmatmul.mubr.msk.bf16.gmra.mrb[224].mxu0 %vm5144_vm1, %v7456_v3 }
 0x654   : > { %v7334_v39 = vpop.permute.xlu1 %7333  ;;  %v7437_v12 = vadd.f32 %v7405_v62, %v13329_v46  ;;  %v7155_v46 = vld [vmem:[%s13442_s23 + $0xe0] sm:$0xff] }
 0x655   : > { %v7457_v14 = vpack.c.bf16 %v7436_v44, %v7435_v55  ;;  %v7406_v7 = vmul.f32 %v7334_v39, %v7150_v20  ;;  %v7336_v8 = vpop.permute.xlu0 %7335 }
 0x656   : > { %v7407_v45 = vmul.f32 %v7336_v8, %v7151_v52 }
 0x657   : > { %v7438_v63 = vadd.f32 %v7406_v7, %v13326_v23  ;;  %10763 = vmatprep.mubr.msk.bf16.mxu0 %vm5144_vm1, %v7457_v14 }
 0x658   : > { %v7338_v25 = vpop.permute.xlu1 %7337  ;;  %v7439_v40 = vadd.f32 %v7407_v45, %v13339_v13 }
 0x659   : > { %v7458_v16 = vpack.c.bf16 %v7438_v63, %v7437_v12  ;;  %v7408_v5 = vmul.f32 %v7338_v25, %v7152_v61  ;;  %v7340_v21 = vpop.permute.xlu0 %7339 }
 0x65a   : > { %v7409_v18 = vmul.f32 %v7340_v21, %v7153_v49 }
 0x65b   : > { %v7440_v37 = vadd.f32 %v7408_v5, %v13336_v31  ;;  %10764 = vmatmul.mubr.msk.bf16.gmra.mrb[228].mxu0 %vm5144_vm1, %v7458_v16 }
 0x65c   : > { %v7342_v23 = vpop.permute.xlu1 %7341  ;;  %v7441_v28 = vadd.f32 %v7409_v18, %v13349_v47 }
 0x65d   : > { %v7459_v22 = vpack.c.bf16 %v7440_v37, %v7439_v40  ;;  %v7410_v1 = vmul.f32 %v7342_v23, %v7154_v4  ;;  %v7344_v41 = vpop.permute.xlu0 %7343 }
 0x65e   : > { %v7411_v2 = vmul.f32 %v7344_v41, %v7155_v46 }
 0x65f   : > { %v7442_v9 = vadd.f32 %v7410_v1, %v13346_v32  ;;  %10767 = vmatprep.mubr.msk.bf16.mxu0 %vm5144_vm1, %v7459_v22 }
 0x660   : > { %v7346_v13 = vpop.permute.xlu1 %7345  ;;  %v7443_v60 = vadd.f32 %v7411_v2, %v13359_v42  ;;  %v11383_v42 = vld [vmem:[%s14104_s2 + $0x90] sm:$0xff]  }
 0x661   : > { %v7460_v31 = vpack.c.bf16 %v7442_v9, %v7441_v28  ;;  %v7412_v17 = vmul.f32 %v7346_v13, %v7156_v33  ;;  %v7348_v24 = vpop.permute.xlu0 %7347  ;;  %10815 = vmatprep.subr.bf16.mxu0 %v11383_v42 }
 0x662   : > { %v7413_v56 = vmul.f32 %v7348_v24, %v7157_v27  ;;  %10816 = vmatpush3.bf16.msra.mxu0 %v11383_v42 }
 0x663   : > { %v7444_v6 = vadd.f32 %v7412_v17, %v13356_v51  ;;  %10768 = vmatmul.mubr.msk.bf16.gmra.mrb[232].mxu0 %vm5144_vm1, %v7460_v31  ;;  %v11384_v51 = vld [vmem:[%s14104_s2 + $0x98] sm:$0xff]  }
 0x664   : > { %v7350_v34 = vpop.permute.xlu1 %7349  ;;  %v7445_v32 = vadd.f32 %v7413_v56, %v13369_v11  ;;  %10817 = vmatprep.subr.bf16.mxu0 %v11384_v51  ;;  %v11386_v11 = vld [vmem:[%s14104_s2 + $0xa8] sm:$0xff]  }
 0x665   : > { %v7461_v47 = vpack.c.bf16 %v7444_v6, %v7443_v60  ;;  %v7414_v57 = vmul.f32 %v7350_v34, %v7158_v30 }
 0x666   : > { %10818 = vmatpush3.bf16.msra.mxu0 %v11384_v51 }
 0x667   : > { %v7446_v59 = vadd.f32 %v7414_v57, %v13366_v38  ;;  %10771 = vmatprep.mubr.msk.bf16.mxu0 %vm5144_vm1, %v7461_v47  ;;  %v11385_v38 = vld [vmem:[%s14104_s2 + $0xa0] sm:$0xff]  }
 0x668   : > { %10819 = vmatprep.subr.bf16.mxu0 %v11385_v38 }
 0x669   : > { %v7462_v10 = vpack.c.bf16 %v7446_v59, %v7445_v32 }
 0x66a   : > { %10820 = vmatpush3.bf16.msra.mxu0 %v11385_v38 }
 0x66b   : > { %10772 = vmatmul.mubr.msk.bf16.gmra.mrb[236].mxu0 %vm5144_vm1, %v7462_v10  ;;  %10821 = vmatprep.subr.bf16.mxu0 %v11386_v11 }
 0x66e   : > { %10822 = vmatpush3.bf16.msra.mxu0 %v11386_v11 }
 0x66f   : > { %10823 = vmatprep.subr.bf16.mxu0 %v11387_v36 }
 0x672   : > { %10824 = vmatpush3.bf16.msra.mxu0 %v11387_v36 }
 0x673   : > { %10825 = vmatprep.subr.bf16.mxu0 %v11388_v35 }
 0x676   : > { %10826 = vmatpush3.bf16.msra.mxu0 %v11388_v35 }
 0x677   : > { %10827 = vmatprep.subr.bf16.mxu0 %v11389_v26 }
 0x67a   : > { %10828 = vmatpush3.bf16.msra.mxu0 %v11389_v26 }
 0x706   : > { %v10745_v0 = vpop.f32.mrb[208].mxu0 }
 0x707   : > { %v7564_v15 = vadd.f32 %v10745_v0, %v13576_v48  ;;  %v7555_v19 = vpop.f32.mrb[209].mxu0 }
 0x708   : > { %v7556_v53 = vadd.f32 %v13576_v48, %v7555_v19  ;;  %v10746_v54 = vpop.f32.mrb[210].mxu0 }
 0x709   : > { %v7567_v50 = vadd.f32 %v10746_v54, %v13576_v48  ;;  %v7558_v29 = vpop.f32.mrb[211].mxu0  ;;  %v7684_v43 = vmax.f32 %v7564_v15, 0.0 }
 0x70a   : > { %v7559_v3 = vadd.f32 %v13576_v48, %v7558_v29  ;;  %v7682_v20 = vmax.f32 %v7556_v53, 0.0 }
 0x70b   : > { %v7685_v58 = vmax.f32 %v7567_v50, 0.0 }
 0x70c   : > { %v7683_v55 = vmax.f32 %v7559_v3, 0.0 }
 0x70d   : > { %v7715_v44 = vpack.c.bf16 %v7685_v58, %v7684_v43 }
 0x70e   : > { %v7714_v62 = vpack.c.bf16 %v7683_v55, %v7682_v20  ;;  %v10749_v39 = vpop.f32.mrb[212].mxu0 }
 0x70f   : > { %v7580_v52 = vadd.f32 %v10749_v39, %v13576_v48  ;;  %v7571_v14 = vpop.f32.mrb[213].mxu0 }
 0x710   : > { %v7572_v7 = vadd.f32 %v13576_v48, %v7571_v14  ;;  %v10750_v8 = vpop.f32.mrb[214].mxu0  ;;  %10783 = vmatprep.mubr.msk.bf16.mxu1 %vm7758_vm2, %v7714_v62 }
 0x711   : > { %v7583_v61 = vadd.f32 %v10750_v8, %v13576_v48  ;;  %v7574_v12 = vpop.f32.mrb[215].mxu0  ;;  %10784 = vmatmul.mubr.msk.bf16.vlgmr.msra.gmra.mrb[208].mxu1 %vm7758_vm2, %v7715_v44  ;;  %v7688_v45 = vmax.f32 %v7580_v52, 0.0 }
 0x712   : > { %v7575_v63 = vadd.f32 %v13576_v48, %v7574_v12  ;;  %v7686_v49 = vmax.f32 %v7572_v7, 0.0 }
 0x713   : > { %v7689_v25 = vmax.f32 %v7583_v61, 0.0 }
 0x714   : > { %v7687_v16 = vmax.f32 %v7575_v63, 0.0 }
 0x715   : > { %v7717_v5 = vpack.c.bf16 %v7689_v25, %v7688_v45 }
 0x716   : > { %v7716_v21 = vpack.c.bf16 %v7687_v16, %v7686_v49  ;;  %v10753_v4 = vpop.f32.mrb[216].mxu0 }
 0x717   : > { %v7596_v40 = vadd.f32 %v10753_v4, %v13576_v48  ;;  %v7587_v37 = vpop.f32.mrb[217].mxu0 }
 0x718   : > { %v7588_v18 = vadd.f32 %v13576_v48, %v7587_v37  ;;  %v10754_v23 = vpop.f32.mrb[218].mxu0  ;;  %10787 = vmatprep.mubr.msk.bf16.mxu1 %vm7758_vm2, %v7716_v21 }
 0x719   : > { %v7599_v46 = vadd.f32 %v10754_v23, %v13576_v48  ;;  %v7590_v22 = vpop.f32.mrb[219].mxu0  ;;  %10788 = vmatmul.mubr.msk.bf16.gmra.mrb[212].mxu1 %vm7758_vm2, %v7717_v5  ;;  %v7692_v41 = vmax.f32 %v7596_v40, 0.0 }
 0x71a   : > { %v7591_v1 = vadd.f32 %v13576_v48, %v7590_v22  ;;  %v7690_v28 = vmax.f32 %v7588_v18, 0.0 }
 0x71b   : > { %v7693_v33 = vmax.f32 %v7599_v46, 0.0 }
 0x71c   : > { %v7691_v9 = vmax.f32 %v7591_v1, 0.0 }
 0x71d   : > { %v7719_v2 = vpack.c.bf16 %v7693_v33, %v7692_v41 }
 0x71e   : > { %v7718_v13 = vpack.c.bf16 %v7691_v9, %v7690_v28  ;;  %v10757_v27 = vpop.f32.mrb[220].mxu0 }
 0x71f   : > { %v7612_v31 = vadd.f32 %v10757_v27, %v13576_v48  ;;  %v7603_v17 = vpop.f32.mrb[221].mxu0 }
 0x720   : > { %v7604_v24 = vadd.f32 %v13576_v48, %v7603_v17  ;;  %v10758_v30 = vpop.f32.mrb[222].mxu0  ;;  %10791 = vmatprep.mubr.msk.bf16.mxu1 %vm7758_vm2, %v7718_v13 }
 0x721   : > { %v7615_v60 = vadd.f32 %v10758_v30, %v13576_v48  ;;  %v7606_v6 = vpop.f32.mrb[223].mxu0  ;;  %10792 = vmatmul.mubr.msk.bf16.gmra.mrb[216].mxu1 %vm7758_vm2, %v7719_v2  ;;  %v7696_v34 = vmax.f32 %v7612_v31, 0.0 }
 0x722   : > { %v7607_v56 = vadd.f32 %v13576_v48, %v7606_v6  ;;  %v7694_v57 = vmax.f32 %v7604_v24, 0.0 }
 0x723   : > { %v7697_v47 = vmax.f32 %v7615_v60, 0.0 }
 0x724   : > { %v7695_v32 = vmax.f32 %v7607_v56, 0.0  ;;  %v11390_v56 = vld [vmem:[%s14104_s2 + $0xc8] sm:$0xff]  }
 0x725   : > { %v7721_v59 = vpack.c.bf16 %v7697_v47, %v7696_v34  ;;  %10829 = vmatprep.subr.bf16.mxu0 %v11390_v56 }
 0x726   : > { %v7720_v10 = vpack.c.bf16 %v7695_v32, %v7694_v57  ;;  %v10761_v42 = vpop.f32.mrb[224].mxu0  ;;  %10830 = vmatpush3.bf16.msra.mxu0 %v11390_v56 }
 0x727   : > { %v7628_v51 = vadd.f32 %v10761_v42, %v13576_v48  ;;  %v7619_v38 = vpop.f32.mrb[225].mxu0 }
 0x728   : > { %v7620_v11 = vadd.f32 %v13576_v48, %v7619_v38  ;;  %v10762_v36 = vpop.f32.mrb[226].mxu0  ;;  %10795 = vmatprep.mubr.msk.bf16.mxu1 %vm7758_vm2, %v7720_v10 }
 0x729   : > { %v7631_v35 = vadd.f32 %v10762_v36, %v13576_v48  ;;  %v7622_v26 = vpop.f32.mrb[227].mxu0  ;;  %10796 = vmatmul.mubr.msk.bf16.gmra.mrb[220].mxu1 %vm7758_vm2, %v7721_v59  ;;  %v7700_v15 = vmax.f32 %v7628_v51, 0.0 }
 0x72a   : > { %v7623_v0 = vadd.f32 %v13576_v48, %v7622_v26  ;;  %v7698_v53 = vmax.f32 %v7620_v11, 0.0 }
 0x72b   : > { %v7701_v19 = vmax.f32 %v7631_v35, 0.0 }
 0x72c   : > { %v7699_v54 = vmax.f32 %v7623_v0, 0.0 }
 0x72d   : > { %v7723_v50 = vpack.c.bf16 %v7701_v19, %v7700_v15 }
 0x72e   : > { %v7722_v29 = vpack.c.bf16 %v7699_v54, %v7698_v53  ;;  %v10765_v3 = vpop.f32.mrb[228].mxu0 }
 0x72f   : > { %v7644_v43 = vadd.f32 %v10765_v3, %v13576_v48  ;;  %v7635_v58 = vpop.f32.mrb[229].mxu0 }
 0x730   : > { %v7636_v20 = vadd.f32 %v13576_v48, %v7635_v58  ;;  %v10766_v55 = vpop.f32.mrb[230].mxu0  ;;  %10799 = vmatprep.mubr.msk.bf16.mxu1 %vm7758_vm2, %v7722_v29 }
 0x731   : > { %v7647_v44 = vadd.f32 %v10766_v55, %v13576_v48  ;;  %v7638_v62 = vpop.f32.mrb[231].mxu0  ;;  %10800 = vmatmul.mubr.msk.bf16.gmra.mrb[224].mxu1 %vm7758_vm2, %v7723_v50  ;;  %v7704_v52 = vmax.f32 %v7644_v43, 0.0 }
 0x732   : > { %v7639_v39 = vadd.f32 %v13576_v48, %v7638_v62  ;;  %v7702_v7 = vmax.f32 %v7636_v20, 0.0 }
 0x733   : > { %v7705_v14 = vmax.f32 %v7647_v44, 0.0 }
 0x734   : > { %v7703_v8 = vmax.f32 %v7639_v39, 0.0 }
 0x735   : > { %v7725_v61 = vpack.c.bf16 %v7705_v14, %v7704_v52 }
 0x736   : > { %v7724_v12 = vpack.c.bf16 %v7703_v8, %v7702_v7  ;;  %v10769_v63 = vpop.f32.mrb[232].mxu0 }
 0x737   : > { %v7660_v45 = vadd.f32 %v10769_v63, %v13576_v48  ;;  %v7651_v25 = vpop.f32.mrb[233].mxu0 }
 0x738   : > { %v7652_v49 = vadd.f32 %v13576_v48, %v7651_v25  ;;  %v10770_v16 = vpop.f32.mrb[234].mxu0  ;;  %10803 = vmatprep.mubr.msk.bf16.mxu1 %vm7758_vm2, %v7724_v12 }
 0x739   : > { %v7663_v5 = vadd.f32 %v10770_v16, %v13576_v48  ;;  %v7654_v21 = vpop.f32.mrb[235].mxu0  ;;  %10804 = vmatmul.mubr.msk.bf16.gmra.mrb[228].mxu1 %vm7758_vm2, %v7725_v61  ;;  %v7708_v40 = vmax.f32 %v7660_v45, 0.0 }
 0x73a   : > { %v7655_v4 = vadd.f32 %v13576_v48, %v7654_v21  ;;  %v7706_v18 = vmax.f32 %v7652_v49, 0.0 }
 0x73b   : > { %v7709_v37 = vmax.f32 %v7663_v5, 0.0 }
 0x73c   : > { %v7707_v23 = vmax.f32 %v7655_v4, 0.0 }
 0x73d   : > { %v7727_v46 = vpack.c.bf16 %v7709_v37, %v7708_v40 }
 0x73e   : > { %v7726_v22 = vpack.c.bf16 %v7707_v23, %v7706_v18  ;;  %v10773_v1 = vpop.f32.mrb[236].mxu0 }
 0x73f   : > { %v7676_v41 = vadd.f32 %v10773_v1, %v13576_v48  ;;  %v7667_v33 = vpop.f32.mrb[237].mxu0 }
 0x740   : > { %v7668_v28 = vadd.f32 %v13576_v48, %v7667_v33  ;;  %v10774_v9 = vpop.f32.mrb[238].mxu0  ;;  %10807 = vmatprep.mubr.msk.bf16.mxu1 %vm7758_vm2, %v7726_v22 }
 0x741   : > { %v7679_v2 = vadd.f32 %v10774_v9, %v13576_v48  ;;  %v7670_v13 = vpop.f32.mrb[239].mxu0  ;;  %10808 = vmatmul.mubr.msk.bf16.gmra.mrb[232].mxu1 %vm7758_vm2, %v7727_v46  ;;  %v7712_v31 = vmax.f32 %v7676_v41, 0.0 }
 0x742   : > { %v7671_v27 = vadd.f32 %v13576_v48, %v7670_v13  ;;  %v7710_v24 = vmax.f32 %v7668_v28, 0.0  ;;  %v13632_v48 = vld [vmem:[%s14105_s3 + $0x5] ss:$0 sm:$0xff] }
 0x743   : > { %v7713_v17 = vmax.f32 %v7679_v2, 0.0 }
 0x744   : > { %v7711_v30 = vmax.f32 %v7671_v27, 0.0 }
 0x745   : > { %v7729_v60 = vpack.c.bf16 %v7713_v17, %v7712_v31 }
 0x746   : > { %v7728_v6 = vpack.c.bf16 %v7711_v30, %v7710_v24 }
 0x748   : > { %10811 = vmatprep.mubr.msk.bf16.mxu1 %vm7758_vm2, %v7728_v6 }
 0x749   : > { %10812 = vmatmul.mubr.msk.bf16.gmra.mrb[236].mxu1 %vm7758_vm2, %v7729_v60 }
 0x7e4   : > { %v10785_v34 = vpop.f32.mrb[208].mxu1 }
 0x7e5   : > { %v7850_v47 = vadd.f32 %v10785_v34, %v13632_v48  ;;  %v7841_v57 = vpop.f32.mrb[209].mxu1 }
 0x7e6   : > { %v7842_v32 = vadd.f32 %v13632_v48, %v7841_v57  ;;  %v10786_v59 = vpop.f32.mrb[210].mxu1 }
 0x7e7   : > { %v7853_v10 = vadd.f32 %v10786_v59, %v13632_v48  ;;  %v7844_v42 = vpop.f32.mrb[211].mxu1  ;;  %v7970_v38 = vmax.f32 %v7850_v47, 0.0 }
 0x7e8   : > { %v7845_v51 = vadd.f32 %v13632_v48, %v7844_v42  ;;  %v7968_v36 = vmax.f32 %v7842_v32, 0.0 }
 0x7e9   : > { %v7971_v11 = vmax.f32 %v7853_v10, 0.0 }
 0x7ea   : > { %v7969_v35 = vmax.f32 %v7845_v51, 0.0 }
 0x7eb   : > { %v8001_v26 = vpack.c.bf16 %v7971_v11, %v7970_v38 }
 0x7ec   : > { %v8000_v0 = vpack.c.bf16 %v7969_v35, %v7968_v36  ;;  %v10789_v15 = vpop.f32.mrb[212].mxu1 }
 0x7ed   : > { %v7866_v19 = vadd.f32 %v10789_v15, %v13632_v48  ;;  %v7857_v53 = vpop.f32.mrb[213].mxu1 }
 0x7ee   : > { %v7858_v54 = vadd.f32 %v13632_v48, %v7857_v53  ;;  %v10790_v50 = vpop.f32.mrb[214].mxu1  ;;  %10831 = vmatprep.mubr.bf16.mxu0 %v8000_v0 }
 0x7ef   : > { %v7869_v29 = vadd.f32 %v10790_v50, %v13632_v48  ;;  %v7860_v3 = vpop.f32.mrb[215].mxu1  ;;  %10832 = vmatmul.mubr.bf16.vlgmr.msra.gmra.mrb[240].mxu0 %v8001_v26  ;;  %v7974_v58 = vmax.f32 %v7866_v19, 0.0 }
 0x7f0   : > { %v7861_v43 = vadd.f32 %v13632_v48, %v7860_v3  ;;  %v7972_v55 = vmax.f32 %v7858_v54, 0.0 }
 0x7f1   : > { %v7975_v20 = vmax.f32 %v7869_v29, 0.0 }
 0x7f2   : > { %v7973_v44 = vmax.f32 %v7861_v43, 0.0 }
 0x7f3   : > { %v8003_v62 = vpack.c.bf16 %v7975_v20, %v7974_v58 }
 0x7f4   : > { %v8002_v39 = vpack.c.bf16 %v7973_v44, %v7972_v55  ;;  %v10793_v52 = vpop.f32.mrb[216].mxu1 }
 0x7f5   : > { %v7882_v14 = vadd.f32 %v10793_v52, %v13632_v48  ;;  %v7873_v7 = vpop.f32.mrb[217].mxu1 }
 0x7f6   : > { %v7874_v8 = vadd.f32 %v13632_v48, %v7873_v7  ;;  %v10794_v61 = vpop.f32.mrb[218].mxu1  ;;  %10835 = vmatprep.mubr.bf16.mxu0 %v8002_v39 }
 0x7f7   : > { %v7885_v12 = vadd.f32 %v10794_v61, %v13632_v48  ;;  %v7876_v63 = vpop.f32.mrb[219].mxu1  ;;  %10836 = vmatmul.mubr.bf16.gmra.mrb[244].mxu0 %v8003_v62  ;;  %v7978_v25 = vmax.f32 %v7882_v14, 0.0 }
 0x7f8   : > { %v7877_v45 = vadd.f32 %v13632_v48, %v7876_v63  ;;  %v7976_v16 = vmax.f32 %v7874_v8, 0.0 }
 0x7f9   : > { %v7979_v49 = vmax.f32 %v7885_v12, 0.0 }
 0x7fa   : > { %v7977_v5 = vmax.f32 %v7877_v45, 0.0 }
 0x7fb   : > { %v8005_v21 = vpack.c.bf16 %v7979_v49, %v7978_v25 }
 0x7fc   : > { %v8004_v4 = vpack.c.bf16 %v7977_v5, %v7976_v16  ;;  %v10797_v40 = vpop.f32.mrb[220].mxu1 }
 0x7fd   : > { %v7898_v37 = vadd.f32 %v10797_v40, %v13632_v48  ;;  %v7889_v18 = vpop.f32.mrb[221].mxu1 }
 0x7fe   : > { %v7890_v23 = vadd.f32 %v13632_v48, %v7889_v18  ;;  %v10798_v46 = vpop.f32.mrb[222].mxu1  ;;  %10839 = vmatprep.mubr.bf16.mxu0 %v8004_v4 }
 0x7ff   : > { %v7901_v22 = vadd.f32 %v10798_v46, %v13632_v48  ;;  %v7892_v1 = vpop.f32.mrb[223].mxu1  ;;  %10840 = vmatmul.mubr.bf16.gmra.mrb[248].mxu0 %v8005_v21  ;;  %v7982_v33 = vmax.f32 %v7898_v37, 0.0 }
 0x800   : > { %v7893_v41 = vadd.f32 %v13632_v48, %v7892_v1  ;;  %v7980_v9 = vmax.f32 %v7890_v23, 0.0 }
 0x801   : > { %v7983_v28 = vmax.f32 %v7901_v22, 0.0 }
 0x802   : > { %v7981_v2 = vmax.f32 %v7893_v41, 0.0  ;;  %v13669_v41 = vld [vmem:[%s14105_s3 + $0x6] ss:$0 sm:$0xff] }
 0x803   : > { %v8007_v13 = vpack.c.bf16 %v7983_v28, %v7982_v33  ;;  %v13671_v33 = vpop.permute.xlu0 %8520 }
 0x804   : > { %v8006_v27 = vpack.c.bf16 %v7981_v2, %v7980_v9  ;;  %v10801_v31 = vpop.f32.mrb[224].mxu1  ;;  %v13673_v9 = vpop.permute.xlu1 %8522 }
 0x805   : > { %v7914_v17 = vadd.f32 %v10801_v31, %v13632_v48  ;;  %v7905_v24 = vpop.f32.mrb[225].mxu1 }
 0x806   : > { %v7906_v30 = vadd.f32 %v13632_v48, %v7905_v24  ;;  %v10802_v60 = vpop.f32.mrb[226].mxu1  ;;  %10843 = vmatprep.mubr.bf16.mxu0 %v8006_v27 }
 0x807   : > { %v7917_v6 = vadd.f32 %v10802_v60, %v13632_v48  ;;  %v7908_v56 = vpop.f32.mrb[227].mxu1  ;;  %10844 = vmatmul.mubr.bf16.gmra.mrb[252].mxu0 %v8007_v13  ;;  %v7986_v47 = vmax.f32 %v7914_v17, 0.0 }
 0x808   : > { %v7909_v34 = vadd.f32 %v13632_v48, %v7908_v56  ;;  %v7984_v32 = vmax.f32 %v7906_v30, 0.0 }
 0x809   : > { %v7987_v57 = vmax.f32 %v7917_v6, 0.0  ;;  %v13689_v6 = vpop.permute.xlu0 %8524 }
 0x80a   : > { %v7985_v59 = vmax.f32 %v7909_v34, 0.0 }
 0x80b   : > { %v8009_v10 = vpack.c.bf16 %v7987_v57, %v7986_v47  ;;  %v13693_v47 = vpop.permute.xlu1 %8526 }
 0x80c   : > { %v8008_v42 = vpack.c.bf16 %v7985_v59, %v7984_v32  ;;  %v10805_v51 = vpop.f32.mrb[228].mxu1 }
 0x80d   : > { %v7930_v38 = vadd.f32 %v10805_v51, %v13632_v48  ;;  %v7921_v11 = vpop.f32.mrb[229].mxu1  ;;  %v13701_v51 = vpop.permute.xlu0 %8528 }
 0x80e   : > { %v7922_v36 = vadd.f32 %v13632_v48, %v7921_v11  ;;  %v10806_v35 = vpop.f32.mrb[230].mxu1  ;;  %10847 = vmatprep.mubr.bf16.mxu0 %v8008_v42 }
 0x80f   : > { %v7933_v26 = vadd.f32 %v10806_v35, %v13632_v48  ;;  %v7924_v0 = vpop.f32.mrb[231].mxu1  ;;  %10848 = vmatmul.mubr.bf16.gmra.mrb[0].mxu0 %v8009_v10  ;;  %v7990_v19 = vmax.f32 %v7930_v38, 0.0 }
 0x810   : > { %v7925_v15 = vadd.f32 %v13632_v48, %v7924_v0  ;;  %v7988_v54 = vmax.f32 %v7922_v36, 0.0  ;;  %v13711_v0 = vpop.permute.xlu1 %8530 }
 0x811   : > { %v7991_v53 = vmax.f32 %v7933_v26, 0.0 }
 0x812   : > { %v7989_v50 = vmax.f32 %v7925_v15, 0.0 }
 0x813   : > { %v8011_v29 = vpack.c.bf16 %v7991_v53, %v7990_v19 }
 0x814   : > { %v8010_v3 = vpack.c.bf16 %v7989_v50, %v7988_v54  ;;  %v10809_v43 = vpop.f32.mrb[232].mxu1 }
 0x815   : > { %v7946_v58 = vadd.f32 %v10809_v43, %v13632_v48  ;;  %v7937_v20 = vpop.f32.mrb[233].mxu1  ;;  %v13715_v43 = vpop.permute.xlu0 %8532 }
 0x816   : > { %v7938_v55 = vadd.f32 %v13632_v48, %v7937_v20  ;;  %v10810_v44 = vpop.f32.mrb[234].mxu1  ;;  %10851 = vmatprep.mubr.bf16.mxu0 %v8010_v3 }
 0x817   : > { %v7949_v62 = vadd.f32 %v10810_v44, %v13632_v48  ;;  %v7940_v39 = vpop.f32.mrb[235].mxu1  ;;  %10852 = vmatmul.mubr.bf16.gmra.mrb[4].mxu0 %v8011_v29  ;;  %v7994_v14 = vmax.f32 %v7946_v58, 0.0 }
 0x818   : > { %v7941_v52 = vadd.f32 %v13632_v48, %v7940_v39  ;;  %v7992_v8 = vmax.f32 %v7938_v55, 0.0 }
 0x819   : > { %v7995_v7 = vmax.f32 %v7949_v62, 0.0  ;;  %v8229_v62 = vlaneseq }
 0x81a   : > { %v7993_v61 = vmax.f32 %v7941_v52, 0.0 }
 0x81b   : > { %v8013_v12 = vpack.c.bf16 %v7995_v7, %v7994_v14  ;;  %v13723_v7 = vpop.permute.xlu1 %8534 }
 0x81c   : > { %v8012_v63 = vpack.c.bf16 %v7993_v61, %v7992_v8  ;;  %v10813_v45 = vpop.f32.mrb[236].mxu1 }
 0x81d   : > { %v7962_v25 = vadd.f32 %v10813_v45, %v13632_v48  ;;  %v7953_v49 = vpop.f32.mrb[237].mxu1 }
 0x81e   : > { %v7954_v16 = vadd.f32 %v13632_v48, %v7953_v49  ;;  %v10814_v5 = vpop.f32.mrb[238].mxu1  ;;  %10855 = vmatprep.mubr.bf16.mxu0 %v8012_v63 }
 0x81f   : > { %v7965_v21 = vadd.f32 %v10814_v5, %v13632_v48  ;;  %v7956_v4 = vpop.f32.mrb[239].mxu1  ;;  %10856 = vmatmul.mubr.bf16.gmra.mrb[8].mxu0 %v8013_v12  ;;  %v7998_v37 = vmax.f32 %v7962_v25, 0.0 }
 0x820   : > { %v7957_v40 = vadd.f32 %v13632_v48, %v7956_v4  ;;  %v7996_v23 = vmax.f32 %v7954_v16, 0.0  ;;  %v13734_v16 = vand.u32 127, %v8229_v62  ;;  %v13737_v4 = vpop.permute.xlu0 %8536 }
 0x821   : > { %v7999_v18 = vmax.f32 %v7965_v21, 0.0 }
 0x822   : > { %v7997_v46 = vmax.f32 %v7957_v40, 0.0  ;;  %vm8231_vm3 = vcmp.lt.s32.totalorder %v13734_v16, 45 }
 0x823   : > { %v8015_v22 = vpack.c.bf16 %v7999_v18, %v7998_v37 }
 0x824   : > { %v8014_v1 = vpack.c.bf16 %v7997_v46, %v7996_v23  ;;  %v13739_v46 = vpop.permute.xlu1 %8538 }
 0x826   : > { %10859 = vmatprep.mubr.bf16.mxu0 %v8014_v1 }
 0x827   : > { %10860 = vmatmul.mubr.bf16.gmra.mrb[12].mxu0 %v8015_v22 }
 0x8c2   : > { %v10833_v28 = vpop.f32.mrb[240].mxu0 }
 0x8c3   : > { %v13676_v48 = vadd.f32 %v10833_v28, %v13669_v41  ;;  %v8102_v2 = vpop.f32.mrb[241].mxu0 }
 0x8c4   : > { %v13679_v13 = vadd.f32 %v13669_v41, %v8102_v2  ;;  %v10834_v27 = vpop.f32.mrb[242].mxu0 }
 0x8c5   : > { %v9323_v31 = vmul.f32 -1.442695, %v13676_v48  ;;  %v13683_v17 = vadd.f32 %v10834_v27, %v13669_v41  ;;  %v8105_v24 = vpop.f32.mrb[243].mxu0 }
 0x8c6   : > { %v9321_v30 = vmul.f32 -1.442695, %v13679_v13  ;;  %v13687_v60 = vadd.f32 %v13669_v41, %v8105_v24 }
 0x8c7   : > { %11455 = vpow2.f32 %v9323_v31  ;;  %v9324_v56 = vmul.f32 -1.442695, %v13683_v17 }
 0x8c8   : > { %11457 = vpow2.f32 %v9321_v30  ;;  %v9322_v34 = vmul.f32 -1.442695, %v13687_v60 }
 0x8c9   : > { %11459 = vpow2.f32 %v9324_v56 }
 0x8ca   : > { %11461 = vpow2.f32 %v9322_v34  ;;  %v10837_v57 = vpop.f32.mrb[244].mxu0 }
 0x8cb   : > { %v13696_v32 = vadd.f32 %v10837_v57, %v13669_v41  ;;  %v8118_v59 = vpop.f32.mrb[245].mxu0 }
 0x8cc   : > { %v13699_v10 = vadd.f32 %v13669_v41, %v8118_v59  ;;  %v10838_v42 = vpop.f32.mrb[246].mxu0 }
 0x8cd   : > { %v9327_v38 = vmul.f32 -1.442695, %v13696_v32  ;;  %v13705_v11 = vadd.f32 %v10838_v42, %v13669_v41  ;;  %v8121_v36 = vpop.f32.mrb[247].mxu0 }
 0x8ce   : > { %v9325_v35 = vmul.f32 -1.442695, %v13699_v10  ;;  %v13709_v26 = vadd.f32 %v13669_v41, %v8121_v36 }
 0x8cf   : > { %11463 = vpow2.f32 %v9327_v38  ;;  %v9328_v15 = vmul.f32 -1.442695, %v13705_v11 }
 0x8d0   : > { %11465 = vpow2.f32 %v9325_v35  ;;  %v9326_v19 = vmul.f32 -1.442695, %v13709_v26  ;;  %v13763_v35 = vpop.permute.xlu0 %8540 }
 0x8d1   : > { %v11456_v53 = vpop.eup %11455  ;;  %11467 = vpow2.f32 %v9328_v15 }
 0x8d2   : > { %v11458_v54 = vpop.eup %11457  ;;  %v8330_v50 = vadd.f32 1.0, %v11456_v53  ;;  %11469 = vpow2.f32 %v9326_v19  ;;  %v10841_v29 = vpop.f32.mrb[248].mxu0 }
 0x8d3   : > { %v11460_v3 = vpop.eup %11459  ;;  %v8328_v58 = vadd.f32 1.0, %v11458_v54  ;;  %v13718_v20 = vadd.f32 %v10841_v29, %v13669_v41  ;;  %v8134_v55 = vpop.f32.mrb[249].mxu0 }
 0x8d4   : > { %v11462_v44 = vpop.eup %11461  ;;  %11471 = vrcp.f32 %v8330_v50  ;;  %v8331_v39 = vadd.f32 1.0, %v11460_v3  ;;  %v13721_v52 = vadd.f32 %v13669_v41, %v8134_v55  ;;  %v10842_v14 = vpop.f32.mrb[250].mxu0 }
 0x8d5   : > { %11473 = vrcp.f32 %v8328_v58  ;;  %v8329_v8 = vadd.f32 1.0, %v11462_v44  ;;  %v9331_v61 = vmul.f32 -1.442695, %v13718_v20  ;;  %v13727_v12 = vadd.f32 %v10842_v14, %v13669_v41  ;;  %v8137_v63 = vpop.f32.mrb[251].mxu0  ;;  %v13775_v3 = vpop.permute.xlu1 %8542 }
 0x8d6   : > { %11475 = vrcp.f32 %v8331_v39  ;;  %v9329_v45 = vmul.f32 -1.442695, %v13721_v52  ;;  %v13731_v25 = vadd.f32 %v13669_v41, %v8137_v63 }
 0x8d7   : > { %11477 = vrcp.f32 %v8329_v8  ;;  %v9332_v49 = vmul.f32 -1.442695, %v13727_v12 }
 0x8d8   : > { %11479 = vpow2.f32 %v9331_v61  ;;  %v9330_v5 = vmul.f32 -1.442695, %v13731_v25  ;;  %v13807_v61 = vpop.permute.xlu0 %8544 }
 0x8d9   : > { %v11464_v21 = vpop.eup %11463  ;;  %11481 = vpow2.f32 %v9329_v45 }
 0x8da   : > { %v11466_v40 = vpop.eup %11465  ;;  %v8334_v37 = vadd.f32 1.0, %v11464_v21  ;;  %11483 = vpow2.f32 %v9332_v49  ;;  %v10845_v18 = vpop.f32.mrb[252].mxu0 }
 0x8db   : > { %v11468_v23 = vpop.eup %11467  ;;  %v8332_v22 = vadd.f32 1.0, %v11466_v40  ;;  %11485 = vpow2.f32 %v9330_v5  ;;  %v13742_v1 = vadd.f32 %v10845_v18, %v13669_v41  ;;  %v8150_v28 = vpop.f32.mrb[253].mxu0 }
 0x8dc   : > { %v11470_v2 = vpop.eup %11469  ;;  %11487 = vrcp.f32 %v8334_v37  ;;  %v8335_v27 = vadd.f32 1.0, %v11468_v23  ;;  %v13746_v31 = vadd.f32 %v13669_v41, %v8150_v28  ;;  %v10846_v24 = vpop.f32.mrb[254].mxu0 }
 0x8dd   : > { %11489 = vrcp.f32 %v8332_v22  ;;  %v8333_v30 = vadd.f32 1.0, %v11470_v2  ;;  %v9335_v56 = vmul.f32 -1.442695, %v13742_v1  ;;  %v13757_v34 = vadd.f32 %v10846_v24, %v13669_v41  ;;  %v8153_v57 = vpop.f32.mrb[255].mxu0  ;;  %v13817_v18 = vpop.permute.xlu1 %8546 }
 0x8de   : > { %v11472_v59 = vpop.eup %11471  ;;  %11491 = vrcp.f32 %v8335_v27  ;;  %v9333_v42 = vmul.f32 -1.442695, %v13746_v31  ;;  %v13761_v38 = vadd.f32 %v13669_v41, %v8153_v57  ;;  %v13845_v57 = vpop.permute.xlu0 %8548 }
 0x8df   : > { %v11474_v36 = vpop.eup %11473  ;;  %v8426_v15 = vsel %vm8231_vm3, %v13676_v48, %v11472_v59  ;;  %11493 = vrcp.f32 %v8333_v30  ;;  %v9336_v19 = vmul.f32 -1.442695, %v13757_v34 }
 0x8e0   : > { %v11476_v53 = vpop.eup %11475  ;;  %8458 = vst.msk [vmem:[%s13753_s7 + $0x10] sm:$0xff] %vm7758_vm2, %v8426_v15  ;;  %v8424_v54 = vsel %vm8231_vm3, %v13679_v13, %v11474_v36  ;;  %11495 = vpow2.f32 %v9335_v56  ;;  %v9334_v50 = vmul.f32 -1.442695, %v13761_v38 }
 0x8e1   : > { %v11478_v29 = vpop.eup %11477  ;;  %8619 = vst.msk [vmem:[%s13753_s7 + $0x10] sm:$0xff] %vm8616_vm4, %v13689_v6  ;;  %v8427_v48 = vsel %vm8231_vm3, %v13683_v17, %v11476_v53  ;;  %11497 = vpow2.f32 %v9333_v42 }
 0x8e2   : > { %8456 = vst.msk [vmem:[%s13753_s7] sm:$0xff] %vm7758_vm2, %v8424_v54  ;;  %v11480_v13 = vpop.eup %11479  ;;  %8459 = vst.msk [vmem:[%s13753_s7 + $0x18] sm:$0xff] %vm7758_vm2, %v8427_v48  ;;  %v8425_v58 = vsel %vm8231_vm3, %v13687_v60, %v11478_v29  ;;  %11499 = vpow2.f32 %v9336_v19  ;;  %v10849_v6 = vpop.f32.mrb[0].mxu0 }
 0x8e3   : > { %8617 = vst.msk [vmem:[%s13753_s7] sm:$0xff] %vm8616_vm4, %v13671_v33  ;;  %v11482_v55 = vpop.eup %11481  ;;  %8620 = vst.msk [vmem:[%s13753_s7 + $0x18] sm:$0xff] %vm8616_vm4, %v13693_v47  ;;  %v8338_v17 = vadd.f32 1.0, %v11480_v13  ;;  %11501 = vpow2.f32 %v9334_v50  ;;  %v13799_v44 = vadd.f32 %v10849_v6, %v13669_v41  ;;  %v8166_v33 = vpop.f32.mrb[1].mxu0 }
 0x8e4   : > { %8457 = vst.msk [vmem:[%s13753_s7 + $0x8] sm:$0xff] %vm7758_vm2, %v8425_v58  ;;  %v11484_v62 = vpop.eup %11483  ;;  %v8336_v39 = vadd.f32 1.0, %v11482_v55  ;;  %v13805_v60 = vadd.f32 %v13669_v41, %v8166_v33  ;;  %v10850_v14 = vpop.f32.mrb[2].mxu0 }
 0x8e5   : > { %8618 = vst.msk [vmem:[%s13753_s7 + $0x8] sm:$0xff] %vm8616_vm4, %v13673_v9  ;;  %v11486_v8 = vpop.eup %11485  ;;  %11503 = vrcp.f32 %v8338_v17  ;;  %v8339_v47 = vadd.f32 1.0, %v11484_v62  ;;  %v9339_v63 = vmul.f32 -1.442695, %v13799_v44  ;;  %v13811_v45 = vadd.f32 %v10850_v14, %v13669_v41  ;;  %v8169_v49 = vpop.f32.mrb[3].mxu0 }
 0x8e6   : > { %v11488_v5 = vpop.eup %11487  ;;  %11505 = vrcp.f32 %v8336_v39  ;;  %v8337_v9 = vadd.f32 1.0, %v11486_v8  ;;  %v9337_v21 = vmul.f32 -1.442695, %v13805_v60  ;;  %v13815_v40 = vadd.f32 %v13669_v41, %v8169_v49  ;;  %v13876_v39 = vpop.permute.xlu0 %8552 }
 0x8e7   : > { %v11490_v37 = vpop.eup %11489  ;;  %v8430_v23 = vsel %vm8231_vm3, %v13696_v32, %v11488_v5  ;;  %11507 = vrcp.f32 %v8339_v47  ;;  %v9340_v22 = vmul.f32 -1.442695, %v13811_v45 }
 0x8e8   : > { %v11492_v28 = vpop.eup %11491  ;;  %8462 = vst.msk [vmem:[%s13753_s7 + $0x30] sm:$0xff] %vm7758_vm2, %v8430_v23  ;;  %v8428_v2 = vsel %vm8231_vm3, %v13699_v10, %v11490_v37  ;;  %11509 = vrcp.f32 %v8337_v9  ;;  %v9338_v27 = vmul.f32 -1.442695, %v13815_v40 }
 0x8e9   : > { %v11494_v24 = vpop.eup %11493  ;;  %8623 = vst.msk [vmem:[%s13753_s7 + $0x30] sm:$0xff] %vm8616_vm4, %v13715_v43  ;;  %v8431_v32 = vsel %vm8231_vm3, %v13705_v11, %v11492_v28  ;;  %11511 = vpow2.f32 %v9339_v63 }
 0x8ea   : > { %8460 = vst.msk [vmem:[%s13753_s7 + $0x20] sm:$0xff] %vm7758_vm2, %v8428_v2  ;;  %v11496_v30 = vpop.eup %11495  ;;  %8463 = vst.msk [vmem:[%s13753_s7 + $0x38] sm:$0xff] %vm7758_vm2, %v8431_v32  ;;  %v8429_v10 = vsel %vm8231_vm3, %v13709_v26, %v11494_v24  ;;  %11513 = vpow2.f32 %v9337_v21  ;;  %v10853_v43 = vpop.f32.mrb[4].mxu0 }
 0x8eb   : > { %8621 = vst.msk [vmem:[%s13753_s7 + $0x20] sm:$0xff] %vm8616_vm4, %v13701_v51  ;;  %v11498_v56 = vpop.eup %11497  ;;  %8624 = vst.msk [vmem:[%s13753_s7 + $0x38] sm:$0xff] %vm8616_vm4, %v13723_v7  ;;  %v8342_v11 = vadd.f32 1.0, %v11496_v30  ;;  %11515 = vpow2.f32 %v9340_v22  ;;  %v13853_v51 = vadd.f32 %v10853_v43, %v13669_v41  ;;  %v8182_v59 = vpop.f32.mrb[5].mxu0 }
 0x8ec   : > { %8461 = vst.msk [vmem:[%s13753_s7 + $0x28] sm:$0xff] %vm7758_vm2, %v8429_v10  ;;  %v11500_v42 = vpop.eup %11499  ;;  %v8340_v26 = vadd.f32 1.0, %v11498_v56  ;;  %11517 = vpow2.f32 %v9338_v27  ;;  %v13859_v36 = vadd.f32 %v13669_v41, %v8182_v59  ;;  %v10854_v15 = vpop.f32.mrb[6].mxu0 }
 0x8ed   : > { %8622 = vst.msk [vmem:[%s13753_s7 + $0x28] sm:$0xff] %vm8616_vm4, %v13711_v0  ;;  %v11502_v19 = vpop.eup %11501  ;;  %v13861_v7 = vpop.permute.xlu1 %8550  ;;  %11519 = vrcp.f32 %v8342_v11  ;;  %v8343_v53 = vadd.f32 1.0, %v11500_v42  ;;  %v9343_v54 = vmul.f32 -1.442695, %v13853_v51  ;;  %v13865_v50 = vadd.f32 %v10854_v15, %v13669_v41 }
 0x8ee   : > { %v8185_v29 = vpop.f32.mrb[7].mxu0  ;;  %11521 = vrcp.f32 %v8340_v26  ;;  %v8341_v0 = vadd.f32 1.0, %v11502_v19  ;;  %v9341_v48 = vmul.f32 -1.442695, %v13859_v36  ;;  %v13922_v32 = vpop.permute.xlu0 %8556 }
 0x8ef   : > { %v13869_v13 = vadd.f32 %v13669_v41, %v8185_v29  ;;  %v11504_v58 = vpop.eup %11503  ;;  %11523 = vrcp.f32 %v8343_v53  ;;  %v9344_v6 = vmul.f32 -1.442695, %v13865_v50 }
 0x8f0   : > { %v11506_v55 = vpop.eup %11505  ;;  %v8434_v17 = vsel %vm8231_vm3, %v13718_v20, %v11504_v58  ;;  %11525 = vrcp.f32 %v8341_v0 }
 0x8f1   : > { %v9342_v33 = vmul.f32 -1.442695, %v13869_v13  ;;  %v11508_v62 = vpop.eup %11507  ;;  %8466 = vst.msk [vmem:[%s13753_s7 + $0x50] sm:$0xff] %vm7758_vm2, %v8434_v17  ;;  %v8432_v14 = vsel %vm8231_vm3, %v13721_v52, %v11506_v55  ;;  %11527 = vpow2.f32 %v9343_v54  ;;  %v13891_v49 = vpop.permute.xlu1 %8554 }
 0x8f2   : > { %v11510_v8 = vpop.eup %11509  ;;  %8627 = vst.msk [vmem:[%s13753_s7 + $0x50] sm:$0xff] %vm8616_vm4, %v13763_v35  ;;  %v8435_v20 = vsel %vm8231_vm3, %v13727_v12, %v11508_v62  ;;  %11529 = vpow2.f32 %v9341_v48  ;;  %v10857_v47 = vpop.f32.mrb[8].mxu0 }
 0x8f3   : > { %8464 = vst.msk [vmem:[%s13753_s7 + $0x40] sm:$0xff] %vm7758_vm2, %v8432_v14  ;;  %v11512_v63 = vpop.eup %11511  ;;  %8467 = vst.msk [vmem:[%s13753_s7 + $0x58] sm:$0xff] %vm7758_vm2, %v8435_v20  ;;  %v8433_v52 = vsel %vm8231_vm3, %v13731_v25, %v11510_v8  ;;  %11531 = vpow2.f32 %v9344_v6  ;;  %v13902_v35 = vadd.f32 %v10857_v47, %v13669_v41  ;;  %v8198_v12 = vpop.f32.mrb[9].mxu0 }
 0x8f4   : > { %8625 = vst.msk [vmem:[%s13753_s7 + $0x40] sm:$0xff] %vm8616_vm4, %v13737_v4  ;;  %v11514_v5 = vpop.eup %11513  ;;  %8628 = vst.msk [vmem:[%s13753_s7 + $0x58] sm:$0xff] %vm8616_vm4, %v13775_v3  ;;  %v8346_v9 = vadd.f32 1.0, %v11512_v63  ;;  %11533 = vpow2.f32 %v9342_v33  ;;  %v13910_v4 = vadd.f32 %v13669_v41, %v8198_v12  ;;  %v10858_v21 = vpop.f32.mrb[10].mxu0 }
 0x8f5   : > { %8465 = vst.msk [vmem:[%s13753_s7 + $0x48] sm:$0xff] %vm7758_vm2, %v8433_v52  ;;  %v11516_v37 = vpop.eup %11515  ;;  %v8344_v25 = vadd.f32 1.0, %v11514_v5  ;;  %v13916_v23 = vadd.f32 %v10858_v21, %v13669_v41  ;;  %v8201_v22 = vpop.f32.mrb[11].mxu0  ;;  %v9347_v2 = vmul.f32 -1.442695, %v13902_v35 }
 0x8f6   : > { %8626 = vst.msk [vmem:[%s13753_s7 + $0x48] sm:$0xff] %vm8616_vm4, %v13739_v46  ;;  %v11518_v28 = vpop.eup %11517  ;;  %11535 = vrcp.f32 %v8346_v9  ;;  %v8347_v3 = vadd.f32 1.0, %v11516_v37  ;;  %v13920_v27 = vadd.f32 %v13669_v41, %v8201_v22  ;;  %v9345_v30 = vmul.f32 -1.442695, %v13910_v4  ;;  %v13929_v59 = vpop.permute.xlu1 %8558 }
 0x8f7   : > { %v11520_v24 = vpop.eup %11519  ;;  %11537 = vrcp.f32 %v8344_v25  ;;  %v8345_v46 = vadd.f32 1.0, %v11518_v28  ;;  %v9348_v56 = vmul.f32 -1.442695, %v13916_v23  ;;  %v13964_v58 = vpop.permute.xlu0 %8560 }
 0x8f8   : > { %v11522_v10 = vpop.eup %11521  ;;  %v8438_v43 = vsel %vm8231_vm3, %v13742_v1, %v11520_v24  ;;  %11539 = vrcp.f32 %v8347_v3  ;;  %v9346_v26 = vmul.f32 -1.442695, %v13920_v27 }
 0x8f9   : > { %v11524_v11 = vpop.eup %11523  ;;  %8470 = vst.msk [vmem:[%s13753_s7 + $0x70] sm:$0xff] %vm7758_vm2, %v8438_v43  ;;  %v8436_v42 = vsel %vm8231_vm3, %v13746_v31, %v11522_v10  ;;  %11541 = vrcp.f32 %v8345_v46 }
 0x8fa   : > { %v11526_v1 = vpop.eup %11525  ;;  %8631 = vst.msk [vmem:[%s13753_s7 + $0x70] sm:$0xff] %vm8616_vm4, %v13845_v57  ;;  %v8439_v15 = vsel %vm8231_vm3, %v13757_v34, %v11524_v11  ;;  %11543 = vpow2.f32 %v9347_v2  ;;  %v10861_v19 = vpop.f32.mrb[12].mxu0 }
 0x8fb   : > { %8468 = vst.msk [vmem:[%s13753_s7 + $0x60] sm:$0xff] %vm7758_vm2, %v8436_v42  ;;  %v11528_v53 = vpop.eup %11527  ;;  %8471 = vst.msk [vmem:[%s13753_s7 + $0x78] sm:$0xff] %vm7758_vm2, %v8439_v15  ;;  %v8437_v31 = vsel %vm8231_vm3, %v13761_v38, %v11526_v1  ;;  %11545 = vpow2.f32 %v9345_v30  ;;  %v13954_v57 = vadd.f32 %v10861_v19, %v13669_v41  ;;  %v8214_v54 = vpop.f32.mrb[13].mxu0 }
 0x8fc   : > { %8629 = vst.msk [vmem:[%s13753_s7 + $0x60] sm:$0xff] %vm8616_vm4, %v13807_v61  ;;  %v11530_v29 = vpop.eup %11529  ;;  %8632 = vst.msk [vmem:[%s13753_s7 + $0x78] sm:$0xff] %vm8616_vm4, %v13861_v7  ;;  %v8350_v34 = vadd.f32 1.0, %v11528_v53  ;;  %11547 = vpow2.f32 %v9348_v56  ;;  %v13962_v61 = vadd.f32 %v13669_v41, %v8214_v54  ;;  %v10862_v0 = vpop.f32.mrb[14].mxu0 }
 0x8fd   : > { %8469 = vst.msk [vmem:[%s13753_s7 + $0x68] sm:$0xff] %vm7758_vm2, %v8437_v31  ;;  %v11532_v48 = vpop.eup %11531  ;;  %v8348_v38 = vadd.f32 1.0, %v11530_v29  ;;  %11549 = vpow2.f32 %v9346_v26  ;;  %v13970_v6 = vadd.f32 %v10862_v0, %v13669_v41  ;;  %v8217_v7 = vpop.f32.mrb[15].mxu0  ;;  %v9351_v33 = vmul.f32 -1.442695, %v13954_v57 }
 0x8fe   : > { %8630 = vst.msk [vmem:[%s13753_s7 + $0x68] sm:$0xff] %vm8616_vm4, %v13817_v18  ;;  %v11534_v55 = vpop.eup %11533  ;;  %11551 = vrcp.f32 %v8350_v34  ;;  %v8351_v17 = vadd.f32 1.0, %v11532_v48  ;;  %v13974_v62 = vadd.f32 %v13669_v41, %v8217_v7  ;;  %v13976_v14 = vpop.permute.xlu1 %8562  ;;  %v9349_v8 = vmul.f32 -1.442695, %v13962_v61 }
 0x8ff   : > { %11553 = vrcp.f32 %v8348_v38  ;;  %v8349_v18 = vadd.f32 1.0, %v11534_v55  ;;  %v9352_v47 = vmul.f32 -1.442695, %v13970_v6  ;;  %v8565_v21 = vpop.permute.xlu0 %8564 }
 0x900   : > { %v11536_v20 = vpop.eup %11535  ;;  %11555 = vrcp.f32 %v8351_v17  ;;  %v9350_v52 = vmul.f32 -1.442695, %v13974_v62 }
 0x901   : > { %v11538_v63 = vpop.eup %11537  ;;  %v8442_v41 = vsel %vm8231_vm3, %v13799_v44, %v11536_v20  ;;  %11557 = vrcp.f32 %v8349_v18 }
 0x902   : > { %v11540_v12 = vpop.eup %11539  ;;  %8474 = vst.msk [vmem:[%s13753_s7 + $0x90] sm:$0xff] %vm7758_vm2, %v8442_v41  ;;  %v8440_v5 = vsel %vm8231_vm3, %v13805_v60, %v11538_v63  ;;  %11559 = vpow2.f32 %v9351_v33  ;;  %v8567_v22 = vpop.permute.xlu1 %8566 }
 0x903   : > { %v11542_v9 = vpop.eup %11541  ;;  %8635 = vst.msk [vmem:[%s13753_s7 + $0x90] sm:$0xff] %vm8616_vm4, %v13922_v32  ;;  %v8443_v44 = vsel %vm8231_vm3, %v13811_v45, %v11540_v12  ;;  %11561 = vpow2.f32 %v9349_v8  ;;  %v8569_v46 = vpop.permute.xlu0 %8568 }
 0x904   : > { %8472 = vst.msk [vmem:[%s13753_s7 + $0x80] sm:$0xff] %vm7758_vm2, %v8440_v5  ;;  %v11544_v37 = vpop.eup %11543  ;;  %8475 = vst.msk [vmem:[%s13753_s7 + $0x98] sm:$0xff] %vm7758_vm2, %v8443_v44  ;;  %v8441_v60 = vsel %vm8231_vm3, %v13815_v40, %v11542_v9  ;;  %11563 = vpow2.f32 %v9352_v47 }
 0x905   : > { %8633 = vst.msk [vmem:[%s13753_s7 + $0x80] sm:$0xff] %vm8616_vm4, %v13876_v39  ;;  %v11546_v25 = vpop.eup %11545  ;;  %8636 = vst.msk [vmem:[%s13753_s7 + $0x98] sm:$0xff] %vm8616_vm4, %v13929_v59  ;;  %v8354_v45 = vadd.f32 1.0, %v11544_v37  ;;  %11565 = vpow2.f32 %v9350_v52 }
 0x906   : > { %8473 = vst.msk [vmem:[%s13753_s7 + $0x88] sm:$0xff] %vm7758_vm2, %v8441_v60  ;;  %v11548_v28 = vpop.eup %11547  ;;  %v8352_v39 = vadd.f32 1.0, %v11546_v25  ;;  %v8571_v56 = vpop.permute.xlu1 %8570 }
 0x907   : > { %8634 = vst.msk [vmem:[%s13753_s7 + $0x88] sm:$0xff] %vm8616_vm4, %v13891_v49  ;;  %v11550_v3 = vpop.eup %11549  ;;  %11567 = vrcp.f32 %v8354_v45  ;;  %v8355_v40 = vadd.f32 1.0, %v11548_v28  ;;  %v8573_v15 = vpop.permute.xlu0 %8572 }
 0x908   : > { %v11552_v2 = vpop.eup %11551  ;;  %11569 = vrcp.f32 %v8352_v39  ;;  %v8353_v24 = vadd.f32 1.0, %v11550_v3 }
 0x909   : > { %v11554_v32 = vpop.eup %11553  ;;  %v8446_v30 = vsel %vm8231_vm3, %v13853_v51, %v11552_v2  ;;  %11571 = vrcp.f32 %v8355_v40 }
 0x90a   : > { %v11556_v49 = vpop.eup %11555  ;;  %8478 = vst.msk [vmem:[%s13753_s7 + $0xb0] sm:$0xff] %vm7758_vm2, %v8446_v30  ;;  %v8444_v10 = vsel %vm8231_vm3, %v13859_v36, %v11554_v32  ;;  %11573 = vrcp.f32 %v8353_v24  ;;  %v8575_v31 = vpop.permute.xlu1 %8574 }
 0x90b   : > { %v11558_v43 = vpop.eup %11557  ;;  %8639 = vst.msk [vmem:[%s13753_s7 + $0xb0] sm:$0xff] %vm8616_vm4, %v8565_v21  ;;  %v8447_v51 = vsel %vm8231_vm3, %v13865_v50, %v11556_v49 }
 0x90c   : > { %8476 = vst.msk [vmem:[%s13753_s7 + $0xa0] sm:$0xff] %vm7758_vm2, %v8444_v10  ;;  %v11560_v11 = vpop.eup %11559  ;;  %8479 = vst.msk [vmem:[%s13753_s7 + $0xb8] sm:$0xff] %vm7758_vm2, %v8447_v51  ;;  %v8445_v36 = vsel %vm8231_vm3, %v13869_v13, %v11558_v43 }
 0x90d   : > { %8637 = vst.msk [vmem:[%s13753_s7 + $0xa0] sm:$0xff] %vm8616_vm4, %v13964_v58  ;;  %v11562_v59 = vpop.eup %11561  ;;  %8640 = vst.msk [vmem:[%s13753_s7 + $0xb8] sm:$0xff] %vm8616_vm4, %v8567_v22  ;;  %v8358_v42 = vadd.f32 1.0, %v11560_v11 }
 0x90e   : > { %8477 = vst.msk [vmem:[%s13753_s7 + $0xa8] sm:$0xff] %vm7758_vm2, %v8445_v36  ;;  %v11564_v26 = vpop.eup %11563  ;;  %v8356_v50 = vadd.f32 1.0, %v11562_v59  ;;  %v8579_v38 = vpop.permute.xlu1 %8578 }
 0x90f   : > { %8638 = vst.msk [vmem:[%s13753_s7 + $0xa8] sm:$0xff] %vm8616_vm4, %v13976_v14  ;;  %v11566_v1 = vpop.eup %11565  ;;  %11575 = vrcp.f32 %v8358_v42  ;;  %v8359_v19 = vadd.f32 1.0, %v11564_v26 }
 0x910   : > { %11577 = vrcp.f32 %v8356_v50  ;;  %v8357_v13 = vadd.f32 1.0, %v11566_v1 }
 0x911   : > { %v11568_v53 = vpop.eup %11567  ;;  %11579 = vrcp.f32 %v8359_v19 }
 0x912   : > { %v11570_v54 = vpop.eup %11569  ;;  %v8450_v29 = vsel %vm8231_vm3, %v13902_v35, %v11568_v53  ;;  %11581 = vrcp.f32 %v8357_v13  ;;  %v8577_v35 = vpop.permute.xlu0 %8576 }
 0x913   : > { %v11572_v34 = vpop.eup %11571  ;;  %8482 = vst.msk [vmem:[%s13753_s7 + $0xd0] sm:$0xff] %vm7758_vm2, %v8450_v29  ;;  %v8448_v0 = vsel %vm8231_vm3, %v13910_v4, %v11570_v54  ;;  %v8583_v8 = vpop.permute.xlu1 %8582 }
 0x914   : > { %v11574_v48 = vpop.eup %11573  ;;  %8643 = vst.msk [vmem:[%s13753_s7 + $0xd0] sm:$0xff] %vm8616_vm4, %v8573_v15  ;;  %v8451_v58 = vsel %vm8231_vm3, %v13916_v23, %v11572_v34 }
 0x915   : > { %8480 = vst.msk [vmem:[%s13753_s7 + $0xc0] sm:$0xff] %vm7758_vm2, %v8448_v0  ;;  %8483 = vst.msk [vmem:[%s13753_s7 + $0xd8] sm:$0xff] %vm7758_vm2, %v8451_v58  ;;  %v8449_v4 = vsel %vm8231_vm3, %v13920_v27, %v11574_v48 }
 0x916   : > { %8641 = vst.msk [vmem:[%s13753_s7 + $0xc0] sm:$0xff] %vm8616_vm4, %v8569_v46  ;;  %8644 = vst.msk [vmem:[%s13753_s7 + $0xd8] sm:$0xff] %vm8616_vm4, %v8575_v31  ;;  %v8581_v27 = vpop.permute.xlu0 %8580 }
 0x917   : > { %8481 = vst.msk [vmem:[%s13753_s7 + $0xc8] sm:$0xff] %vm7758_vm2, %v8449_v4 }
 0x918   : > { %8642 = vst.msk [vmem:[%s13753_s7 + $0xc8] sm:$0xff] %vm8616_vm4, %v8571_v56 }
 0x919   : > { %v11576_v23 = vpop.eup %11575 }
 0x91a   : > { %v11578_v7 = vpop.eup %11577  ;;  %v8454_v55 = vsel %vm8231_vm3, %v13954_v57, %v11576_v23 }
 0x91b   : > { %v11580_v17 = vpop.eup %11579  ;;  %8486 = vst.msk [vmem:[%s13753_s7 + $0xf0] sm:$0xff] %vm7758_vm2, %v8454_v55  ;;  %v8452_v33 = vsel %vm8231_vm3, %v13962_v61, %v11578_v7 }
 0x91c   : > { %v11582_v14 = vpop.eup %11581  ;;  %8647 = vst.msk [vmem:[%s13753_s7 + $0xf0] sm:$0xff] %vm8616_vm4, %v8581_v27  ;;  %v8455_v18 = vsel %vm8231_vm3, %v13970_v6, %v11580_v17 }
 0x91d   : > { %8484 = vst.msk [vmem:[%s13753_s7 + $0xe0] sm:$0xff] %vm7758_vm2, %v8452_v33  ;;  %8487 = vst.msk [vmem:[%s13753_s7 + $0xf8] sm:$0xff] %vm7758_vm2, %v8455_v18  ;;  %v8453_v57 = vsel %vm8231_vm3, %v13974_v62, %v11582_v14 }
 0x91e   : > { %8645 = vst.msk [vmem:[%s13753_s7 + $0xe0] sm:$0xff] %vm8616_vm4, %v8577_v35  ;;  %8648 = vst.msk [vmem:[%s13753_s7 + $0xf8] sm:$0xff] %vm8616_vm4, %v8583_v8 }
 0x91f   : > { %8485 = vst.msk [vmem:[%s13753_s7 + $0xe8] sm:$0xff] %vm7758_vm2, %v8453_v57 }
 0x920   : > { %8646 = vst.msk [vmem:[%s13753_s7 + $0xe8] sm:$0xff] %vm8616_vm4, %v8579_v38 }
 0x921 PF: > { %s14_s15 = sadd.s32 1, %s11601_s15  }
 0x922   : > { %p11_p5 = scmp.ge.s32.totalorder %s14_s15, 4  }
 0x924   :  { %13 = sbr.rel (!%p11_p5) target bundleno = 1 (0x1), region = 69 }

</bundles_post_ra>
